<compile_context>
chip_gen: v7x
topology: tpu7x:2x2x1
jax: 0.10.0
libtpu: 0.0.40
codegen_flags: <defaults>
</compile_context>

<pallas_src>
import jax
import jax.numpy as jnp
from jax.experimental import pallas as pl
from jax.experimental.pallas import tpu as pltpu

K = 7           # conv kernel size
PAD = K // 2    # "same" padding


def _pick_cb(C, L, itemsize=4, budget=4 << 20):
    """Channel block size: a multiple of 8 (or C itself) that divides C and
    keeps one (Cb, L) f32 block within ~4 MiB (double-buffered well under the
    scoped VMEM default on v5e/v6e/v7x)."""
    if C * L * itemsize <= budget or C % 8 != 0:
        return C
    cands = [cb for cb in range(8, C, 8)
             if C % cb == 0 and cb * L * itemsize <= budget]
    return max(cands) if cands else 8


def _make_kernel(C, H, W, n_cb):
    inv_c = 1.0 / C

    def kernel(w_ref, x_ref, o_ref, sum_ref, max_ref, pad_ref, col_ref):
        # w_ref:   SMEM (2*K*K,) flattened conv weights, order [in_ch, kh, kw]
        # x_ref:   VMEM (1, Cb, H*W) one channel block, spatial folded to lanes
        # o_ref:   VMEM (1, 1, H, W) output block (resident across the C axis)
        # sum_ref: VMEM (1, H*W) running channel sum
        # max_ref: VMEM (1, H*W) running channel max
        # pad_ref: VMEM (2, H+2P, W+2P) zero-padded avg / max maps
        # col_ref: VMEM (2, H+2P, W) lane-shifted columns, reused across di
        c = pl.program_id(1)

        xb = x_ref[0]                                     # (Cb, H*W) lane-dense
        blk_sum = jnp.sum(xb, axis=0, keepdims=True)      # (1, H*W)
        blk_max = jnp.max(xb, axis=0, keepdims=True)      # (1, H*W)

        @pl.when(c == 0)
        def _():
            sum_ref[...] = jnp.zeros(sum_ref.shape, sum_ref.dtype)
            max_ref[...] = jnp.full(max_ref.shape, -jnp.inf, max_ref.dtype)

        sum_ref[...] = sum_ref[...] + blk_sum
        max_ref[...] = jnp.maximum(max_ref[...], blk_max)

        @pl.when(c == n_cb - 1)
        def _():
            # channel mean
            sum_ref[...] = sum_ref[...] * jnp.float32(inv_c)

            # Explicit zero padding of the reduced maps (matches conv zero
            # padding exactly; does not rely on reductions over a padded x).
            pad_ref[...] = jnp.zeros(pad_ref.shape, pad_ref.dtype)
            for h in range(H):
                r = PAD + h
                pad_ref[0, r:r + 1, PAD:PAD + W] = sum_ref[0:1, h * W:(h + 1) * W]
                pad_ref[1, r:r + 1, PAD:PAD + W] = max_ref[0:1, h * W:(h + 1) * W]

            # 7x7 cross-correlation: hoist the dj (lane) shift out of the di
            # (sublane) loop; di offsets are cheap sublane-offset VMEM loads.
            # NOTE: for very large H*W, strip-mine acc into 8/16-row strips to
            # stay within the vreg file (not needed at these sizes).
            acc = jnp.zeros((H, W), jnp.float32)
            for dj in range(K):
                col_ref[...] = pad_ref[:, :, dj:dj + W]   # 2 lane shifts per dj
                for di in range(K):
                    a = col_ref[0, pl.ds(di, H), :]       # (H, W)
                    m = col_ref[1, pl.ds(di, H), :]       # (H, W)
                    w_a = w_ref[0 * K * K + di * K + dj]  # scalars from SMEM
                    w_m = w_ref[1 * K * K + di * K + dj]
                    acc = acc + w_a * a + w_m * m         # fused per-tap update

            o_ref[0, 0] = jax.nn.sigmoid(acc)

    return kernel


def spatial_attention(x, conv_w):
    """x: (B, C, H, W) float32; conv_w: (1, 2, K, K) float32 (no bias)."""
    B, C, H, W = x.shape
    L = H * W
    Hp, Wp = H + 2 * PAD, W + 2 * PAD

    cb = _pick_cb(C, L)
    n_cb = C // cb

    x_flat = x.reshape(B, C, L).astype(jnp.float32)   # free: NCHW is contiguous
    w_flat = conv_w.reshape(-1).astype(jnp.float32)   # (2*K*K,), [in, kh, kw]

    kernel = _make_kernel(C, H, W, n_cb)

    return pl.pallas_call(
        kernel,
        out_shape=jax.ShapeDtypeStruct((B, 1, H, W), jnp.float32),
        grid=(B, n_cb),
        in_specs=[
            pl.BlockSpec(memory_space=pltpu.MemorySpace.SMEM),     # conv weights
            pl.BlockSpec((1, cb, L), lambda b, c: (b, c, 0)),      # x channel blk
        ],
        out_specs=pl.BlockSpec((1, 1, H, W), lambda b, c: (b, 0, 0, 0)),
        scratch_shapes=[
            pltpu.VMEM((1, L), jnp.float32),        # running channel sum
            pltpu.VMEM((1, L), jnp.float32),        # running channel max
            pltpu.VMEM((2, Hp, Wp), jnp.float32),   # zero-padded avg / max maps
            pltpu.VMEM((2, Hp, W), jnp.float32),    # lane-shifted columns (per dj)
        ],
        compiler_params=pltpu.CompilerParams(
            dimension_semantics=("parallel", "arbitrary")),
    )(w_flat, x_flat)


def spatial_attention_ref(x, conv_w):
    """Pure-JAX reference mirroring the PyTorch forward."""
    avg = jnp.mean(x, axis=1, keepdims=True)
    mx = jnp.max(x, axis=1, keepdims=True)
    feats = jnp.concatenate([avg, mx], axis=1)                 # (B, 2, H, W)
    out = jax.lax.conv_general_dilated(
        feats, conv_w, window_strides=(1, 1),
        padding=[(PAD, PAD), (PAD, PAD)],
        dimension_numbers=("NCHW", "OIHW", "NCHW"))
    return jax.nn.sigmoid(out)


if __name__ == "__main__":
    key = jax.random.PRNGKey(0)
    k_x, k_w = jax.random.split(key)

    B, C, H, W = 2, 4, 16, 16
    x = jax.random.normal(k_x, (B, C, H, W), dtype=jnp.float32)
    # Deterministic synthetic weight (shape of nn.Conv2d(2, 1, 7, bias=False)).
    conv_w = 0.1 * jax.random.normal(k_w, (1, 2, K, K), dtype=jnp.float32)

    out = spatial_attention(x, conv_w)
    out = jax.block_until_ready(out)

    ref = spatial_attention_ref(x, conv_w)
    assert out.shape == (B, 1, H, W)
    assert jnp.allclose(out, ref, atol=1e-5, rtol=1e-5), "mismatch vs reference"

    print("KERNEL_OK")
</pallas_src>

<mosaic_0001>
module attributes {stable_mosaic.version = 11 : i64} {
  func.func @kernel(%arg0: i32, %arg1: i32, %arg2: memref<98xf32, #tpu.memory_space<smem>>, %arg3: memref<1x4x256xf32, #tpu.memory_space<vmem>>, %arg4: memref<1x1x16x16xf32, #tpu.memory_space<vmem>>, %arg5: memref<1x256xf32, #tpu.memory_space<vmem>>, %arg6: memref<1x256xf32, #tpu.memory_space<vmem>>, %arg7: memref<2x22x22xf32, #tpu.memory_space<vmem>>, %arg8: memref<2x22x16xf32, #tpu.memory_space<vmem>>) attributes {dimension_semantics = [#tpu.dimension_semantics<parallel>, #tpu.dimension_semantics<arbitrary>], iteration_bounds = array<i64: 2, 1>, scalar_prefetch = 0 : i64, scratch_operands = 4 : i64, tpu.core_type = #tpu.core_type<tc>, window_params = [{transform_indices = @transform_0, window_bounds = array<i64: 98>}, {transform_indices = @transform_1, window_bounds = array<i64: 1, 4, 256>}, {transform_indices = @transform_2, window_bounds = array<i64: 1, 1, 16, 16>}]} {
    %c0 = arith.constant 0 : index
    %c0_0 = arith.constant 0 : index
    %c0_1 = arith.constant 0 : index
    %0 = vector.load %arg3[%c0, %c0_0, %c0_1] : memref<1x4x256xf32, #tpu.memory_space<vmem>>, vector<1x4x256xf32>
    %1 = vector.shape_cast %0 : vector<1x4x256xf32> to vector<4x256xf32>
    %cst = arith.constant dense<0.000000e+00> : vector<256xf32>
    %2 = vector.multi_reduction <add>, %1, %cst [0] : vector<4x256xf32> to vector<256xf32>
    %3 = vector.shape_cast %2 : vector<256xf32> to vector<1x256xf32>
    %cst_2 = arith.constant dense<0xFF800000> : vector<256xf32>
    %4 = vector.multi_reduction <maximumf>, %1, %cst_2 [0] : vector<4x256xf32> to vector<256xf32>
    %5 = vector.shape_cast %4 : vector<256xf32> to vector<1x256xf32>
    %c0_i32 = arith.constant 0 : i32
    %6 = arith.cmpi eq, %arg1, %c0_i32 : i32
    %7 = arith.extui %6 : i1 to i32
    %c0_i32_3 = arith.constant 0 : i32
    %8 = arith.cmpi ne, %7, %c0_i32_3 : i32
    scf.if %8 {
      %cst_14 = arith.constant 0.000000e+00 : f32
      %18 = vector.broadcast %cst_14 : f32 to vector<1x256xf32>
      %c0_15 = arith.constant 0 : index
      %c0_16 = arith.constant 0 : index
      %19 = vector.load %arg5[%c0_15, %c0_16] : memref<1x256xf32, #tpu.memory_space<vmem>>, vector<1x256xf32>
      tpu.vector_store %arg5[%c0_15, %c0_16], %18 {strides = array<i32>} : memref<1x256xf32, #tpu.memory_space<vmem>>, vector<1x256xf32>,
      %cst_17 = arith.constant 0xFF800000 : f32
      %20 = vector.broadcast %cst_17 : f32 to vector<1x256xf32>
      %c0_18 = arith.constant 0 : index
      %c0_19 = arith.constant 0 : index
      %21 = vector.load %arg6[%c0_18, %c0_19] : memref<1x256xf32, #tpu.memory_space<vmem>>, vector<1x256xf32>
      tpu.vector_store %arg6[%c0_18, %c0_19], %20 {strides = array<i32>} : memref<1x256xf32, #tpu.memory_space<vmem>>, vector<1x256xf32>,
    } else {
    }
    %c0_4 = arith.constant 0 : index
    %c0_5 = arith.constant 0 : index
    %9 = vector.load %arg5[%c0_4, %c0_5] : memref<1x256xf32, #tpu.memory_space<vmem>>, vector<1x256xf32>
    %10 = arith.addf %9, %3 : vector<1x256xf32>
    %c0_6 = arith.constant 0 : index
    %c0_7 = arith.constant 0 : index
    %11 = vector.load %arg5[%c0_6, %c0_7] : memref<1x256xf32, #tpu.memory_space<vmem>>, vector<1x256xf32>
    tpu.vector_store %arg5[%c0_6, %c0_7], %10 {strides = array<i32>} : memref<1x256xf32, #tpu.memory_space<vmem>>, vector<1x256xf32>,
    %c0_8 = arith.constant 0 : index
    %c0_9 = arith.constant 0 : index
    %12 = vector.load %arg6[%c0_8, %c0_9] : memref<1x256xf32, #tpu.memory_space<vmem>>, vector<1x256xf32>
    %13 = arith.maximumf %12, %5 : vector<1x256xf32>
    %c0_10 = arith.constant 0 : index
    %c0_11 = arith.constant 0 : index
    %14 = vector.load %arg6[%c0_10, %c0_11] : memref<1x256xf32, #tpu.memory_space<vmem>>, vector<1x256xf32>
    tpu.vector_store %arg6[%c0_10, %c0_11], %13 {strides = array<i32>} : memref<1x256xf32, #tpu.memory_space<vmem>>, vector<1x256xf32>,
    %c0_i32_12 = arith.constant 0 : i32
    %15 = arith.cmpi eq, %arg1, %c0_i32_12 : i32
    %16 = arith.extui %15 : i1 to i32
    %c0_i32_13 = arith.constant 0 : i32
    %17 = arith.cmpi ne, %16, %c0_i32_13 : i32
    scf.if %17 {
      %c0_14 = arith.constant 0 : index
      %c0_15 = arith.constant 0 : index
      %18 = vector.load %arg5[%c0_14, %c0_15] : memref<1x256xf32, #tpu.memory_space<vmem>>, vector<1x256xf32>
      %cst_16 = arith.constant 2.500000e-01 : f32
      %19 = vector.broadcast %cst_16 : f32 to vector<1x256xf32>
      %20 = arith.mulf %18, %19 : vector<1x256xf32>
      %c0_17 = arith.constant 0 : index
      %c0_18 = arith.constant 0 : index
      %21 = vector.load %arg5[%c0_17, %c0_18] : memref<1x256xf32, #tpu.memory_space<vmem>>, vector<1x256xf32>
      tpu.vector_store %arg5[%c0_17, %c0_18], %20 {strides = array<i32>} : memref<1x256xf32, #tpu.memory_space<vmem>>, vector<1x256xf32>,
      %cst_19 = arith.constant 0.000000e+00 : f32
      %22 = vector.broadcast %cst_19 : f32 to vector<2x22x22xf32>
      %c0_20 = arith.constant 0 : index
      %c0_21 = arith.constant 0 : index
      %c0_22 = arith.constant 0 : index
      %23 = vector.load %arg7[%c0_20, %c0_21, %c0_22] : memref<2x22x22xf32, #tpu.memory_space<vmem>>, vector<2x22x22xf32>
      tpu.vector_store %arg7[%c0_20, %c0_21, %c0_22], %22 {strides = array<i32>} : memref<2x22x22xf32, #tpu.memory_space<vmem>>, vector<2x22x22xf32>,
      %c0_23 = arith.constant 0 : index
      %c0_24 = arith.constant 0 : index
      %24 = vector.load %arg5[%c0_23, %c0_24] : memref<1x256xf32, #tpu.memory_space<vmem>>, vector<1x16xf32>
      %c0_25 = arith.constant 0 : index
      %c3 = arith.constant 3 : index
      %c3_26 = arith.constant 3 : index
      %25 = vector.load %arg7[%c0_25, %c3, %c3_26] : memref<2x22x22xf32, #tpu.memory_space<vmem>>, vector<1x1x16xf32>
      %26 = vector.shape_cast %25 : vector<1x1x16xf32> to vector<1x16xf32>
      %27 = vector.shape_cast %24 : vector<1x16xf32> to vector<1x1x16xf32>
      tpu.vector_store %arg7[%c0_25, %c3, %c3_26], %27 {strides = array<i32>} : memref<2x22x22xf32, #tpu.memory_space<vmem>>, vector<1x1x16xf32>,
      %c0_27 = arith.constant 0 : index
      %c0_28 = arith.constant 0 : index
      %28 = vector.load %arg6[%c0_27, %c0_28] : memref<1x256xf32, #tpu.memory_space<vmem>>, vector<1x16xf32>
      %c1 = arith.constant 1 : index
      %c3_29 = arith.constant 3 : index
      %c3_30 = arith.constant 3 : index
      %29 = vector.load %arg7[%c1, %c3_29, %c3_30] : memref<2x22x22xf32, #tpu.memory_space<vmem>>, vector<1x1x16xf32>
      %30 = vector.shape_cast %29 : vector<1x1x16xf32> to vector<1x16xf32>
      %31 = vector.shape_cast %28 : vector<1x16xf32> to vector<1x1x16xf32>
      tpu.vector_store %arg7[%c1, %c3_29, %c3_30], %31 {strides = array<i32>} : memref<2x22x22xf32, #tpu.memory_space<vmem>>, vector<1x1x16xf32>,
      %c0_31 = arith.constant 0 : index
      %c16 = arith.constant 16 : index
      %32 = vector.load %arg5[%c0_31, %c16] : memref<1x256xf32, #tpu.memory_space<vmem>>, vector<1x16xf32>
      %c0_32 = arith.constant 0 : index
      %c4 = arith.constant 4 : index
      %c3_33 = arith.constant 3 : index
      %33 = vector.load %arg7[%c0_32, %c4, %c3_33] : memref<2x22x22xf32, #tpu.memory_space<vmem>>, vector<1x1x16xf32>
      %34 = vector.shape_cast %33 : vector<1x1x16xf32> to vector<1x16xf32>
      %35 = vector.shape_cast %32 : vector<1x16xf32> to vector<1x1x16xf32>
      tpu.vector_store %arg7[%c0_32, %c4, %c3_33], %35 {strides = array<i32>} : memref<2x22x22xf32, #tpu.memory_space<vmem>>, vector<1x1x16xf32>,
      %c0_34 = arith.constant 0 : index
      %c16_35 = arith.constant 16 : index
      %36 = vector.load %arg6[%c0_34, %c16_35] : memref<1x256xf32, #tpu.memory_space<vmem>>, vector<1x16xf32>
      %c1_36 = arith.constant 1 : index
      %c4_37 = arith.constant 4 : index
      %c3_38 = arith.constant 3 : index
      %37 = vector.load %arg7[%c1_36, %c4_37, %c3_38] : memref<2x22x22xf32, #tpu.memory_space<vmem>>, vector<1x1x16xf32>
      %38 = vector.shape_cast %37 : vector<1x1x16xf32> to vector<1x16xf32>
      %39 = vector.shape_cast %36 : vector<1x16xf32> to vector<1x1x16xf32>
      tpu.vector_store %arg7[%c1_36, %c4_37, %c3_38], %39 {strides = array<i32>} : memref<2x22x22xf32, #tpu.memory_space<vmem>>, vector<1x1x16xf32>,
      %c0_39 = arith.constant 0 : index
      %c32 = arith.constant 32 : index
      %40 = vector.load %arg5[%c0_39, %c32] : memref<1x256xf32, #tpu.memory_space<vmem>>, vector<1x16xf32>
      %c0_40 = arith.constant 0 : index
      %c5 = arith.constant 5 : index
      %c3_41 = arith.constant 3 : index
      %41 = vector.load %arg7[%c0_40, %c5, %c3_41] : memref<2x22x22xf32, #tpu.memory_space<vmem>>, vector<1x1x16xf32>
      %42 = vector.shape_cast %41 : vector<1x1x16xf32> to vector<1x16xf32>
      %43 = vector.shape_cast %40 : vector<1x16xf32> to vector<1x1x16xf32>
      tpu.vector_store %arg7[%c0_40, %c5, %c3_41], %43 {strides = array<i32>} : memref<2x22x22xf32, #tpu.memory_space<vmem>>, vector<1x1x16xf32>,
      %c0_42 = arith.constant 0 : index
      %c32_43 = arith.constant 32 : index
      %44 = vector.load %arg6[%c0_42, %c32_43] : memref<1x256xf32, #tpu.memory_space<vmem>>, vector<1x16xf32>
      %c1_44 = arith.constant 1 : index
      %c5_45 = arith.constant 5 : index
      %c3_46 = arith.constant 3 : index
      %45 = vector.load %arg7[%c1_44, %c5_45, %c3_46] : memref<2x22x22xf32, #tpu.memory_space<vmem>>, vector<1x1x16xf32>
      %46 = vector.shape_cast %45 : vector<1x1x16xf32> to vector<1x16xf32>
      %47 = vector.shape_cast %44 : vector<1x16xf32> to vector<1x1x16xf32>
      tpu.vector_store %arg7[%c1_44, %c5_45, %c3_46], %47 {strides = array<i32>} : memref<2x22x22xf32, #tpu.memory_space<vmem>>, vector<1x1x16xf32>,
      %c0_47 = arith.constant 0 : index
      %c48 = arith.constant 48 : index
      %48 = vector.load %arg5[%c0_47, %c48] : memref<1x256xf32, #tpu.memory_space<vmem>>, vector<1x16xf32>
      %c0_48 = arith.constant 0 : index
      %c6 = arith.constant 6 : index
      %c3_49 = arith.constant 3 : index
      %49 = vector.load %arg7[%c0_48, %c6, %c3_49] : memref<2x22x22xf32, #tpu.memory_space<vmem>>, vector<1x1x16xf32>
      %50 = vector.shape_cast %49 : vector<1x1x16xf32> to vector<1x16xf32>
      %51 = vector.shape_cast %48 : vector<1x16xf32> to vector<1x1x16xf32>
      tpu.vector_store %arg7[%c0_48, %c6, %c3_49], %51 {strides = array<i32>} : memref<2x22x22xf32, #tpu.memory_space<vmem>>, vector<1x1x16xf32>,
      %c0_50 = arith.constant 0 : index
      %c48_51 = arith.constant 48 : index
      %52 = vector.load %arg6[%c0_50, %c48_51] : memref<1x256xf32, #tpu.memory_space<vmem>>, vector<1x16xf32>
      %c1_52 = arith.constant 1 : index
      %c6_53 = arith.constant 6 : index
      %c3_54 = arith.constant 3 : index
      %53 = vector.load %arg7[%c1_52, %c6_53, %c3_54] : memref<2x22x22xf32, #tpu.memory_space<vmem>>, vector<1x1x16xf32>
      %54 = vector.shape_cast %53 : vector<1x1x16xf32> to vector<1x16xf32>
      %55 = vector.shape_cast %52 : vector<1x16xf32> to vector<1x1x16xf32>
      tpu.vector_store %arg7[%c1_52, %c6_53, %c3_54], %55 {strides = array<i32>} : memref<2x22x22xf32, #tpu.memory_space<vmem>>, vector<1x1x16xf32>,
      %c0_55 = arith.constant 0 : index
      %c64 = arith.constant 64 : index
      %56 = vector.load %arg5[%c0_55, %c64] : memref<1x256xf32, #tpu.memory_space<vmem>>, vector<1x16xf32>
      %c0_56 = arith.constant 0 : index
      %c7 = arith.constant 7 : index
      %c3_57 = arith.constant 3 : index
      %57 = vector.load %arg7[%c0_56, %c7, %c3_57] : memref<2x22x22xf32, #tpu.memory_space<vmem>>, vector<1x1x16xf32>
      %58 = vector.shape_cast %57 : vector<1x1x16xf32> to vector<1x16xf32>
      %59 = vector.shape_cast %56 : vector<1x16xf32> to vector<1x1x16xf32>
      tpu.vector_store %arg7[%c0_56, %c7, %c3_57], %59 {strides = array<i32>} : memref<2x22x22xf32, #tpu.memory_space<vmem>>, vector<1x1x16xf32>,
      %c0_58 = arith.constant 0 : index
      %c64_59 = arith.constant 64 : index
      %60 = vector.load %arg6[%c0_58, %c64_59] : memref<1x256xf32, #tpu.memory_space<vmem>>, vector<1x16xf32>
      %c1_60 = arith.constant 1 : index
      %c7_61 = arith.constant 7 : index
      %c3_62 = arith.constant 3 : index
      %61 = vector.load %arg7[%c1_60, %c7_61, %c3_62] : memref<2x22x22xf32, #tpu.memory_space<vmem>>, vector<1x1x16xf32>
      %62 = vector.shape_cast %61 : vector<1x1x16xf32> to vector<1x16xf32>
      %63 = vector.shape_cast %60 : vector<1x16xf32> to vector<1x1x16xf32>
      tpu.vector_store %arg7[%c1_60, %c7_61, %c3_62], %63 {strides = array<i32>} : memref<2x22x22xf32, #tpu.memory_space<vmem>>, vector<1x1x16xf32>,
      %c0_63 = arith.constant 0 : index
      %c80 = arith.constant 80 : index
      %64 = vector.load %arg5[%c0_63, %c80] : memref<1x256xf32, #tpu.memory_space<vmem>>, vector<1x16xf32>
      %c0_64 = arith.constant 0 : index
      %c8 = arith.constant 8 : index
      %c3_65 = arith.constant 3 : index
      %65 = vector.load %arg7[%c0_64, %c8, %c3_65] : memref<2x22x22xf32, #tpu.memory_space<vmem>>, vector<1x1x16xf32>
      %66 = vector.shape_cast %65 : vector<1x1x16xf32> to vector<1x16xf32>
      %67 = vector.shape_cast %64 : vector<1x16xf32> to vector<1x1x16xf32>
      tpu.vector_store %arg7[%c0_64, %c8, %c3_65], %67 {strides = array<i32>} : memref<2x22x22xf32, #tpu.memory_space<vmem>>, vector<1x1x16xf32>,
      %c0_66 = arith.constant 0 : index
      %c80_67 = arith.constant 80 : index
      %68 = vector.load %arg6[%c0_66, %c80_67] : memref<1x256xf32, #tpu.memory_space<vmem>>, vector<1x16xf32>
      %c1_68 = arith.constant 1 : index
      %c8_69 = arith.constant 8 : index
      %c3_70 = arith.constant 3 : index
      %69 = vector.load %arg7[%c1_68, %c8_69, %c3_70] : memref<2x22x22xf32, #tpu.memory_space<vmem>>, vector<1x1x16xf32>
      %70 = vector.shape_cast %69 : vector<1x1x16xf32> to vector<1x16xf32>
      %71 = vector.shape_cast %68 : vector<1x16xf32> to vector<1x1x16xf32>
      tpu.vector_store %arg7[%c1_68, %c8_69, %c3_70], %71 {strides = array<i32>} : memref<2x22x22xf32, #tpu.memory_space<vmem>>, vector<1x1x16xf32>,
      %c0_71 = arith.constant 0 : index
      %c96 = arith.constant 96 : index
      %72 = vector.load %arg5[%c0_71, %c96] : memref<1x256xf32, #tpu.memory_space<vmem>>, vector<1x16xf32>
      %c0_72 = arith.constant 0 : index
      %c9 = arith.constant 9 : index
      %c3_73 = arith.constant 3 : index
      %73 = vector.load %arg7[%c0_72, %c9, %c3_73] : memref<2x22x22xf32, #tpu.memory_space<vmem>>, vector<1x1x16xf32>
      %74 = vector.shape_cast %73 : vector<1x1x16xf32> to vector<1x16xf32>
      %75 = vector.shape_cast %72 : vector<1x16xf32> to vector<1x1x16xf32>
      tpu.vector_store %arg7[%c0_72, %c9, %c3_73], %75 {strides = array<i32>} : memref<2x22x22xf32, #tpu.memory_space<vmem>>, vector<1x1x16xf32>,
      %c0_74 = arith.constant 0 : index
      %c96_75 = arith.constant 96 : index
      %76 = vector.load %arg6[%c0_74, %c96_75] : memref<1x256xf32, #tpu.memory_space<vmem>>, vector<1x16xf32>
      %c1_76 = arith.constant 1 : index
      %c9_77 = arith.constant 9 : index
      %c3_78 = arith.constant 3 : index
      %77 = vector.load %arg7[%c1_76, %c9_77, %c3_78] : memref<2x22x22xf32, #tpu.memory_space<vmem>>, vector<1x1x16xf32>
      %78 = vector.shape_cast %77 : vector<1x1x16xf32> to vector<1x16xf32>
      %79 = vector.shape_cast %76 : vector<1x16xf32> to vector<1x1x16xf32>
      tpu.vector_store %arg7[%c1_76, %c9_77, %c3_78], %79 {strides = array<i32>} : memref<2x22x22xf32, #tpu.memory_space<vmem>>, vector<1x1x16xf32>,
      %c0_79 = arith.constant 0 : index
      %c112 = arith.constant 112 : index
      %80 = vector.load %arg5[%c0_79, %c112] : memref<1x256xf32, #tpu.memory_space<vmem>>, vector<1x16xf32>
      %c0_80 = arith.constant 0 : index
      %c10 = arith.constant 10 : index
      %c3_81 = arith.constant 3 : index
      %81 = vector.load %arg7[%c0_80, %c10, %c3_81] : memref<2x22x22xf32, #tpu.memory_space<vmem>>, vector<1x1x16xf32>
      %82 = vector.shape_cast %81 : vector<1x1x16xf32> to vector<1x16xf32>
      %83 = vector.shape_cast %80 : vector<1x16xf32> to vector<1x1x16xf32>
      tpu.vector_store %arg7[%c0_80, %c10, %c3_81], %83 {strides = array<i32>} : memref<2x22x22xf32, #tpu.memory_space<vmem>>, vector<1x1x16xf32>,
      %c0_82 = arith.constant 0 : index
      %c112_83 = arith.constant 112 : index
      %84 = vector.load %arg6[%c0_82, %c112_83] : memref<1x256xf32, #tpu.memory_space<vmem>>, vector<1x16xf32>
      %c1_84 = arith.constant 1 : index
      %c10_85 = arith.constant 10 : index
      %c3_86 = arith.constant 3 : index
      %85 = vector.load %arg7[%c1_84, %c10_85, %c3_86] : memref<2x22x22xf32, #tpu.memory_space<vmem>>, vector<1x1x16xf32>
      %86 = vector.shape_cast %85 : vector<1x1x16xf32> to vector<1x16xf32>
      %87 = vector.shape_cast %84 : vector<1x16xf32> to vector<1x1x16xf32>
      tpu.vector_store %arg7[%c1_84, %c10_85, %c3_86], %87 {strides = array<i32>} : memref<2x22x22xf32, #tpu.memory_space<vmem>>, vector<1x1x16xf32>,
      %c0_87 = arith.constant 0 : index
      %c128 = arith.constant 128 : index
      %88 = vector.load %arg5[%c0_87, %c128] : memref<1x256xf32, #tpu.memory_space<vmem>>, vector<1x16xf32>
      %c0_88 = arith.constant 0 : index
      %c11 = arith.constant 11 : index
      %c3_89 = arith.constant 3 : index
      %89 = vector.load %arg7[%c0_88, %c11, %c3_89] : memref<2x22x22xf32, #tpu.memory_space<vmem>>, vector<1x1x16xf32>
      %90 = vector.shape_cast %89 : vector<1x1x16xf32> to vector<1x16xf32>
      %91 = vector.shape_cast %88 : vector<1x16xf32> to vector<1x1x16xf32>
      tpu.vector_store %arg7[%c0_88, %c11, %c3_89], %91 {strides = array<i32>} : memref<2x22x22xf32, #tpu.memory_space<vmem>>, vector<1x1x16xf32>,
      %c0_90 = arith.constant 0 : index
      %c128_91 = arith.constant 128 : index
      %92 = vector.load %arg6[%c0_90, %c128_91] : memref<1x256xf32, #tpu.memory_space<vmem>>, vector<1x16xf32>
      %c1_92 = arith.constant 1 : index
      %c11_93 = arith.constant 11 : index
      %c3_94 = arith.constant 3 : index
      %93 = vector.load %arg7[%c1_92, %c11_93, %c3_94] : memref<2x22x22xf32, #tpu.memory_space<vmem>>, vector<1x1x16xf32>
      %94 = vector.shape_cast %93 : vector<1x1x16xf32> to vector<1x16xf32>
      %95 = vector.shape_cast %92 : vector<1x16xf32> to vector<1x1x16xf32>
      tpu.vector_store %arg7[%c1_92, %c11_93, %c3_94], %95 {strides = array<i32>} : memref<2x22x22xf32, #tpu.memory_space<vmem>>, vector<1x1x16xf32>,
      %c0_95 = arith.constant 0 : index
      %c144 = arith.constant 144 : index
      %96 = vector.load %arg5[%c0_95, %c144] : memref<1x256xf32, #tpu.memory_space<vmem>>, vector<1x16xf32>
      %c0_96 = arith.constant 0 : index
      %c12 = arith.constant 12 : index
      %c3_97 = arith.constant 3 : index
      %97 = vector.load %arg7[%c0_96, %c12, %c3_97] : memref<2x22x22xf32, #tpu.memory_space<vmem>>, vector<1x1x16xf32>
      %98 = vector.shape_cast %97 : vector<1x1x16xf32> to vector<1x16xf32>
      %99 = vector.shape_cast %96 : vector<1x16xf32> to vector<1x1x16xf32>
      tpu.vector_store %arg7[%c0_96, %c12, %c3_97], %99 {strides = array<i32>} : memref<2x22x22xf32, #tpu.memory_space<vmem>>, vector<1x1x16xf32>,
      %c0_98 = arith.constant 0 : index
      %c144_99 = arith.constant 144 : index
      %100 = vector.load %arg6[%c0_98, %c144_99] : memref<1x256xf32, #tpu.memory_space<vmem>>, vector<1x16xf32>
      %c1_100 = arith.constant 1 : index
      %c12_101 = arith.constant 12 : index
      %c3_102 = arith.constant 3 : index
      %101 = vector.load %arg7[%c1_100, %c12_101, %c3_102] : memref<2x22x22xf32, #tpu.memory_space<vmem>>, vector<1x1x16xf32>
      %102 = vector.shape_cast %101 : vector<1x1x16xf32> to vector<1x16xf32>
      %103 = vector.shape_cast %100 : vector<1x16xf32> to vector<1x1x16xf32>
      tpu.vector_store %arg7[%c1_100, %c12_101, %c3_102], %103 {strides = array<i32>} : memref<2x22x22xf32, #tpu.memory_space<vmem>>, vector<1x1x16xf32>,
      %c0_103 = arith.constant 0 : index
      %c160 = arith.constant 160 : index
      %104 = vector.load %arg5[%c0_103, %c160] : memref<1x256xf32, #tpu.memory_space<vmem>>, vector<1x16xf32>
      %c0_104 = arith.constant 0 : index
      %c13 = arith.constant 13 : index
      %c3_105 = arith.constant 3 : index
      %105 = vector.load %arg7[%c0_104, %c13, %c3_105] : memref<2x22x22xf32, #tpu.memory_space<vmem>>, vector<1x1x16xf32>
      %106 = vector.shape_cast %105 : vector<1x1x16xf32> to vector<1x16xf32>
      %107 = vector.shape_cast %104 : vector<1x16xf32> to vector<1x1x16xf32>
      tpu.vector_store %arg7[%c0_104, %c13, %c3_105], %107 {strides = array<i32>} : memref<2x22x22xf32, #tpu.memory_space<vmem>>, vector<1x1x16xf32>,
      %c0_106 = arith.constant 0 : index
      %c160_107 = arith.constant 160 : index
      %108 = vector.load %arg6[%c0_106, %c160_107] : memref<1x256xf32, #tpu.memory_space<vmem>>, vector<1x16xf32>
      %c1_108 = arith.constant 1 : index
      %c13_109 = arith.constant 13 : index
      %c3_110 = arith.constant 3 : index
      %109 = vector.load %arg7[%c1_108, %c13_109, %c3_110] : memref<2x22x22xf32, #tpu.memory_space<vmem>>, vector<1x1x16xf32>
      %110 = vector.shape_cast %109 : vector<1x1x16xf32> to vector<1x16xf32>
      %111 = vector.shape_cast %108 : vector<1x16xf32> to vector<1x1x16xf32>
      tpu.vector_store %arg7[%c1_108, %c13_109, %c3_110], %111 {strides = array<i32>} : memref<2x22x22xf32, #tpu.memory_space<vmem>>, vector<1x1x16xf32>,
      %c0_111 = arith.constant 0 : index
      %c176 = arith.constant 176 : index
      %112 = vector.load %arg5[%c0_111, %c176] : memref<1x256xf32, #tpu.memory_space<vmem>>, vector<1x16xf32>
      %c0_112 = arith.constant 0 : index
      %c14 = arith.constant 14 : index
      %c3_113 = arith.constant 3 : index
      %113 = vector.load %arg7[%c0_112, %c14, %c3_113] : memref<2x22x22xf32, #tpu.memory_space<vmem>>, vector<1x1x16xf32>
      %114 = vector.shape_cast %113 : vector<1x1x16xf32> to vector<1x16xf32>
      %115 = vector.shape_cast %112 : vector<1x16xf32> to vector<1x1x16xf32>
      tpu.vector_store %arg7[%c0_112, %c14, %c3_113], %115 {strides = array<i32>} : memref<2x22x22xf32, #tpu.memory_space<vmem>>, vector<1x1x16xf32>,
      %c0_114 = arith.constant 0 : index
      %c176_115 = arith.constant 176 : index
      %116 = vector.load %arg6[%c0_114, %c176_115] : memref<1x256xf32, #tpu.memory_space<vmem>>, vector<1x16xf32>
      %c1_116 = arith.constant 1 : index
      %c14_117 = arith.constant 14 : index
      %c3_118 = arith.constant 3 : index
      %117 = vector.load %arg7[%c1_116, %c14_117, %c3_118] : memref<2x22x22xf32, #tpu.memory_space<vmem>>, vector<1x1x16xf32>
      %118 = vector.shape_cast %117 : vector<1x1x16xf32> to vector<1x16xf32>
      %119 = vector.shape_cast %116 : vector<1x16xf32> to vector<1x1x16xf32>
      tpu.vector_store %arg7[%c1_116, %c14_117, %c3_118], %119 {strides = array<i32>} : memref<2x22x22xf32, #tpu.memory_space<vmem>>, vector<1x1x16xf32>,
      %c0_119 = arith.constant 0 : index
      %c192 = arith.constant 192 : index
      %120 = vector.load %arg5[%c0_119, %c192] : memref<1x256xf32, #tpu.memory_space<vmem>>, vector<1x16xf32>
      %c0_120 = arith.constant 0 : index
      %c15 = arith.constant 15 : index
      %c3_121 = arith.constant 3 : index
      %121 = vector.load %arg7[%c0_120, %c15, %c3_121] : memref<2x22x22xf32, #tpu.memory_space<vmem>>, vector<1x1x16xf32>
      %122 = vector.shape_cast %121 : vector<1x1x16xf32> to vector<1x16xf32>
      %123 = vector.shape_cast %120 : vector<1x16xf32> to vector<1x1x16xf32>
      tpu.vector_store %arg7[%c0_120, %c15, %c3_121], %123 {strides = array<i32>} : memref<2x22x22xf32, #tpu.memory_space<vmem>>, vector<1x1x16xf32>,
      %c0_122 = arith.constant 0 : index
      %c192_123 = arith.constant 192 : index
      %124 = vector.load %arg6[%c0_122, %c192_123] : memref<1x256xf32, #tpu.memory_space<vmem>>, vector<1x16xf32>
      %c1_124 = arith.constant 1 : index
      %c15_125 = arith.constant 15 : index
      %c3_126 = arith.constant 3 : index
      %125 = vector.load %arg7[%c1_124, %c15_125, %c3_126] : memref<2x22x22xf32, #tpu.memory_space<vmem>>, vector<1x1x16xf32>
      %126 = vector.shape_cast %125 : vector<1x1x16xf32> to vector<1x16xf32>
      %127 = vector.shape_cast %124 : vector<1x16xf32> to vector<1x1x16xf32>
      tpu.vector_store %arg7[%c1_124, %c15_125, %c3_126], %127 {strides = array<i32>} : memref<2x22x22xf32, #tpu.memory_space<vmem>>, vector<1x1x16xf32>,
      %c0_127 = arith.constant 0 : index
      %c208 = arith.constant 208 : index
      %128 = vector.load %arg5[%c0_127, %c208] : memref<1x256xf32, #tpu.memory_space<vmem>>, vector<1x16xf32>
      %c0_128 = arith.constant 0 : index
      %c16_129 = arith.constant 16 : index
      %c3_130 = arith.constant 3 : index
      %129 = vector.load %arg7[%c0_128, %c16_129, %c3_130] : memref<2x22x22xf32, #tpu.memory_space<vmem>>, vector<1x1x16xf32>
      %130 = vector.shape_cast %129 : vector<1x1x16xf32> to vector<1x16xf32>
      %131 = vector.shape_cast %128 : vector<1x16xf32> to vector<1x1x16xf32>
      tpu.vector_store %arg7[%c0_128, %c16_129, %c3_130], %131 {strides = array<i32>} : memref<2x22x22xf32, #tpu.memory_space<vmem>>, vector<1x1x16xf32>,
      %c0_131 = arith.constant 0 : index
      %c208_132 = arith.constant 208 : index
      %132 = vector.load %arg6[%c0_131, %c208_132] : memref<1x256xf32, #tpu.memory_space<vmem>>, vector<1x16xf32>
      %c1_133 = arith.constant 1 : index
      %c16_134 = arith.constant 16 : index
      %c3_135 = arith.constant 3 : index
      %133 = vector.load %arg7[%c1_133, %c16_134, %c3_135] : memref<2x22x22xf32, #tpu.memory_space<vmem>>, vector<1x1x16xf32>
      %134 = vector.shape_cast %133 : vector<1x1x16xf32> to vector<1x16xf32>
      %135 = vector.shape_cast %132 : vector<1x16xf32> to vector<1x1x16xf32>
      tpu.vector_store %arg7[%c1_133, %c16_134, %c3_135], %135 {strides = array<i32>} : memref<2x22x22xf32, #tpu.memory_space<vmem>>, vector<1x1x16xf32>,
      %c0_136 = arith.constant 0 : index
      %c224 = arith.constant 224 : index
      %136 = vector.load %arg5[%c0_136, %c224] : memref<1x256xf32, #tpu.memory_space<vmem>>, vector<1x16xf32>
      %c0_137 = arith.constant 0 : index
      %c17 = arith.constant 17 : index
      %c3_138 = arith.constant 3 : index
      %137 = vector.load %arg7[%c0_137, %c17, %c3_138] : memref<2x22x22xf32, #tpu.memory_space<vmem>>, vector<1x1x16xf32>
      %138 = vector.shape_cast %137 : vector<1x1x16xf32> to vector<1x16xf32>
      %139 = vector.shape_cast %136 : vector<1x16xf32> to vector<1x1x16xf32>
      tpu.vector_store %arg7[%c0_137, %c17, %c3_138], %139 {strides = array<i32>} : memref<2x22x22xf32, #tpu.memory_space<vmem>>, vector<1x1x16xf32>,
      %c0_139 = arith.constant 0 : index
      %c224_140 = arith.constant 224 : index
      %140 = vector.load %arg6[%c0_139, %c224_140] : memref<1x256xf32, #tpu.memory_space<vmem>>, vector<1x16xf32>
      %c1_141 = arith.constant 1 : index
      %c17_142 = arith.constant 17 : index
      %c3_143 = arith.constant 3 : index
      %141 = vector.load %arg7[%c1_141, %c17_142, %c3_143] : memref<2x22x22xf32, #tpu.memory_space<vmem>>, vector<1x1x16xf32>
      %142 = vector.shape_cast %141 : vector<1x1x16xf32> to vector<1x16xf32>
      %143 = vector.shape_cast %140 : vector<1x16xf32> to vector<1x1x16xf32>
      tpu.vector_store %arg7[%c1_141, %c17_142, %c3_143], %143 {strides = array<i32>} : memref<2x22x22xf32, #tpu.memory_space<vmem>>, vector<1x1x16xf32>,
      %c0_144 = arith.constant 0 : index
      %c240 = arith.constant 240 : index
      %144 = vector.load %arg5[%c0_144, %c240] : memref<1x256xf32, #tpu.memory_space<vmem>>, vector<1x16xf32>
      %c0_145 = arith.constant 0 : index
      %c18 = arith.constant 18 : index
      %c3_146 = arith.constant 3 : index
      %145 = vector.load %arg7[%c0_145, %c18, %c3_146] : memref<2x22x22xf32, #tpu.memory_space<vmem>>, vector<1x1x16xf32>
      %146 = vector.shape_cast %145 : vector<1x1x16xf32> to vector<1x16xf32>
      %147 = vector.shape_cast %144 : vector<1x16xf32> to vector<1x1x16xf32>
      tpu.vector_store %arg7[%c0_145, %c18, %c3_146], %147 {strides = array<i32>} : memref<2x22x22xf32, #tpu.memory_space<vmem>>, vector<1x1x16xf32>,
      %c0_147 = arith.constant 0 : index
      %c240_148 = arith.constant 240 : index
      %148 = vector.load %arg6[%c0_147, %c240_148] : memref<1x256xf32, #tpu.memory_space<vmem>>, vector<1x16xf32>
      %c1_149 = arith.constant 1 : index
      %c18_150 = arith.constant 18 : index
      %c3_151 = arith.constant 3 : index
      %149 = vector.load %arg7[%c1_149, %c18_150, %c3_151] : memref<2x22x22xf32, #tpu.memory_space<vmem>>, vector<1x1x16xf32>
      %150 = vector.shape_cast %149 : vector<1x1x16xf32> to vector<1x16xf32>
      %151 = vector.shape_cast %148 : vector<1x16xf32> to vector<1x1x16xf32>
      tpu.vector_store %arg7[%c1_149, %c18_150, %c3_151], %151 {strides = array<i32>} : memref<2x22x22xf32, #tpu.memory_space<vmem>>, vector<1x1x16xf32>,
      %cst_152 = arith.constant 0.000000e+00 : f32
      %152 = vector.broadcast %cst_152 : f32 to vector<16x16xf32>
      %c0_153 = arith.constant 0 : index
      %c0_154 = arith.constant 0 : index
      %c0_155 = arith.constant 0 : index
      %153 = vector.load %arg7[%c0_153, %c0_154, %c0_155] : memref<2x22x22xf32, #tpu.memory_space<vmem>>, vector<2x22x16xf32>
      %c0_156 = arith.constant 0 : index
      %c0_157 = arith.constant 0 : index
      %c0_158 = arith.constant 0 : index
      %154 = vector.load %arg8[%c0_156, %c0_157, %c0_158] : memref<2x22x16xf32, #tpu.memory_space<vmem>>, vector<2x22x16xf32>
      tpu.vector_store %arg8[%c0_156, %c0_157, %c0_158], %153 {strides = array<i32>} : memref<2x22x16xf32, #tpu.memory_space<vmem>>, vector<2x22x16xf32>,
      %c0_159 = arith.constant 0 : index
      %c0_160 = arith.constant 0 : index
      %c0_161 = arith.constant 0 : index
      %155 = vector.load %arg8[%c0_159, %c0_160, %c0_161] : memref<2x22x16xf32, #tpu.memory_space<vmem>>, vector<1x16x16xf32>
      %156 = vector.shape_cast %155 : vector<1x16x16xf32> to vector<16x16xf32>
      %c1_162 = arith.constant 1 : index
      %c0_163 = arith.constant 0 : index
      %c0_164 = arith.constant 0 : index
      %157 = vector.load %arg8[%c1_162, %c0_163, %c0_164] : memref<2x22x16xf32, #tpu.memory_space<vmem>>, vector<1x16x16xf32>
      %158 = vector.shape_cast %157 : vector<1x16x16xf32> to vector<16x16xf32>
      %c0_165 = arith.constant 0 : index
      %159 = memref.load %arg2[%c0_165] : memref<98xf32, #tpu.memory_space<smem>>
      %c49 = arith.constant 49 : index
      %160 = memref.load %arg2[%c49] : memref<98xf32, #tpu.memory_space<smem>>
      %161 = vector.broadcast %159 : f32 to vector<16x16xf32>
      %162 = arith.mulf %161, %156 : vector<16x16xf32>
      %163 = arith.addf %152, %162 : vector<16x16xf32>
      %164 = vector.broadcast %160 : f32 to vector<16x16xf32>
      %165 = arith.mulf %164, %158 : vector<16x16xf32>
      %166 = arith.addf %163, %165 : vector<16x16xf32>
      %c0_166 = arith.constant 0 : index
      %c1_167 = arith.constant 1 : index
      %c0_168 = arith.constant 0 : index
      %167 = vector.load %arg8[%c0_166, %c1_167, %c0_168] : memref<2x22x16xf32, #tpu.memory_space<vmem>>, vector<1x16x16xf32>
      %168 = vector.shape_cast %167 : vector<1x16x16xf32> to vector<16x16xf32>
      %c1_169 = arith.constant 1 : index
      %c1_170 = arith.constant 1 : index
      %c0_171 = arith.constant 0 : index
      %169 = vector.load %arg8[%c1_169, %c1_170, %c0_171] : memref<2x22x16xf32, #tpu.memory_space<vmem>>, vector<1x16x16xf32>
      %170 = vector.shape_cast %169 : vector<1x16x16xf32> to vector<16x16xf32>
      %c7_172 = arith.constant 7 : index
      %171 = memref.load %arg2[%c7_172] : memref<98xf32, #tpu.memory_space<smem>>
      %c56 = arith.constant 56 : index
      %172 = memref.load %arg2[%c56] : memref<98xf32, #tpu.memory_space<smem>>
      %173 = vector.broadcast %171 : f32 to vector<16x16xf32>
      %174 = arith.mulf %173, %168 : vector<16x16xf32>
      %175 = arith.addf %166, %174 : vector<16x16xf32>
      %176 = vector.broadcast %172 : f32 to vector<16x16xf32>
      %177 = arith.mulf %176, %170 : vector<16x16xf32>
      %178 = arith.addf %175, %177 : vector<16x16xf32>
      %c0_173 = arith.constant 0 : index
      %c2 = arith.constant 2 : index
      %c0_174 = arith.constant 0 : index
      %179 = vector.load %arg8[%c0_173, %c2, %c0_174] : memref<2x22x16xf32, #tpu.memory_space<vmem>>, vector<1x16x16xf32>
      %180 = vector.shape_cast %179 : vector<1x16x16xf32> to vector<16x16xf32>
      %c1_175 = arith.constant 1 : index
      %c2_176 = arith.constant 2 : index
      %c0_177 = arith.constant 0 : index
      %181 = vector.load %arg8[%c1_175, %c2_176, %c0_177] : memref<2x22x16xf32, #tpu.memory_space<vmem>>, vector<1x16x16xf32>
      %182 = vector.shape_cast %181 : vector<1x16x16xf32> to vector<16x16xf32>
      %c14_178 = arith.constant 14 : index
      %183 = memref.load %arg2[%c14_178] : memref<98xf32, #tpu.memory_space<smem>>
      %c63 = arith.constant 63 : index
      %184 = memref.load %arg2[%c63] : memref<98xf32, #tpu.memory_space<smem>>
      %185 = vector.broadcast %183 : f32 to vector<16x16xf32>
      %186 = arith.mulf %185, %180 : vector<16x16xf32>
      %187 = arith.addf %178, %186 : vector<16x16xf32>
      %188 = vector.broadcast %184 : f32 to vector<16x16xf32>
      %189 = arith.mulf %188, %182 : vector<16x16xf32>
      %190 = arith.addf %187, %189 : vector<16x16xf32>
      %c0_179 = arith.constant 0 : index
      %c3_180 = arith.constant 3 : index
      %c0_181 = arith.constant 0 : index
      %191 = vector.load %arg8[%c0_179, %c3_180, %c0_181] : memref<2x22x16xf32, #tpu.memory_space<vmem>>, vector<1x16x16xf32>
      %192 = vector.shape_cast %191 : vector<1x16x16xf32> to vector<16x16xf32>
      %c1_182 = arith.constant 1 : index
      %c3_183 = arith.constant 3 : index
      %c0_184 = arith.constant 0 : index
      %193 = vector.load %arg8[%c1_182, %c3_183, %c0_184] : memref<2x22x16xf32, #tpu.memory_space<vmem>>, vector<1x16x16xf32>
      %194 = vector.shape_cast %193 : vector<1x16x16xf32> to vector<16x16xf32>
      %c21 = arith.constant 21 : index
      %195 = memref.load %arg2[%c21] : memref<98xf32, #tpu.memory_space<smem>>
      %c70 = arith.constant 70 : index
      %196 = memref.load %arg2[%c70] : memref<98xf32, #tpu.memory_space<smem>>
      %197 = vector.broadcast %195 : f32 to vector<16x16xf32>
      %198 = arith.mulf %197, %192 : vector<16x16xf32>
      %199 = arith.addf %190, %198 : vector<16x16xf32>
      %200 = vector.broadcast %196 : f32 to vector<16x16xf32>
      %201 = arith.mulf %200, %194 : vector<16x16xf32>
      %202 = arith.addf %199, %201 : vector<16x16xf32>
      %c0_185 = arith.constant 0 : index
      %c4_186 = arith.constant 4 : index
      %c0_187 = arith.constant 0 : index
      %203 = vector.load %arg8[%c0_185, %c4_186, %c0_187] : memref<2x22x16xf32, #tpu.memory_space<vmem>>, vector<1x16x16xf32>
      %204 = vector.shape_cast %203 : vector<1x16x16xf32> to vector<16x16xf32>
      %c1_188 = arith.constant 1 : index
      %c4_189 = arith.constant 4 : index
      %c0_190 = arith.constant 0 : index
      %205 = vector.load %arg8[%c1_188, %c4_189, %c0_190] : memref<2x22x16xf32, #tpu.memory_space<vmem>>, vector<1x16x16xf32>
      %206 = vector.shape_cast %205 : vector<1x16x16xf32> to vector<16x16xf32>
      %c28 = arith.constant 28 : index
      %207 = memref.load %arg2[%c28] : memref<98xf32, #tpu.memory_space<smem>>
      %c77 = arith.constant 77 : index
      %208 = memref.load %arg2[%c77] : memref<98xf32, #tpu.memory_space<smem>>
      %209 = vector.broadcast %207 : f32 to vector<16x16xf32>
      %210 = arith.mulf %209, %204 : vector<16x16xf32>
      %211 = arith.addf %202, %210 : vector<16x16xf32>
      %212 = vector.broadcast %208 : f32 to vector<16x16xf32>
      %213 = arith.mulf %212, %206 : vector<16x16xf32>
      %214 = arith.addf %211, %213 : vector<16x16xf32>
      %c0_191 = arith.constant 0 : index
      %c5_192 = arith.constant 5 : index
      %c0_193 = arith.constant 0 : index
      %215 = vector.load %arg8[%c0_191, %c5_192, %c0_193] : memref<2x22x16xf32, #tpu.memory_space<vmem>>, vector<1x16x16xf32>
      %216 = vector.shape_cast %215 : vector<1x16x16xf32> to vector<16x16xf32>
      %c1_194 = arith.constant 1 : index
      %c5_195 = arith.constant 5 : index
      %c0_196 = arith.constant 0 : index
      %217 = vector.load %arg8[%c1_194, %c5_195, %c0_196] : memref<2x22x16xf32, #tpu.memory_space<vmem>>, vector<1x16x16xf32>
      %218 = vector.shape_cast %217 : vector<1x16x16xf32> to vector<16x16xf32>
      %c35 = arith.constant 35 : index
      %219 = memref.load %arg2[%c35] : memref<98xf32, #tpu.memory_space<smem>>
      %c84 = arith.constant 84 : index
      %220 = memref.load %arg2[%c84] : memref<98xf32, #tpu.memory_space<smem>>
      %221 = vector.broadcast %219 : f32 to vector<16x16xf32>
      %222 = arith.mulf %221, %216 : vector<16x16xf32>
      %223 = arith.addf %214, %222 : vector<16x16xf32>
      %224 = vector.broadcast %220 : f32 to vector<16x16xf32>
      %225 = arith.mulf %224, %218 : vector<16x16xf32>
      %226 = arith.addf %223, %225 : vector<16x16xf32>
      %c0_197 = arith.constant 0 : index
      %c6_198 = arith.constant 6 : index
      %c0_199 = arith.constant 0 : index
      %227 = vector.load %arg8[%c0_197, %c6_198, %c0_199] : memref<2x22x16xf32, #tpu.memory_space<vmem>>, vector<1x16x16xf32>
      %228 = vector.shape_cast %227 : vector<1x16x16xf32> to vector<16x16xf32>
      %c1_200 = arith.constant 1 : index
      %c6_201 = arith.constant 6 : index
      %c0_202 = arith.constant 0 : index
      %229 = vector.load %arg8[%c1_200, %c6_201, %c0_202] : memref<2x22x16xf32, #tpu.memory_space<vmem>>, vector<1x16x16xf32>
      %230 = vector.shape_cast %229 : vector<1x16x16xf32> to vector<16x16xf32>
      %c42 = arith.constant 42 : index
      %231 = memref.load %arg2[%c42] : memref<98xf32, #tpu.memory_space<smem>>
      %c91 = arith.constant 91 : index
      %232 = memref.load %arg2[%c91] : memref<98xf32, #tpu.memory_space<smem>>
      %233 = vector.broadcast %231 : f32 to vector<16x16xf32>
      %234 = arith.mulf %233, %228 : vector<16x16xf32>
      %235 = arith.addf %226, %234 : vector<16x16xf32>
      %236 = vector.broadcast %232 : f32 to vector<16x16xf32>
      %237 = arith.mulf %236, %230 : vector<16x16xf32>
      %238 = arith.addf %235, %237 : vector<16x16xf32>
      %c0_203 = arith.constant 0 : index
      %c0_204 = arith.constant 0 : index
      %c1_205 = arith.constant 1 : index
      %239 = vector.load %arg7[%c0_203, %c0_204, %c1_205] : memref<2x22x22xf32, #tpu.memory_space<vmem>>, vector<2x22x16xf32>
      %c0_206 = arith.constant 0 : index
      %c0_207 = arith.constant 0 : index
      %c0_208 = arith.constant 0 : index
      %240 = vector.load %arg8[%c0_206, %c0_207, %c0_208] : memref<2x22x16xf32, #tpu.memory_space<vmem>>, vector<2x22x16xf32>
      tpu.vector_store %arg8[%c0_206, %c0_207, %c0_208], %239 {strides = array<i32>} : memref<2x22x16xf32, #tpu.memory_space<vmem>>, vector<2x22x16xf32>,
      %c0_209 = arith.constant 0 : index
      %c0_210 = arith.constant 0 : index
      %c0_211 = arith.constant 0 : index
      %241 = vector.load %arg8[%c0_209, %c0_210, %c0_211] : memref<2x22x16xf32, #tpu.memory_space<vmem>>, vector<1x16x16xf32>
      %242 = vector.shape_cast %241 : vector<1x16x16xf32> to vector<16x16xf32>
      %c1_212 = arith.constant 1 : index
      %c0_213 = arith.constant 0 : index
      %c0_214 = arith.constant 0 : index
      %243 = vector.load %arg8[%c1_212, %c0_213, %c0_214] : memref<2x22x16xf32, #tpu.memory_space<vmem>>, vector<1x16x16xf32>
      %244 = vector.shape_cast %243 : vector<1x16x16xf32> to vector<16x16xf32>
      %c1_215 = arith.constant 1 : index
      %245 = memref.load %arg2[%c1_215] : memref<98xf32, #tpu.memory_space<smem>>
      %c50 = arith.constant 50 : index
      %246 = memref.load %arg2[%c50] : memref<98xf32, #tpu.memory_space<smem>>
      %247 = vector.broadcast %245 : f32 to vector<16x16xf32>
      %248 = arith.mulf %247, %242 : vector<16x16xf32>
      %249 = arith.addf %238, %248 : vector<16x16xf32>
      %250 = vector.broadcast %246 : f32 to vector<16x16xf32>
      %251 = arith.mulf %250, %244 : vector<16x16xf32>
      %252 = arith.addf %249, %251 : vector<16x16xf32>
      %c0_216 = arith.constant 0 : index
      %c1_217 = arith.constant 1 : index
      %c0_218 = arith.constant 0 : index
      %253 = vector.load %arg8[%c0_216, %c1_217, %c0_218] : memref<2x22x16xf32, #tpu.memory_space<vmem>>, vector<1x16x16xf32>
      %254 = vector.shape_cast %253 : vector<1x16x16xf32> to vector<16x16xf32>
      %c1_219 = arith.constant 1 : index
      %c1_220 = arith.constant 1 : index
      %c0_221 = arith.constant 0 : index
      %255 = vector.load %arg8[%c1_219, %c1_220, %c0_221] : memref<2x22x16xf32, #tpu.memory_space<vmem>>, vector<1x16x16xf32>
      %256 = vector.shape_cast %255 : vector<1x16x16xf32> to vector<16x16xf32>
      %c8_222 = arith.constant 8 : index
      %257 = memref.load %arg2[%c8_222] : memref<98xf32, #tpu.memory_space<smem>>
      %c57 = arith.constant 57 : index
      %258 = memref.load %arg2[%c57] : memref<98xf32, #tpu.memory_space<smem>>
      %259 = vector.broadcast %257 : f32 to vector<16x16xf32>
      %260 = arith.mulf %259, %254 : vector<16x16xf32>
      %261 = arith.addf %252, %260 : vector<16x16xf32>
      %262 = vector.broadcast %258 : f32 to vector<16x16xf32>
      %263 = arith.mulf %262, %256 : vector<16x16xf32>
      %264 = arith.addf %261, %263 : vector<16x16xf32>
      %c0_223 = arith.constant 0 : index
      %c2_224 = arith.constant 2 : index
      %c0_225 = arith.constant 0 : index
      %265 = vector.load %arg8[%c0_223, %c2_224, %c0_225] : memref<2x22x16xf32, #tpu.memory_space<vmem>>, vector<1x16x16xf32>
      %266 = vector.shape_cast %265 : vector<1x16x16xf32> to vector<16x16xf32>
      %c1_226 = arith.constant 1 : index
      %c2_227 = arith.constant 2 : index
      %c0_228 = arith.constant 0 : index
      %267 = vector.load %arg8[%c1_226, %c2_227, %c0_228] : memref<2x22x16xf32, #tpu.memory_space<vmem>>, vector<1x16x16xf32>
      %268 = vector.shape_cast %267 : vector<1x16x16xf32> to vector<16x16xf32>
      %c15_229 = arith.constant 15 : index
      %269 = memref.load %arg2[%c15_229] : memref<98xf32, #tpu.memory_space<smem>>
      %c64_230 = arith.constant 64 : index
      %270 = memref.load %arg2[%c64_230] : memref<98xf32, #tpu.memory_space<smem>>
      %271 = vector.broadcast %269 : f32 to vector<16x16xf32>
      %272 = arith.mulf %271, %266 : vector<16x16xf32>
      %273 = arith.addf %264, %272 : vector<16x16xf32>
      %274 = vector.broadcast %270 : f32 to vector<16x16xf32>
      %275 = arith.mulf %274, %268 : vector<16x16xf32>
      %276 = arith.addf %273, %275 : vector<16x16xf32>
      %c0_231 = arith.constant 0 : index
      %c3_232 = arith.constant 3 : index
      %c0_233 = arith.constant 0 : index
      %277 = vector.load %arg8[%c0_231, %c3_232, %c0_233] : memref<2x22x16xf32, #tpu.memory_space<vmem>>, vector<1x16x16xf32>
      %278 = vector.shape_cast %277 : vector<1x16x16xf32> to vector<16x16xf32>
      %c1_234 = arith.constant 1 : index
      %c3_235 = arith.constant 3 : index
      %c0_236 = arith.constant 0 : index
      %279 = vector.load %arg8[%c1_234, %c3_235, %c0_236] : memref<2x22x16xf32, #tpu.memory_space<vmem>>, vector<1x16x16xf32>
      %280 = vector.shape_cast %279 : vector<1x16x16xf32> to vector<16x16xf32>
      %c22 = arith.constant 22 : index
      %281 = memref.load %arg2[%c22] : memref<98xf32, #tpu.memory_space<smem>>
      %c71 = arith.constant 71 : index
      %282 = memref.load %arg2[%c71] : memref<98xf32, #tpu.memory_space<smem>>
      %283 = vector.broadcast %281 : f32 to vector<16x16xf32>
      %284 = arith.mulf %283, %278 : vector<16x16xf32>
      %285 = arith.addf %276, %284 : vector<16x16xf32>
      %286 = vector.broadcast %282 : f32 to vector<16x16xf32>
      %287 = arith.mulf %286, %280 : vector<16x16xf32>
      %288 = arith.addf %285, %287 : vector<16x16xf32>
      %c0_237 = arith.constant 0 : index
      %c4_238 = arith.constant 4 : index
      %c0_239 = arith.constant 0 : index
      %289 = vector.load %arg8[%c0_237, %c4_238, %c0_239] : memref<2x22x16xf32, #tpu.memory_space<vmem>>, vector<1x16x16xf32>
      %290 = vector.shape_cast %289 : vector<1x16x16xf32> to vector<16x16xf32>
      %c1_240 = arith.constant 1 : index
      %c4_241 = arith.constant 4 : index
      %c0_242 = arith.constant 0 : index
      %291 = vector.load %arg8[%c1_240, %c4_241, %c0_242] : memref<2x22x16xf32, #tpu.memory_space<vmem>>, vector<1x16x16xf32>
      %292 = vector.shape_cast %291 : vector<1x16x16xf32> to vector<16x16xf32>
      %c29 = arith.constant 29 : index
      %293 = memref.load %arg2[%c29] : memref<98xf32, #tpu.memory_space<smem>>
      %c78 = arith.constant 78 : index
      %294 = memref.load %arg2[%c78] : memref<98xf32, #tpu.memory_space<smem>>
      %295 = vector.broadcast %293 : f32 to vector<16x16xf32>
      %296 = arith.mulf %295, %290 : vector<16x16xf32>
      %297 = arith.addf %288, %296 : vector<16x16xf32>
      %298 = vector.broadcast %294 : f32 to vector<16x16xf32>
      %299 = arith.mulf %298, %292 : vector<16x16xf32>
      %300 = arith.addf %297, %299 : vector<16x16xf32>
      %c0_243 = arith.constant 0 : index
      %c5_244 = arith.constant 5 : index
      %c0_245 = arith.constant 0 : index
      %301 = vector.load %arg8[%c0_243, %c5_244, %c0_245] : memref<2x22x16xf32, #tpu.memory_space<vmem>>, vector<1x16x16xf32>
      %302 = vector.shape_cast %301 : vector<1x16x16xf32> to vector<16x16xf32>
      %c1_246 = arith.constant 1 : index
      %c5_247 = arith.constant 5 : index
      %c0_248 = arith.constant 0 : index
      %303 = vector.load %arg8[%c1_246, %c5_247, %c0_248] : memref<2x22x16xf32, #tpu.memory_space<vmem>>, vector<1x16x16xf32>
      %304 = vector.shape_cast %303 : vector<1x16x16xf32> to vector<16x16xf32>
      %c36 = arith.constant 36 : index
      %305 = memref.load %arg2[%c36] : memref<98xf32, #tpu.memory_space<smem>>
      %c85 = arith.constant 85 : index
      %306 = memref.load %arg2[%c85] : memref<98xf32, #tpu.memory_space<smem>>
      %307 = vector.broadcast %305 : f32 to vector<16x16xf32>
      %308 = arith.mulf %307, %302 : vector<16x16xf32>
      %309 = arith.addf %300, %308 : vector<16x16xf32>
      %310 = vector.broadcast %306 : f32 to vector<16x16xf32>
      %311 = arith.mulf %310, %304 : vector<16x16xf32>
      %312 = arith.addf %309, %311 : vector<16x16xf32>
      %c0_249 = arith.constant 0 : index
      %c6_250 = arith.constant 6 : index
      %c0_251 = arith.constant 0 : index
      %313 = vector.load %arg8[%c0_249, %c6_250, %c0_251] : memref<2x22x16xf32, #tpu.memory_space<vmem>>, vector<1x16x16xf32>
      %314 = vector.shape_cast %313 : vector<1x16x16xf32> to vector<16x16xf32>
      %c1_252 = arith.constant 1 : index
      %c6_253 = arith.constant 6 : index
      %c0_254 = arith.constant 0 : index
      %315 = vector.load %arg8[%c1_252, %c6_253, %c0_254] : memref<2x22x16xf32, #tpu.memory_space<vmem>>, vector<1x16x16xf32>
      %316 = vector.shape_cast %315 : vector<1x16x16xf32> to vector<16x16xf32>
      %c43 = arith.constant 43 : index
      %317 = memref.load %arg2[%c43] : memref<98xf32, #tpu.memory_space<smem>>
      %c92 = arith.constant 92 : index
      %318 = memref.load %arg2[%c92] : memref<98xf32, #tpu.memory_space<smem>>
      %319 = vector.broadcast %317 : f32 to vector<16x16xf32>
      %320 = arith.mulf %319, %314 : vector<16x16xf32>
      %321 = arith.addf %312, %320 : vector<16x16xf32>
      %322 = vector.broadcast %318 : f32 to vector<16x16xf32>
      %323 = arith.mulf %322, %316 : vector<16x16xf32>
      %324 = arith.addf %321, %323 : vector<16x16xf32>
      %c0_255 = arith.constant 0 : index
      %c0_256 = arith.constant 0 : index
      %c2_257 = arith.constant 2 : index
      %325 = vector.load %arg7[%c0_255, %c0_256, %c2_257] : memref<2x22x22xf32, #tpu.memory_space<vmem>>, vector<2x22x16xf32>
      %c0_258 = arith.constant 0 : index
      %c0_259 = arith.constant 0 : index
      %c0_260 = arith.constant 0 : index
      %326 = vector.load %arg8[%c0_258, %c0_259, %c0_260] : memref<2x22x16xf32, #tpu.memory_space<vmem>>, vector<2x22x16xf32>
      tpu.vector_store %arg8[%c0_258, %c0_259, %c0_260], %325 {strides = array<i32>} : memref<2x22x16xf32, #tpu.memory_space<vmem>>, vector<2x22x16xf32>,
      %c0_261 = arith.constant 0 : index
      %c0_262 = arith.constant 0 : index
      %c0_263 = arith.constant 0 : index
      %327 = vector.load %arg8[%c0_261, %c0_262, %c0_263] : memref<2x22x16xf32, #tpu.memory_space<vmem>>, vector<1x16x16xf32>
      %328 = vector.shape_cast %327 : vector<1x16x16xf32> to vector<16x16xf32>
      %c1_264 = arith.constant 1 : index
      %c0_265 = arith.constant 0 : index
      %c0_266 = arith.constant 0 : index
      %329 = vector.load %arg8[%c1_264, %c0_265, %c0_266] : memref<2x22x16xf32, #tpu.memory_space<vmem>>, vector<1x16x16xf32>
      %330 = vector.shape_cast %329 : vector<1x16x16xf32> to vector<16x16xf32>
      %c2_267 = arith.constant 2 : index
      %331 = memref.load %arg2[%c2_267] : memref<98xf32, #tpu.memory_space<smem>>
      %c51 = arith.constant 51 : index
      %332 = memref.load %arg2[%c51] : memref<98xf32, #tpu.memory_space<smem>>
      %333 = vector.broadcast %331 : f32 to vector<16x16xf32>
      %334 = arith.mulf %333, %328 : vector<16x16xf32>
      %335 = arith.addf %324, %334 : vector<16x16xf32>
      %336 = vector.broadcast %332 : f32 to vector<16x16xf32>
      %337 = arith.mulf %336, %330 : vector<16x16xf32>
      %338 = arith.addf %335, %337 : vector<16x16xf32>
      %c0_268 = arith.constant 0 : index
      %c1_269 = arith.constant 1 : index
      %c0_270 = arith.constant 0 : index
      %339 = vector.load %arg8[%c0_268, %c1_269, %c0_270] : memref<2x22x16xf32, #tpu.memory_space<vmem>>, vector<1x16x16xf32>
      %340 = vector.shape_cast %339 : vector<1x16x16xf32> to vector<16x16xf32>
      %c1_271 = arith.constant 1 : index
      %c1_272 = arith.constant 1 : index
      %c0_273 = arith.constant 0 : index
      %341 = vector.load %arg8[%c1_271, %c1_272, %c0_273] : memref<2x22x16xf32, #tpu.memory_space<vmem>>, vector<1x16x16xf32>
      %342 = vector.shape_cast %341 : vector<1x16x16xf32> to vector<16x16xf32>
      %c9_274 = arith.constant 9 : index
      %343 = memref.load %arg2[%c9_274] : memref<98xf32, #tpu.memory_space<smem>>
      %c58 = arith.constant 58 : index
      %344 = memref.load %arg2[%c58] : memref<98xf32, #tpu.memory_space<smem>>
      %345 = vector.broadcast %343 : f32 to vector<16x16xf32>
      %346 = arith.mulf %345, %340 : vector<16x16xf32>
      %347 = arith.addf %338, %346 : vector<16x16xf32>
      %348 = vector.broadcast %344 : f32 to vector<16x16xf32>
      %349 = arith.mulf %348, %342 : vector<16x16xf32>
      %350 = arith.addf %347, %349 : vector<16x16xf32>
      %c0_275 = arith.constant 0 : index
      %c2_276 = arith.constant 2 : index
      %c0_277 = arith.constant 0 : index
      %351 = vector.load %arg8[%c0_275, %c2_276, %c0_277] : memref<2x22x16xf32, #tpu.memory_space<vmem>>, vector<1x16x16xf32>
      %352 = vector.shape_cast %351 : vector<1x16x16xf32> to vector<16x16xf32>
      %c1_278 = arith.constant 1 : index
      %c2_279 = arith.constant 2 : index
      %c0_280 = arith.constant 0 : index
      %353 = vector.load %arg8[%c1_278, %c2_279, %c0_280] : memref<2x22x16xf32, #tpu.memory_space<vmem>>, vector<1x16x16xf32>
      %354 = vector.shape_cast %353 : vector<1x16x16xf32> to vector<16x16xf32>
      %c16_281 = arith.constant 16 : index
      %355 = memref.load %arg2[%c16_281] : memref<98xf32, #tpu.memory_space<smem>>
      %c65 = arith.constant 65 : index
      %356 = memref.load %arg2[%c65] : memref<98xf32, #tpu.memory_space<smem>>
      %357 = vector.broadcast %355 : f32 to vector<16x16xf32>
      %358 = arith.mulf %357, %352 : vector<16x16xf32>
      %359 = arith.addf %350, %358 : vector<16x16xf32>
      %360 = vector.broadcast %356 : f32 to vector<16x16xf32>
      %361 = arith.mulf %360, %354 : vector<16x16xf32>
      %362 = arith.addf %359, %361 : vector<16x16xf32>
      %c0_282 = arith.constant 0 : index
      %c3_283 = arith.constant 3 : index
      %c0_284 = arith.constant 0 : index
      %363 = vector.load %arg8[%c0_282, %c3_283, %c0_284] : memref<2x22x16xf32, #tpu.memory_space<vmem>>, vector<1x16x16xf32>
      %364 = vector.shape_cast %363 : vector<1x16x16xf32> to vector<16x16xf32>
      %c1_285 = arith.constant 1 : index
      %c3_286 = arith.constant 3 : index
      %c0_287 = arith.constant 0 : index
      %365 = vector.load %arg8[%c1_285, %c3_286, %c0_287] : memref<2x22x16xf32, #tpu.memory_space<vmem>>, vector<1x16x16xf32>
      %366 = vector.shape_cast %365 : vector<1x16x16xf32> to vector<16x16xf32>
      %c23 = arith.constant 23 : index
      %367 = memref.load %arg2[%c23] : memref<98xf32, #tpu.memory_space<smem>>
      %c72 = arith.constant 72 : index
      %368 = memref.load %arg2[%c72] : memref<98xf32, #tpu.memory_space<smem>>
      %369 = vector.broadcast %367 : f32 to vector<16x16xf32>
      %370 = arith.mulf %369, %364 : vector<16x16xf32>
      %371 = arith.addf %362, %370 : vector<16x16xf32>
      %372 = vector.broadcast %368 : f32 to vector<16x16xf32>
      %373 = arith.mulf %372, %366 : vector<16x16xf32>
      %374 = arith.addf %371, %373 : vector<16x16xf32>
      %c0_288 = arith.constant 0 : index
      %c4_289 = arith.constant 4 : index
      %c0_290 = arith.constant 0 : index
      %375 = vector.load %arg8[%c0_288, %c4_289, %c0_290] : memref<2x22x16xf32, #tpu.memory_space<vmem>>, vector<1x16x16xf32>
      %376 = vector.shape_cast %375 : vector<1x16x16xf32> to vector<16x16xf32>
      %c1_291 = arith.constant 1 : index
      %c4_292 = arith.constant 4 : index
      %c0_293 = arith.constant 0 : index
      %377 = vector.load %arg8[%c1_291, %c4_292, %c0_293] : memref<2x22x16xf32, #tpu.memory_space<vmem>>, vector<1x16x16xf32>
      %378 = vector.shape_cast %377 : vector<1x16x16xf32> to vector<16x16xf32>
      %c30 = arith.constant 30 : index
      %379 = memref.load %arg2[%c30] : memref<98xf32, #tpu.memory_space<smem>>
      %c79 = arith.constant 79 : index
      %380 = memref.load %arg2[%c79] : memref<98xf32, #tpu.memory_space<smem>>
      %381 = vector.broadcast %379 : f32 to vector<16x16xf32>
      %382 = arith.mulf %381, %376 : vector<16x16xf32>
      %383 = arith.addf %374, %382 : vector<16x16xf32>
      %384 = vector.broadcast %380 : f32 to vector<16x16xf32>
      %385 = arith.mulf %384, %378 : vector<16x16xf32>
      %386 = arith.addf %383, %385 : vector<16x16xf32>
      %c0_294 = arith.constant 0 : index
      %c5_295 = arith.constant 5 : index
      %c0_296 = arith.constant 0 : index
      %387 = vector.load %arg8[%c0_294, %c5_295, %c0_296] : memref<2x22x16xf32, #tpu.memory_space<vmem>>, vector<1x16x16xf32>
      %388 = vector.shape_cast %387 : vector<1x16x16xf32> to vector<16x16xf32>
      %c1_297 = arith.constant 1 : index
      %c5_298 = arith.constant 5 : index
      %c0_299 = arith.constant 0 : index
      %389 = vector.load %arg8[%c1_297, %c5_298, %c0_299] : memref<2x22x16xf32, #tpu.memory_space<vmem>>, vector<1x16x16xf32>
      %390 = vector.shape_cast %389 : vector<1x16x16xf32> to vector<16x16xf32>
      %c37 = arith.constant 37 : index
      %391 = memref.load %arg2[%c37] : memref<98xf32, #tpu.memory_space<smem>>
      %c86 = arith.constant 86 : index
      %392 = memref.load %arg2[%c86] : memref<98xf32, #tpu.memory_space<smem>>
      %393 = vector.broadcast %391 : f32 to vector<16x16xf32>
      %394 = arith.mulf %393, %388 : vector<16x16xf32>
      %395 = arith.addf %386, %394 : vector<16x16xf32>
      %396 = vector.broadcast %392 : f32 to vector<16x16xf32>
      %397 = arith.mulf %396, %390 : vector<16x16xf32>
      %398 = arith.addf %395, %397 : vector<16x16xf32>
      %c0_300 = arith.constant 0 : index
      %c6_301 = arith.constant 6 : index
      %c0_302 = arith.constant 0 : index
      %399 = vector.load %arg8[%c0_300, %c6_301, %c0_302] : memref<2x22x16xf32, #tpu.memory_space<vmem>>, vector<1x16x16xf32>
      %400 = vector.shape_cast %399 : vector<1x16x16xf32> to vector<16x16xf32>
      %c1_303 = arith.constant 1 : index
      %c6_304 = arith.constant 6 : index
      %c0_305 = arith.constant 0 : index
      %401 = vector.load %arg8[%c1_303, %c6_304, %c0_305] : memref<2x22x16xf32, #tpu.memory_space<vmem>>, vector<1x16x16xf32>
      %402 = vector.shape_cast %401 : vector<1x16x16xf32> to vector<16x16xf32>
      %c44 = arith.constant 44 : index
      %403 = memref.load %arg2[%c44] : memref<98xf32, #tpu.memory_space<smem>>
      %c93 = arith.constant 93 : index
      %404 = memref.load %arg2[%c93] : memref<98xf32, #tpu.memory_space<smem>>
      %405 = vector.broadcast %403 : f32 to vector<16x16xf32>
      %406 = arith.mulf %405, %400 : vector<16x16xf32>
      %407 = arith.addf %398, %406 : vector<16x16xf32>
      %408 = vector.broadcast %404 : f32 to vector<16x16xf32>
      %409 = arith.mulf %408, %402 : vector<16x16xf32>
      %410 = arith.addf %407, %409 : vector<16x16xf32>
      %c0_306 = arith.constant 0 : index
      %c0_307 = arith.constant 0 : index
      %c3_308 = arith.constant 3 : index
      %411 = vector.load %arg7[%c0_306, %c0_307, %c3_308] : memref<2x22x22xf32, #tpu.memory_space<vmem>>, vector<2x22x16xf32>
      %c0_309 = arith.constant 0 : index
      %c0_310 = arith.constant 0 : index
      %c0_311 = arith.constant 0 : index
      %412 = vector.load %arg8[%c0_309, %c0_310, %c0_311] : memref<2x22x16xf32, #tpu.memory_space<vmem>>, vector<2x22x16xf32>
      tpu.vector_store %arg8[%c0_309, %c0_310, %c0_311], %411 {strides = array<i32>} : memref<2x22x16xf32, #tpu.memory_space<vmem>>, vector<2x22x16xf32>,
      %c0_312 = arith.constant 0 : index
      %c0_313 = arith.constant 0 : index
      %c0_314 = arith.constant 0 : index
      %413 = vector.load %arg8[%c0_312, %c0_313, %c0_314] : memref<2x22x16xf32, #tpu.memory_space<vmem>>, vector<1x16x16xf32>
      %414 = vector.shape_cast %413 : vector<1x16x16xf32> to vector<16x16xf32>
      %c1_315 = arith.constant 1 : index
      %c0_316 = arith.constant 0 : index
      %c0_317 = arith.constant 0 : index
      %415 = vector.load %arg8[%c1_315, %c0_316, %c0_317] : memref<2x22x16xf32, #tpu.memory_space<vmem>>, vector<1x16x16xf32>
      %416 = vector.shape_cast %415 : vector<1x16x16xf32> to vector<16x16xf32>
      %c3_318 = arith.constant 3 : index
      %417 = memref.load %arg2[%c3_318] : memref<98xf32, #tpu.memory_space<smem>>
      %c52 = arith.constant 52 : index
      %418 = memref.load %arg2[%c52] : memref<98xf32, #tpu.memory_space<smem>>
      %419 = vector.broadcast %417 : f32 to vector<16x16xf32>
      %420 = arith.mulf %419, %414 : vector<16x16xf32>
      %421 = arith.addf %410, %420 : vector<16x16xf32>
      %422 = vector.broadcast %418 : f32 to vector<16x16xf32>
      %423 = arith.mulf %422, %416 : vector<16x16xf32>
      %424 = arith.addf %421, %423 : vector<16x16xf32>
      %c0_319 = arith.constant 0 : index
      %c1_320 = arith.constant 1 : index
      %c0_321 = arith.constant 0 : index
      %425 = vector.load %arg8[%c0_319, %c1_320, %c0_321] : memref<2x22x16xf32, #tpu.memory_space<vmem>>, vector<1x16x16xf32>
      %426 = vector.shape_cast %425 : vector<1x16x16xf32> to vector<16x16xf32>
      %c1_322 = arith.constant 1 : index
      %c1_323 = arith.constant 1 : index
      %c0_324 = arith.constant 0 : index
      %427 = vector.load %arg8[%c1_322, %c1_323, %c0_324] : memref<2x22x16xf32, #tpu.memory_space<vmem>>, vector<1x16x16xf32>
      %428 = vector.shape_cast %427 : vector<1x16x16xf32> to vector<16x16xf32>
      %c10_325 = arith.constant 10 : index
      %429 = memref.load %arg2[%c10_325] : memref<98xf32, #tpu.memory_space<smem>>
      %c59 = arith.constant 59 : index
      %430 = memref.load %arg2[%c59] : memref<98xf32, #tpu.memory_space<smem>>
      %431 = vector.broadcast %429 : f32 to vector<16x16xf32>
      %432 = arith.mulf %431, %426 : vector<16x16xf32>
      %433 = arith.addf %424, %432 : vector<16x16xf32>
      %434 = vector.broadcast %430 : f32 to vector<16x16xf32>
      %435 = arith.mulf %434, %428 : vector<16x16xf32>
      %436 = arith.addf %433, %435 : vector<16x16xf32>
      %c0_326 = arith.constant 0 : index
      %c2_327 = arith.constant 2 : index
      %c0_328 = arith.constant 0 : index
      %437 = vector.load %arg8[%c0_326, %c2_327, %c0_328] : memref<2x22x16xf32, #tpu.memory_space<vmem>>, vector<1x16x16xf32>
      %438 = vector.shape_cast %437 : vector<1x16x16xf32> to vector<16x16xf32>
      %c1_329 = arith.constant 1 : index
      %c2_330 = arith.constant 2 : index
      %c0_331 = arith.constant 0 : index
      %439 = vector.load %arg8[%c1_329, %c2_330, %c0_331] : memref<2x22x16xf32, #tpu.memory_space<vmem>>, vector<1x16x16xf32>
      %440 = vector.shape_cast %439 : vector<1x16x16xf32> to vector<16x16xf32>
      %c17_332 = arith.constant 17 : index
      %441 = memref.load %arg2[%c17_332] : memref<98xf32, #tpu.memory_space<smem>>
      %c66 = arith.constant 66 : index
      %442 = memref.load %arg2[%c66] : memref<98xf32, #tpu.memory_space<smem>>
      %443 = vector.broadcast %441 : f32 to vector<16x16xf32>
      %444 = arith.mulf %443, %438 : vector<16x16xf32>
      %445 = arith.addf %436, %444 : vector<16x16xf32>
      %446 = vector.broadcast %442 : f32 to vector<16x16xf32>
      %447 = arith.mulf %446, %440 : vector<16x16xf32>
      %448 = arith.addf %445, %447 : vector<16x16xf32>
      %c0_333 = arith.constant 0 : index
      %c3_334 = arith.constant 3 : index
      %c0_335 = arith.constant 0 : index
      %449 = vector.load %arg8[%c0_333, %c3_334, %c0_335] : memref<2x22x16xf32, #tpu.memory_space<vmem>>, vector<1x16x16xf32>
      %450 = vector.shape_cast %449 : vector<1x16x16xf32> to vector<16x16xf32>
      %c1_336 = arith.constant 1 : index
      %c3_337 = arith.constant 3 : index
      %c0_338 = arith.constant 0 : index
      %451 = vector.load %arg8[%c1_336, %c3_337, %c0_338] : memref<2x22x16xf32, #tpu.memory_space<vmem>>, vector<1x16x16xf32>
      %452 = vector.shape_cast %451 : vector<1x16x16xf32> to vector<16x16xf32>
      %c24 = arith.constant 24 : index
      %453 = memref.load %arg2[%c24] : memref<98xf32, #tpu.memory_space<smem>>
      %c73 = arith.constant 73 : index
      %454 = memref.load %arg2[%c73] : memref<98xf32, #tpu.memory_space<smem>>
      %455 = vector.broadcast %453 : f32 to vector<16x16xf32>
      %456 = arith.mulf %455, %450 : vector<16x16xf32>
      %457 = arith.addf %448, %456 : vector<16x16xf32>
      %458 = vector.broadcast %454 : f32 to vector<16x16xf32>
      %459 = arith.mulf %458, %452 : vector<16x16xf32>
      %460 = arith.addf %457, %459 : vector<16x16xf32>
      %c0_339 = arith.constant 0 : index
      %c4_340 = arith.constant 4 : index
      %c0_341 = arith.constant 0 : index
      %461 = vector.load %arg8[%c0_339, %c4_340, %c0_341] : memref<2x22x16xf32, #tpu.memory_space<vmem>>, vector<1x16x16xf32>
      %462 = vector.shape_cast %461 : vector<1x16x16xf32> to vector<16x16xf32>
      %c1_342 = arith.constant 1 : index
      %c4_343 = arith.constant 4 : index
      %c0_344 = arith.constant 0 : index
      %463 = vector.load %arg8[%c1_342, %c4_343, %c0_344] : memref<2x22x16xf32, #tpu.memory_space<vmem>>, vector<1x16x16xf32>
      %464 = vector.shape_cast %463 : vector<1x16x16xf32> to vector<16x16xf32>
      %c31 = arith.constant 31 : index
      %465 = memref.load %arg2[%c31] : memref<98xf32, #tpu.memory_space<smem>>
      %c80_345 = arith.constant 80 : index
      %466 = memref.load %arg2[%c80_345] : memref<98xf32, #tpu.memory_space<smem>>
      %467 = vector.broadcast %465 : f32 to vector<16x16xf32>
      %468 = arith.mulf %467, %462 : vector<16x16xf32>
      %469 = arith.addf %460, %468 : vector<16x16xf32>
      %470 = vector.broadcast %466 : f32 to vector<16x16xf32>
      %471 = arith.mulf %470, %464 : vector<16x16xf32>
      %472 = arith.addf %469, %471 : vector<16x16xf32>
      %c0_346 = arith.constant 0 : index
      %c5_347 = arith.constant 5 : index
      %c0_348 = arith.constant 0 : index
      %473 = vector.load %arg8[%c0_346, %c5_347, %c0_348] : memref<2x22x16xf32, #tpu.memory_space<vmem>>, vector<1x16x16xf32>
      %474 = vector.shape_cast %473 : vector<1x16x16xf32> to vector<16x16xf32>
      %c1_349 = arith.constant 1 : index
      %c5_350 = arith.constant 5 : index
      %c0_351 = arith.constant 0 : index
      %475 = vector.load %arg8[%c1_349, %c5_350, %c0_351] : memref<2x22x16xf32, #tpu.memory_space<vmem>>, vector<1x16x16xf32>
      %476 = vector.shape_cast %475 : vector<1x16x16xf32> to vector<16x16xf32>
      %c38 = arith.constant 38 : index
      %477 = memref.load %arg2[%c38] : memref<98xf32, #tpu.memory_space<smem>>
      %c87 = arith.constant 87 : index
      %478 = memref.load %arg2[%c87] : memref<98xf32, #tpu.memory_space<smem>>
      %479 = vector.broadcast %477 : f32 to vector<16x16xf32>
      %480 = arith.mulf %479, %474 : vector<16x16xf32>
      %481 = arith.addf %472, %480 : vector<16x16xf32>
      %482 = vector.broadcast %478 : f32 to vector<16x16xf32>
      %483 = arith.mulf %482, %476 : vector<16x16xf32>
      %484 = arith.addf %481, %483 : vector<16x16xf32>
      %c0_352 = arith.constant 0 : index
      %c6_353 = arith.constant 6 : index
      %c0_354 = arith.constant 0 : index
      %485 = vector.load %arg8[%c0_352, %c6_353, %c0_354] : memref<2x22x16xf32, #tpu.memory_space<vmem>>, vector<1x16x16xf32>
      %486 = vector.shape_cast %485 : vector<1x16x16xf32> to vector<16x16xf32>
      %c1_355 = arith.constant 1 : index
      %c6_356 = arith.constant 6 : index
      %c0_357 = arith.constant 0 : index
      %487 = vector.load %arg8[%c1_355, %c6_356, %c0_357] : memref<2x22x16xf32, #tpu.memory_space<vmem>>, vector<1x16x16xf32>
      %488 = vector.shape_cast %487 : vector<1x16x16xf32> to vector<16x16xf32>
      %c45 = arith.constant 45 : index
      %489 = memref.load %arg2[%c45] : memref<98xf32, #tpu.memory_space<smem>>
      %c94 = arith.constant 94 : index
      %490 = memref.load %arg2[%c94] : memref<98xf32, #tpu.memory_space<smem>>
      %491 = vector.broadcast %489 : f32 to vector<16x16xf32>
      %492 = arith.mulf %491, %486 : vector<16x16xf32>
      %493 = arith.addf %484, %492 : vector<16x16xf32>
      %494 = vector.broadcast %490 : f32 to vector<16x16xf32>
      %495 = arith.mulf %494, %488 : vector<16x16xf32>
      %496 = arith.addf %493, %495 : vector<16x16xf32>
      %c0_358 = arith.constant 0 : index
      %c0_359 = arith.constant 0 : index
      %c4_360 = arith.constant 4 : index
      %497 = vector.load %arg7[%c0_358, %c0_359, %c4_360] : memref<2x22x22xf32, #tpu.memory_space<vmem>>, vector<2x22x16xf32>
      %c0_361 = arith.constant 0 : index
      %c0_362 = arith.constant 0 : index
      %c0_363 = arith.constant 0 : index
      %498 = vector.load %arg8[%c0_361, %c0_362, %c0_363] : memref<2x22x16xf32, #tpu.memory_space<vmem>>, vector<2x22x16xf32>
      tpu.vector_store %arg8[%c0_361, %c0_362, %c0_363], %497 {strides = array<i32>} : memref<2x22x16xf32, #tpu.memory_space<vmem>>, vector<2x22x16xf32>,
      %c0_364 = arith.constant 0 : index
      %c0_365 = arith.constant 0 : index
      %c0_366 = arith.constant 0 : index
      %499 = vector.load %arg8[%c0_364, %c0_365, %c0_366] : memref<2x22x16xf32, #tpu.memory_space<vmem>>, vector<1x16x16xf32>
      %500 = vector.shape_cast %499 : vector<1x16x16xf32> to vector<16x16xf32>
      %c1_367 = arith.constant 1 : index
      %c0_368 = arith.constant 0 : index
      %c0_369 = arith.constant 0 : index
      %501 = vector.load %arg8[%c1_367, %c0_368, %c0_369] : memref<2x22x16xf32, #tpu.memory_space<vmem>>, vector<1x16x16xf32>
      %502 = vector.shape_cast %501 : vector<1x16x16xf32> to vector<16x16xf32>
      %c4_370 = arith.constant 4 : index
      %503 = memref.load %arg2[%c4_370] : memref<98xf32, #tpu.memory_space<smem>>
      %c53 = arith.constant 53 : index
      %504 = memref.load %arg2[%c53] : memref<98xf32, #tpu.memory_space<smem>>
      %505 = vector.broadcast %503 : f32 to vector<16x16xf32>
      %506 = arith.mulf %505, %500 : vector<16x16xf32>
      %507 = arith.addf %496, %506 : vector<16x16xf32>
      %508 = vector.broadcast %504 : f32 to vector<16x16xf32>
      %509 = arith.mulf %508, %502 : vector<16x16xf32>
      %510 = arith.addf %507, %509 : vector<16x16xf32>
      %c0_371 = arith.constant 0 : index
      %c1_372 = arith.constant 1 : index
      %c0_373 = arith.constant 0 : index
      %511 = vector.load %arg8[%c0_371, %c1_372, %c0_373] : memref<2x22x16xf32, #tpu.memory_space<vmem>>, vector<1x16x16xf32>
      %512 = vector.shape_cast %511 : vector<1x16x16xf32> to vector<16x16xf32>
      %c1_374 = arith.constant 1 : index
      %c1_375 = arith.constant 1 : index
      %c0_376 = arith.constant 0 : index
      %513 = vector.load %arg8[%c1_374, %c1_375, %c0_376] : memref<2x22x16xf32, #tpu.memory_space<vmem>>, vector<1x16x16xf32>
      %514 = vector.shape_cast %513 : vector<1x16x16xf32> to vector<16x16xf32>
      %c11_377 = arith.constant 11 : index
      %515 = memref.load %arg2[%c11_377] : memref<98xf32, #tpu.memory_space<smem>>
      %c60 = arith.constant 60 : index
      %516 = memref.load %arg2[%c60] : memref<98xf32, #tpu.memory_space<smem>>
      %517 = vector.broadcast %515 : f32 to vector<16x16xf32>
      %518 = arith.mulf %517, %512 : vector<16x16xf32>
      %519 = arith.addf %510, %518 : vector<16x16xf32>
      %520 = vector.broadcast %516 : f32 to vector<16x16xf32>
      %521 = arith.mulf %520, %514 : vector<16x16xf32>
      %522 = arith.addf %519, %521 : vector<16x16xf32>
      %c0_378 = arith.constant 0 : index
      %c2_379 = arith.constant 2 : index
      %c0_380 = arith.constant 0 : index
      %523 = vector.load %arg8[%c0_378, %c2_379, %c0_380] : memref<2x22x16xf32, #tpu.memory_space<vmem>>, vector<1x16x16xf32>
      %524 = vector.shape_cast %523 : vector<1x16x16xf32> to vector<16x16xf32>
      %c1_381 = arith.constant 1 : index
      %c2_382 = arith.constant 2 : index
      %c0_383 = arith.constant 0 : index
      %525 = vector.load %arg8[%c1_381, %c2_382, %c0_383] : memref<2x22x16xf32, #tpu.memory_space<vmem>>, vector<1x16x16xf32>
      %526 = vector.shape_cast %525 : vector<1x16x16xf32> to vector<16x16xf32>
      %c18_384 = arith.constant 18 : index
      %527 = memref.load %arg2[%c18_384] : memref<98xf32, #tpu.memory_space<smem>>
      %c67 = arith.constant 67 : index
      %528 = memref.load %arg2[%c67] : memref<98xf32, #tpu.memory_space<smem>>
      %529 = vector.broadcast %527 : f32 to vector<16x16xf32>
      %530 = arith.mulf %529, %524 : vector<16x16xf32>
      %531 = arith.addf %522, %530 : vector<16x16xf32>
      %532 = vector.broadcast %528 : f32 to vector<16x16xf32>
      %533 = arith.mulf %532, %526 : vector<16x16xf32>
      %534 = arith.addf %531, %533 : vector<16x16xf32>
      %c0_385 = arith.constant 0 : index
      %c3_386 = arith.constant 3 : index
      %c0_387 = arith.constant 0 : index
      %535 = vector.load %arg8[%c0_385, %c3_386, %c0_387] : memref<2x22x16xf32, #tpu.memory_space<vmem>>, vector<1x16x16xf32>
      %536 = vector.shape_cast %535 : vector<1x16x16xf32> to vector<16x16xf32>
      %c1_388 = arith.constant 1 : index
      %c3_389 = arith.constant 3 : index
      %c0_390 = arith.constant 0 : index
      %537 = vector.load %arg8[%c1_388, %c3_389, %c0_390] : memref<2x22x16xf32, #tpu.memory_space<vmem>>, vector<1x16x16xf32>
      %538 = vector.shape_cast %537 : vector<1x16x16xf32> to vector<16x16xf32>
      %c25 = arith.constant 25 : index
      %539 = memref.load %arg2[%c25] : memref<98xf32, #tpu.memory_space<smem>>
      %c74 = arith.constant 74 : index
      %540 = memref.load %arg2[%c74] : memref<98xf32, #tpu.memory_space<smem>>
      %541 = vector.broadcast %539 : f32 to vector<16x16xf32>
      %542 = arith.mulf %541, %536 : vector<16x16xf32>
      %543 = arith.addf %534, %542 : vector<16x16xf32>
      %544 = vector.broadcast %540 : f32 to vector<16x16xf32>
      %545 = arith.mulf %544, %538 : vector<16x16xf32>
      %546 = arith.addf %543, %545 : vector<16x16xf32>
      %c0_391 = arith.constant 0 : index
      %c4_392 = arith.constant 4 : index
      %c0_393 = arith.constant 0 : index
      %547 = vector.load %arg8[%c0_391, %c4_392, %c0_393] : memref<2x22x16xf32, #tpu.memory_space<vmem>>, vector<1x16x16xf32>
      %548 = vector.shape_cast %547 : vector<1x16x16xf32> to vector<16x16xf32>
      %c1_394 = arith.constant 1 : index
      %c4_395 = arith.constant 4 : index
      %c0_396 = arith.constant 0 : index
      %549 = vector.load %arg8[%c1_394, %c4_395, %c0_396] : memref<2x22x16xf32, #tpu.memory_space<vmem>>, vector<1x16x16xf32>
      %550 = vector.shape_cast %549 : vector<1x16x16xf32> to vector<16x16xf32>
      %c32_397 = arith.constant 32 : index
      %551 = memref.load %arg2[%c32_397] : memref<98xf32, #tpu.memory_space<smem>>
      %c81 = arith.constant 81 : index
      %552 = memref.load %arg2[%c81] : memref<98xf32, #tpu.memory_space<smem>>
      %553 = vector.broadcast %551 : f32 to vector<16x16xf32>
      %554 = arith.mulf %553, %548 : vector<16x16xf32>
      %555 = arith.addf %546, %554 : vector<16x16xf32>
      %556 = vector.broadcast %552 : f32 to vector<16x16xf32>
      %557 = arith.mulf %556, %550 : vector<16x16xf32>
      %558 = arith.addf %555, %557 : vector<16x16xf32>
      %c0_398 = arith.constant 0 : index
      %c5_399 = arith.constant 5 : index
      %c0_400 = arith.constant 0 : index
      %559 = vector.load %arg8[%c0_398, %c5_399, %c0_400] : memref<2x22x16xf32, #tpu.memory_space<vmem>>, vector<1x16x16xf32>
      %560 = vector.shape_cast %559 : vector<1x16x16xf32> to vector<16x16xf32>
      %c1_401 = arith.constant 1 : index
      %c5_402 = arith.constant 5 : index
      %c0_403 = arith.constant 0 : index
      %561 = vector.load %arg8[%c1_401, %c5_402, %c0_403] : memref<2x22x16xf32, #tpu.memory_space<vmem>>, vector<1x16x16xf32>
      %562 = vector.shape_cast %561 : vector<1x16x16xf32> to vector<16x16xf32>
      %c39 = arith.constant 39 : index
      %563 = memref.load %arg2[%c39] : memref<98xf32, #tpu.memory_space<smem>>
      %c88 = arith.constant 88 : index
      %564 = memref.load %arg2[%c88] : memref<98xf32, #tpu.memory_space<smem>>
      %565 = vector.broadcast %563 : f32 to vector<16x16xf32>
      %566 = arith.mulf %565, %560 : vector<16x16xf32>
      %567 = arith.addf %558, %566 : vector<16x16xf32>
      %568 = vector.broadcast %564 : f32 to vector<16x16xf32>
      %569 = arith.mulf %568, %562 : vector<16x16xf32>
      %570 = arith.addf %567, %569 : vector<16x16xf32>
      %c0_404 = arith.constant 0 : index
      %c6_405 = arith.constant 6 : index
      %c0_406 = arith.constant 0 : index
      %571 = vector.load %arg8[%c0_404, %c6_405, %c0_406] : memref<2x22x16xf32, #tpu.memory_space<vmem>>, vector<1x16x16xf32>
      %572 = vector.shape_cast %571 : vector<1x16x16xf32> to vector<16x16xf32>
      %c1_407 = arith.constant 1 : index
      %c6_408 = arith.constant 6 : index
      %c0_409 = arith.constant 0 : index
      %573 = vector.load %arg8[%c1_407, %c6_408, %c0_409] : memref<2x22x16xf32, #tpu.memory_space<vmem>>, vector<1x16x16xf32>
      %574 = vector.shape_cast %573 : vector<1x16x16xf32> to vector<16x16xf32>
      %c46 = arith.constant 46 : index
      %575 = memref.load %arg2[%c46] : memref<98xf32, #tpu.memory_space<smem>>
      %c95 = arith.constant 95 : index
      %576 = memref.load %arg2[%c95] : memref<98xf32, #tpu.memory_space<smem>>
      %577 = vector.broadcast %575 : f32 to vector<16x16xf32>
      %578 = arith.mulf %577, %572 : vector<16x16xf32>
      %579 = arith.addf %570, %578 : vector<16x16xf32>
      %580 = vector.broadcast %576 : f32 to vector<16x16xf32>
      %581 = arith.mulf %580, %574 : vector<16x16xf32>
      %582 = arith.addf %579, %581 : vector<16x16xf32>
      %c0_410 = arith.constant 0 : index
      %c0_411 = arith.constant 0 : index
      %c5_412 = arith.constant 5 : index
      %583 = vector.load %arg7[%c0_410, %c0_411, %c5_412] : memref<2x22x22xf32, #tpu.memory_space<vmem>>, vector<2x22x16xf32>
      %c0_413 = arith.constant 0 : index
      %c0_414 = arith.constant 0 : index
      %c0_415 = arith.constant 0 : index
      %584 = vector.load %arg8[%c0_413, %c0_414, %c0_415] : memref<2x22x16xf32, #tpu.memory_space<vmem>>, vector<2x22x16xf32>
      tpu.vector_store %arg8[%c0_413, %c0_414, %c0_415], %583 {strides = array<i32>} : memref<2x22x16xf32, #tpu.memory_space<vmem>>, vector<2x22x16xf32>,
      %c0_416 = arith.constant 0 : index
      %c0_417 = arith.constant 0 : index
      %c0_418 = arith.constant 0 : index
      %585 = vector.load %arg8[%c0_416, %c0_417, %c0_418] : memref<2x22x16xf32, #tpu.memory_space<vmem>>, vector<1x16x16xf32>
      %586 = vector.shape_cast %585 : vector<1x16x16xf32> to vector<16x16xf32>
      %c1_419 = arith.constant 1 : index
      %c0_420 = arith.constant 0 : index
      %c0_421 = arith.constant 0 : index
      %587 = vector.load %arg8[%c1_419, %c0_420, %c0_421] : memref<2x22x16xf32, #tpu.memory_space<vmem>>, vector<1x16x16xf32>
      %588 = vector.shape_cast %587 : vector<1x16x16xf32> to vector<16x16xf32>
      %c5_422 = arith.constant 5 : index
      %589 = memref.load %arg2[%c5_422] : memref<98xf32, #tpu.memory_space<smem>>
      %c54 = arith.constant 54 : index
      %590 = memref.load %arg2[%c54] : memref<98xf32, #tpu.memory_space<smem>>
      %591 = vector.broadcast %589 : f32 to vector<16x16xf32>
      %592 = arith.mulf %591, %586 : vector<16x16xf32>
      %593 = arith.addf %582, %592 : vector<16x16xf32>
      %594 = vector.broadcast %590 : f32 to vector<16x16xf32>
      %595 = arith.mulf %594, %588 : vector<16x16xf32>
      %596 = arith.addf %593, %595 : vector<16x16xf32>
      %c0_423 = arith.constant 0 : index
      %c1_424 = arith.constant 1 : index
      %c0_425 = arith.constant 0 : index
      %597 = vector.load %arg8[%c0_423, %c1_424, %c0_425] : memref<2x22x16xf32, #tpu.memory_space<vmem>>, vector<1x16x16xf32>
      %598 = vector.shape_cast %597 : vector<1x16x16xf32> to vector<16x16xf32>
      %c1_426 = arith.constant 1 : index
      %c1_427 = arith.constant 1 : index
      %c0_428 = arith.constant 0 : index
      %599 = vector.load %arg8[%c1_426, %c1_427, %c0_428] : memref<2x22x16xf32, #tpu.memory_space<vmem>>, vector<1x16x16xf32>
      %600 = vector.shape_cast %599 : vector<1x16x16xf32> to vector<16x16xf32>
      %c12_429 = arith.constant 12 : index
      %601 = memref.load %arg2[%c12_429] : memref<98xf32, #tpu.memory_space<smem>>
      %c61 = arith.constant 61 : index
      %602 = memref.load %arg2[%c61] : memref<98xf32, #tpu.memory_space<smem>>
      %603 = vector.broadcast %601 : f32 to vector<16x16xf32>
      %604 = arith.mulf %603, %598 : vector<16x16xf32>
      %605 = arith.addf %596, %604 : vector<16x16xf32>
      %606 = vector.broadcast %602 : f32 to vector<16x16xf32>
      %607 = arith.mulf %606, %600 : vector<16x16xf32>
      %608 = arith.addf %605, %607 : vector<16x16xf32>
      %c0_430 = arith.constant 0 : index
      %c2_431 = arith.constant 2 : index
      %c0_432 = arith.constant 0 : index
      %609 = vector.load %arg8[%c0_430, %c2_431, %c0_432] : memref<2x22x16xf32, #tpu.memory_space<vmem>>, vector<1x16x16xf32>
      %610 = vector.shape_cast %609 : vector<1x16x16xf32> to vector<16x16xf32>
      %c1_433 = arith.constant 1 : index
      %c2_434 = arith.constant 2 : index
      %c0_435 = arith.constant 0 : index
      %611 = vector.load %arg8[%c1_433, %c2_434, %c0_435] : memref<2x22x16xf32, #tpu.memory_space<vmem>>, vector<1x16x16xf32>
      %612 = vector.shape_cast %611 : vector<1x16x16xf32> to vector<16x16xf32>
      %c19 = arith.constant 19 : index
      %613 = memref.load %arg2[%c19] : memref<98xf32, #tpu.memory_space<smem>>
      %c68 = arith.constant 68 : index
      %614 = memref.load %arg2[%c68] : memref<98xf32, #tpu.memory_space<smem>>
      %615 = vector.broadcast %613 : f32 to vector<16x16xf32>
      %616 = arith.mulf %615, %610 : vector<16x16xf32>
      %617 = arith.addf %608, %616 : vector<16x16xf32>
      %618 = vector.broadcast %614 : f32 to vector<16x16xf32>
      %619 = arith.mulf %618, %612 : vector<16x16xf32>
      %620 = arith.addf %617, %619 : vector<16x16xf32>
      %c0_436 = arith.constant 0 : index
      %c3_437 = arith.constant 3 : index
      %c0_438 = arith.constant 0 : index
      %621 = vector.load %arg8[%c0_436, %c3_437, %c0_438] : memref<2x22x16xf32, #tpu.memory_space<vmem>>, vector<1x16x16xf32>
      %622 = vector.shape_cast %621 : vector<1x16x16xf32> to vector<16x16xf32>
      %c1_439 = arith.constant 1 : index
      %c3_440 = arith.constant 3 : index
      %c0_441 = arith.constant 0 : index
      %623 = vector.load %arg8[%c1_439, %c3_440, %c0_441] : memref<2x22x16xf32, #tpu.memory_space<vmem>>, vector<1x16x16xf32>
      %624 = vector.shape_cast %623 : vector<1x16x16xf32> to vector<16x16xf32>
      %c26 = arith.constant 26 : index
      %625 = memref.load %arg2[%c26] : memref<98xf32, #tpu.memory_space<smem>>
      %c75 = arith.constant 75 : index
      %626 = memref.load %arg2[%c75] : memref<98xf32, #tpu.memory_space<smem>>
      %627 = vector.broadcast %625 : f32 to vector<16x16xf32>
      %628 = arith.mulf %627, %622 : vector<16x16xf32>
      %629 = arith.addf %620, %628 : vector<16x16xf32>
      %630 = vector.broadcast %626 : f32 to vector<16x16xf32>
      %631 = arith.mulf %630, %624 : vector<16x16xf32>
      %632 = arith.addf %629, %631 : vector<16x16xf32>
      %c0_442 = arith.constant 0 : index
      %c4_443 = arith.constant 4 : index
      %c0_444 = arith.constant 0 : index
      %633 = vector.load %arg8[%c0_442, %c4_443, %c0_444] : memref<2x22x16xf32, #tpu.memory_space<vmem>>, vector<1x16x16xf32>
      %634 = vector.shape_cast %633 : vector<1x16x16xf32> to vector<16x16xf32>
      %c1_445 = arith.constant 1 : index
      %c4_446 = arith.constant 4 : index
      %c0_447 = arith.constant 0 : index
      %635 = vector.load %arg8[%c1_445, %c4_446, %c0_447] : memref<2x22x16xf32, #tpu.memory_space<vmem>>, vector<1x16x16xf32>
      %636 = vector.shape_cast %635 : vector<1x16x16xf32> to vector<16x16xf32>
      %c33 = arith.constant 33 : index
      %637 = memref.load %arg2[%c33] : memref<98xf32, #tpu.memory_space<smem>>
      %c82 = arith.constant 82 : index
      %638 = memref.load %arg2[%c82] : memref<98xf32, #tpu.memory_space<smem>>
      %639 = vector.broadcast %637 : f32 to vector<16x16xf32>
      %640 = arith.mulf %639, %634 : vector<16x16xf32>
      %641 = arith.addf %632, %640 : vector<16x16xf32>
      %642 = vector.broadcast %638 : f32 to vector<16x16xf32>
      %643 = arith.mulf %642, %636 : vector<16x16xf32>
      %644 = arith.addf %641, %643 : vector<16x16xf32>
      %c0_448 = arith.constant 0 : index
      %c5_449 = arith.constant 5 : index
      %c0_450 = arith.constant 0 : index
      %645 = vector.load %arg8[%c0_448, %c5_449, %c0_450] : memref<2x22x16xf32, #tpu.memory_space<vmem>>, vector<1x16x16xf32>
      %646 = vector.shape_cast %645 : vector<1x16x16xf32> to vector<16x16xf32>
      %c1_451 = arith.constant 1 : index
      %c5_452 = arith.constant 5 : index
      %c0_453 = arith.constant 0 : index
      %647 = vector.load %arg8[%c1_451, %c5_452, %c0_453] : memref<2x22x16xf32, #tpu.memory_space<vmem>>, vector<1x16x16xf32>
      %648 = vector.shape_cast %647 : vector<1x16x16xf32> to vector<16x16xf32>
      %c40 = arith.constant 40 : index
      %649 = memref.load %arg2[%c40] : memref<98xf32, #tpu.memory_space<smem>>
      %c89 = arith.constant 89 : index
      %650 = memref.load %arg2[%c89] : memref<98xf32, #tpu.memory_space<smem>>
      %651 = vector.broadcast %649 : f32 to vector<16x16xf32>
      %652 = arith.mulf %651, %646 : vector<16x16xf32>
      %653 = arith.addf %644, %652 : vector<16x16xf32>
      %654 = vector.broadcast %650 : f32 to vector<16x16xf32>
      %655 = arith.mulf %654, %648 : vector<16x16xf32>
      %656 = arith.addf %653, %655 : vector<16x16xf32>
      %c0_454 = arith.constant 0 : index
      %c6_455 = arith.constant 6 : index
      %c0_456 = arith.constant 0 : index
      %657 = vector.load %arg8[%c0_454, %c6_455, %c0_456] : memref<2x22x16xf32, #tpu.memory_space<vmem>>, vector<1x16x16xf32>
      %658 = vector.shape_cast %657 : vector<1x16x16xf32> to vector<16x16xf32>
      %c1_457 = arith.constant 1 : index
      %c6_458 = arith.constant 6 : index
      %c0_459 = arith.constant 0 : index
      %659 = vector.load %arg8[%c1_457, %c6_458, %c0_459] : memref<2x22x16xf32, #tpu.memory_space<vmem>>, vector<1x16x16xf32>
      %660 = vector.shape_cast %659 : vector<1x16x16xf32> to vector<16x16xf32>
      %c47 = arith.constant 47 : index
      %661 = memref.load %arg2[%c47] : memref<98xf32, #tpu.memory_space<smem>>
      %c96_460 = arith.constant 96 : index
      %662 = memref.load %arg2[%c96_460] : memref<98xf32, #tpu.memory_space<smem>>
      %663 = vector.broadcast %661 : f32 to vector<16x16xf32>
      %664 = arith.mulf %663, %658 : vector<16x16xf32>
      %665 = arith.addf %656, %664 : vector<16x16xf32>
      %666 = vector.broadcast %662 : f32 to vector<16x16xf32>
      %667 = arith.mulf %666, %660 : vector<16x16xf32>
      %668 = arith.addf %665, %667 : vector<16x16xf32>
      %c0_461 = arith.constant 0 : index
      %c0_462 = arith.constant 0 : index
      %c6_463 = arith.constant 6 : index
      %669 = vector.load %arg7[%c0_461, %c0_462, %c6_463] : memref<2x22x22xf32, #tpu.memory_space<vmem>>, vector<2x22x16xf32>
      %c0_464 = arith.constant 0 : index
      %c0_465 = arith.constant 0 : index
      %c0_466 = arith.constant 0 : index
      %670 = vector.load %arg8[%c0_464, %c0_465, %c0_466] : memref<2x22x16xf32, #tpu.memory_space<vmem>>, vector<2x22x16xf32>
      tpu.vector_store %arg8[%c0_464, %c0_465, %c0_466], %669 {strides = array<i32>} : memref<2x22x16xf32, #tpu.memory_space<vmem>>, vector<2x22x16xf32>,
      %c0_467 = arith.constant 0 : index
      %c0_468 = arith.constant 0 : index
      %c0_469 = arith.constant 0 : index
      %671 = vector.load %arg8[%c0_467, %c0_468, %c0_469] : memref<2x22x16xf32, #tpu.memory_space<vmem>>, vector<1x16x16xf32>
      %672 = vector.shape_cast %671 : vector<1x16x16xf32> to vector<16x16xf32>
      %c1_470 = arith.constant 1 : index
      %c0_471 = arith.constant 0 : index
      %c0_472 = arith.constant 0 : index
      %673 = vector.load %arg8[%c1_470, %c0_471, %c0_472] : memref<2x22x16xf32, #tpu.memory_space<vmem>>, vector<1x16x16xf32>
      %674 = vector.shape_cast %673 : vector<1x16x16xf32> to vector<16x16xf32>
      %c6_473 = arith.constant 6 : index
      %675 = memref.load %arg2[%c6_473] : memref<98xf32, #tpu.memory_space<smem>>
      %c55 = arith.constant 55 : index
      %676 = memref.load %arg2[%c55] : memref<98xf32, #tpu.memory_space<smem>>
      %677 = vector.broadcast %675 : f32 to vector<16x16xf32>
      %678 = arith.mulf %677, %672 : vector<16x16xf32>
      %679 = arith.addf %668, %678 : vector<16x16xf32>
      %680 = vector.broadcast %676 : f32 to vector<16x16xf32>
      %681 = arith.mulf %680, %674 : vector<16x16xf32>
      %682 = arith.addf %679, %681 : vector<16x16xf32>
      %c0_474 = arith.constant 0 : index
      %c1_475 = arith.constant 1 : index
      %c0_476 = arith.constant 0 : index
      %683 = vector.load %arg8[%c0_474, %c1_475, %c0_476] : memref<2x22x16xf32, #tpu.memory_space<vmem>>, vector<1x16x16xf32>
      %684 = vector.shape_cast %683 : vector<1x16x16xf32> to vector<16x16xf32>
      %c1_477 = arith.constant 1 : index
      %c1_478 = arith.constant 1 : index
      %c0_479 = arith.constant 0 : index
      %685 = vector.load %arg8[%c1_477, %c1_478, %c0_479] : memref<2x22x16xf32, #tpu.memory_space<vmem>>, vector<1x16x16xf32>
      %686 = vector.shape_cast %685 : vector<1x16x16xf32> to vector<16x16xf32>
      %c13_480 = arith.constant 13 : index
      %687 = memref.load %arg2[%c13_480] : memref<98xf32, #tpu.memory_space<smem>>
      %c62 = arith.constant 62 : index
      %688 = memref.load %arg2[%c62] : memref<98xf32, #tpu.memory_space<smem>>
      %689 = vector.broadcast %687 : f32 to vector<16x16xf32>
      %690 = arith.mulf %689, %684 : vector<16x16xf32>
      %691 = arith.addf %682, %690 : vector<16x16xf32>
      %692 = vector.broadcast %688 : f32 to vector<16x16xf32>
      %693 = arith.mulf %692, %686 : vector<16x16xf32>
      %694 = arith.addf %691, %693 : vector<16x16xf32>
      %c0_481 = arith.constant 0 : index
      %c2_482 = arith.constant 2 : index
      %c0_483 = arith.constant 0 : index
      %695 = vector.load %arg8[%c0_481, %c2_482, %c0_483] : memref<2x22x16xf32, #tpu.memory_space<vmem>>, vector<1x16x16xf32>
      %696 = vector.shape_cast %695 : vector<1x16x16xf32> to vector<16x16xf32>
      %c1_484 = arith.constant 1 : index
      %c2_485 = arith.constant 2 : index
      %c0_486 = arith.constant 0 : index
      %697 = vector.load %arg8[%c1_484, %c2_485, %c0_486] : memref<2x22x16xf32, #tpu.memory_space<vmem>>, vector<1x16x16xf32>
      %698 = vector.shape_cast %697 : vector<1x16x16xf32> to vector<16x16xf32>
      %c20 = arith.constant 20 : index
      %699 = memref.load %arg2[%c20] : memref<98xf32, #tpu.memory_space<smem>>
      %c69 = arith.constant 69 : index
      %700 = memref.load %arg2[%c69] : memref<98xf32, #tpu.memory_space<smem>>
      %701 = vector.broadcast %699 : f32 to vector<16x16xf32>
      %702 = arith.mulf %701, %696 : vector<16x16xf32>
      %703 = arith.addf %694, %702 : vector<16x16xf32>
      %704 = vector.broadcast %700 : f32 to vector<16x16xf32>
      %705 = arith.mulf %704, %698 : vector<16x16xf32>
      %706 = arith.addf %703, %705 : vector<16x16xf32>
      %c0_487 = arith.constant 0 : index
      %c3_488 = arith.constant 3 : index
      %c0_489 = arith.constant 0 : index
      %707 = vector.load %arg8[%c0_487, %c3_488, %c0_489] : memref<2x22x16xf32, #tpu.memory_space<vmem>>, vector<1x16x16xf32>
      %708 = vector.shape_cast %707 : vector<1x16x16xf32> to vector<16x16xf32>
      %c1_490 = arith.constant 1 : index
      %c3_491 = arith.constant 3 : index
      %c0_492 = arith.constant 0 : index
      %709 = vector.load %arg8[%c1_490, %c3_491, %c0_492] : memref<2x22x16xf32, #tpu.memory_space<vmem>>, vector<1x16x16xf32>
      %710 = vector.shape_cast %709 : vector<1x16x16xf32> to vector<16x16xf32>
      %c27 = arith.constant 27 : index
      %711 = memref.load %arg2[%c27] : memref<98xf32, #tpu.memory_space<smem>>
      %c76 = arith.constant 76 : index
      %712 = memref.load %arg2[%c76] : memref<98xf32, #tpu.memory_space<smem>>
      %713 = vector.broadcast %711 : f32 to vector<16x16xf32>
      %714 = arith.mulf %713, %708 : vector<16x16xf32>
      %715 = arith.addf %706, %714 : vector<16x16xf32>
      %716 = vector.broadcast %712 : f32 to vector<16x16xf32>
      %717 = arith.mulf %716, %710 : vector<16x16xf32>
      %718 = arith.addf %715, %717 : vector<16x16xf32>
      %c0_493 = arith.constant 0 : index
      %c4_494 = arith.constant 4 : index
      %c0_495 = arith.constant 0 : index
      %719 = vector.load %arg8[%c0_493, %c4_494, %c0_495] : memref<2x22x16xf32, #tpu.memory_space<vmem>>, vector<1x16x16xf32>
      %720 = vector.shape_cast %719 : vector<1x16x16xf32> to vector<16x16xf32>
      %c1_496 = arith.constant 1 : index
      %c4_497 = arith.constant 4 : index
      %c0_498 = arith.constant 0 : index
      %721 = vector.load %arg8[%c1_496, %c4_497, %c0_498] : memref<2x22x16xf32, #tpu.memory_space<vmem>>, vector<1x16x16xf32>
      %722 = vector.shape_cast %721 : vector<1x16x16xf32> to vector<16x16xf32>
      %c34 = arith.constant 34 : index
      %723 = memref.load %arg2[%c34] : memref<98xf32, #tpu.memory_space<smem>>
      %c83 = arith.constant 83 : index
      %724 = memref.load %arg2[%c83] : memref<98xf32, #tpu.memory_space<smem>>
      %725 = vector.broadcast %723 : f32 to vector<16x16xf32>
      %726 = arith.mulf %725, %720 : vector<16x16xf32>
      %727 = arith.addf %718, %726 : vector<16x16xf32>
      %728 = vector.broadcast %724 : f32 to vector<16x16xf32>
      %729 = arith.mulf %728, %722 : vector<16x16xf32>
      %730 = arith.addf %727, %729 : vector<16x16xf32>
      %c0_499 = arith.constant 0 : index
      %c5_500 = arith.constant 5 : index
      %c0_501 = arith.constant 0 : index
      %731 = vector.load %arg8[%c0_499, %c5_500, %c0_501] : memref<2x22x16xf32, #tpu.memory_space<vmem>>, vector<1x16x16xf32>
      %732 = vector.shape_cast %731 : vector<1x16x16xf32> to vector<16x16xf32>
      %c1_502 = arith.constant 1 : index
      %c5_503 = arith.constant 5 : index
      %c0_504 = arith.constant 0 : index
      %733 = vector.load %arg8[%c1_502, %c5_503, %c0_504] : memref<2x22x16xf32, #tpu.memory_space<vmem>>, vector<1x16x16xf32>
      %734 = vector.shape_cast %733 : vector<1x16x16xf32> to vector<16x16xf32>
      %c41 = arith.constant 41 : index
      %735 = memref.load %arg2[%c41] : memref<98xf32, #tpu.memory_space<smem>>
      %c90 = arith.constant 90 : index
      %736 = memref.load %arg2[%c90] : memref<98xf32, #tpu.memory_space<smem>>
      %737 = vector.broadcast %735 : f32 to vector<16x16xf32>
      %738 = arith.mulf %737, %732 : vector<16x16xf32>
      %739 = arith.addf %730, %738 : vector<16x16xf32>
      %740 = vector.broadcast %736 : f32 to vector<16x16xf32>
      %741 = arith.mulf %740, %734 : vector<16x16xf32>
      %742 = arith.addf %739, %741 : vector<16x16xf32>
      %c0_505 = arith.constant 0 : index
      %c6_506 = arith.constant 6 : index
      %c0_507 = arith.constant 0 : index
      %743 = vector.load %arg8[%c0_505, %c6_506, %c0_507] : memref<2x22x16xf32, #tpu.memory_space<vmem>>, vector<1x16x16xf32>
      %744 = vector.shape_cast %743 : vector<1x16x16xf32> to vector<16x16xf32>
      %c1_508 = arith.constant 1 : index
      %c6_509 = arith.constant 6 : index
      %c0_510 = arith.constant 0 : index
      %745 = vector.load %arg8[%c1_508, %c6_509, %c0_510] : memref<2x22x16xf32, #tpu.memory_space<vmem>>, vector<1x16x16xf32>
      %746 = vector.shape_cast %745 : vector<1x16x16xf32> to vector<16x16xf32>
      %c48_511 = arith.constant 48 : index
      %747 = memref.load %arg2[%c48_511] : memref<98xf32, #tpu.memory_space<smem>>
      %c97 = arith.constant 97 : index
      %748 = memref.load %arg2[%c97] : memref<98xf32, #tpu.memory_space<smem>>
      %749 = vector.broadcast %747 : f32 to vector<16x16xf32>
      %750 = arith.mulf %749, %744 : vector<16x16xf32>
      %751 = arith.addf %742, %750 : vector<16x16xf32>
      %752 = vector.broadcast %748 : f32 to vector<16x16xf32>
      %753 = arith.mulf %752, %746 : vector<16x16xf32>
      %754 = arith.addf %751, %753 : vector<16x16xf32>
      %755 = arith.negf %754 : vector<16x16xf32>
      %756 = math.exp %755 : vector<16x16xf32>
      %cst_512 = arith.constant 1.000000e+00 : f32
      %757 = vector.broadcast %cst_512 : f32 to vector<16x16xf32>
      %758 = arith.addf %757, %756 : vector<16x16xf32>
      %759 = arith.divf %757, %758 : vector<16x16xf32>
      %c0_513 = arith.constant 0 : index
      %c0_514 = arith.constant 0 : index
      %c0_515 = arith.constant 0 : index
      %c0_516 = arith.constant 0 : index
      %760 = vector.load %arg4[%c0_513, %c0_514, %c0_515, %c0_516] : memref<1x1x16x16xf32, #tpu.memory_space<vmem>>, vector<1x1x16x16xf32>
      %761 = vector.shape_cast %760 : vector<1x1x16x16xf32> to vector<16x16xf32>
      %762 = vector.shape_cast %759 : vector<16x16xf32> to vector<1x1x16x16xf32>
      tpu.vector_store %arg4[%c0_513, %c0_514, %c0_515, %c0_516], %762 {strides = array<i32>} : memref<1x1x16x16xf32, #tpu.memory_space<vmem>>, vector<1x1x16x16xf32>,
    } else {
    }
    return
  }
  func.func @transform_0(%arg0: i32, %arg1: i32) -> i32 {
    %c0_i32 = arith.constant 0 : i32
    %c0_i32_0 = arith.constant 0 : i32
    return %c0_i32 : i32
  }
  func.func @transform_1(%arg0: i32, %arg1: i32) -> (i32, i32, i32) {
    %c0_i32 = arith.constant 0 : i32
    %c0_i32_0 = arith.constant 0 : i32
    return %arg0, %arg1, %c0_i32 : i32, i32, i32
  }
  func.func @transform_2(%arg0: i32, %arg1: i32) -> (i32, i32, i32, i32) {
    %c0_i32 = arith.constant 0 : i32
    %c0_i32_0 = arith.constant 0 : i32
    %c0_i32_1 = arith.constant 0 : i32
    %c0_i32_2 = arith.constant 0 : i32
    return %arg0, %c0_i32, %c0_i32_0, %c0_i32_1 : i32, i32, i32, i32
  }
}

</mosaic_0001>

<bundles_post_ra>
// kernel: tpu_custom_call.1
= control target key start
LH: loop header
LB: loop body
LE: loop exit
PB: predicated region body
PF: predicated region fallthrough
CT: control target
= control target key end

     0   :  { %7 = vsyncpa [#allocation9], 0  ;;  %s3382_s0 = inlined_call_operand.hbm [shape: f32[98], index: 0, kind: input, shape index: {}]   ;;  %s3383_s1 = inlined_call_operand.hbm [shape: f32[2,4,256], index: 1, kind: input, shape index: {}]   ;;  %s3384_s2 = inlined_call_operand.hbm [shape: f32[2,1,16,16], index: 2, kind: output, shape index: {}]  }
   0x1   :  { %8 = vsyncpa [#allocation7], 0 }
   0x2   :  { %10 = vsyncpa [#allocation7 + $0x1], 0 }
   0x3   :  { %11 = vsyncpa [#allocation8], 0 }
   0x4   :  { %13 = vsyncpa [#allocation8 + $0x1], 0  ;;  %s2171_s9 = smov 0   ;;  %s2173_s10 = smov 0  }
   0x5   :  { %s2175_s11 = smov 0   ;;  %s2177_s12 = smov 0  }
   0x6   :  { %s2179_s13 = smov 0   ;;  %s2181_s14 = smov 0  }
   0x7 LB: > { %s1752_s15 = sadd.s32 4294967295, %s2132_s14   ;;  %s1753_s16 = sadd.s32 4294967294, %s2132_s14   ;;  %s2132_s14 = sphi %s2181_s14, %s19_s14   ;;  %s2128_s13 = sphi %s2179_s13, %s3496_s13   ;;  %s2124_s12 = sphi %s2177_s12, %s3495_s12   ;;  %s2120_s11 = sphi %s2175_s11, %s3494_s11   ;;  %s2116_s10 = sphi %s2173_s10, %s3493_s10   ;;  %s2112_s9 = sphi %s2171_s9, %s3492_s9  }
   0x8   : > { %p74_p0 = scmp.ne.s32.totalorder %s2116_s10, %s2112_s9  ;;  %p2205_p1 = scmp.eq.s32.totalorder %s1752_s15, 0 }
   0x9   : > { %p2209_p2 = scmp.eq.s32.totalorder %s1752_s15, 1  ;;  %p104_p3 = scmp.eq.s32.totalorder %s1753_s16, 1 }
   0xa   : > { %s3405_s17 = scalar_select %p2205_p1, 1, 0 }
   0xb   : > { %p2215_p4 = por %p2205_p1, %p74_p0  ;;  %p1754_p5 = scmp.ge.s32.totalorder %s2132_s14, 1 }
   0xc   : > { %p2220_p6 = por %p104_p3, %p74_p0  ;;  %p111_p7 = scmp.lt.s32.totalorder %s2132_s14, 3 }
   0xd   : > { %s3407_s19 = scalar_select %p2215_p4, 1, 0 }
   0xe   : > { %s3408_s20 = scalar_select %p2220_p6, 1, 0 }
   0xf   : > { %p2225_p8 = pnand %p1754_p5, %p111_p7  ;;  %s31_s22 = sadd.s32 1, %s2128_s13 }
  0x10   : > { %p2239_p12 = scmp.ge.s32.totalorder %s31_s22, 2  ;;  %s61_s25 = sadd.s32 1, %s2120_s11 }
  0x11   : > { %p1910_p10 = pneg %p2225_p8  ;;  %p68_p13 = scmp.ne.s32.totalorder %s2120_s11, %s2116_s10 }
  0x12   : > { %p69_p0 = scmp.eq.s32.totalorder %s2132_s14, 0  ;;  %s2003_s28 = scalar_lea.hbm %s3382_s0, 16 }
  0x13   : > { %p2235_p11 = pnand %p1910_p10, %p2205_p1  ;;  %p2004_p3 = scmp.ne.s32.totalorder %s3382_s0, %s2003_s28 }
  0x14   : > { %p2010_p9 = scmp.lt.u32.totalorder %s2003_s28, %s3382_s0 }
  0x15   : > { %p2005_p5 = pneg %p2235_p11 }
  0x17   : > { %p2006_p7 = pnand %p2005_p5, %p2004_p3 }
  0x19   : > { %p2007_p10 = pneg %p2006_p7 }
  0x1b   : > { %p2012_p6 = pnand %p2010_p9, %p2007_p10 }
  0x1d   : > { %2015 = shalt.err (!%p2012_p6)
}
  0x1e   : > { %s2134_s5 = smov [#allocation6]   ;;  %s3498_s22 = smov (%p2239_p12, %s31_s22), 0 }
  0x1f   : > { %1913 = dma.hbm_to_smem (!%p2235_p11), %s3382_s0, 16, %s2134_s5, [#allocation9]  }
  0x20   : > { %p2270_p6 = por %p69_p0, %p68_p13  ;;  %p2279_p9 = por %p2209_p2, %p68_p13 }
  0x21   : > { %s56_s16 = ssub.s32 %s2128_s13, %s3498_s22  ;;  %p1923_p3 = scmp.lt.s32.totalorder %s2132_s14, 2 }
  0x22   : > { %s3413_s15 = scalar_select %p2279_p9, 1, 0 }
  0x23   : > { %p59_p5 = scmp.eq.s32.totalorder %s56_s16, 0  ;;  %s133_s23 = sand.u32 1, %s2120_s11  }
  0x24   : > { %s1757_s24 = sshll.u32 %s133_s23, 3  ;;  %s1900_s27 = sshll.u32 %s2128_s13, 7 }
  0x25   : > { %s2288_s26 = scalar_select %p59_p5, %s2120_s11, %s61_s25  }
  0x26   : > { %s2294_s30 = scalar_lea.hbm %s3383_s1, %s1900_s27  ;;  %s137_s18 = scalar_lea.vmem [#allocation10], %s1757_s24 }
  0x27   : > { %s147_s3 = sshll.u32 %s137_s18, 4  ;;  %p2300_p2 = pnand %p1923_p3, %p2270_p6  ;;  %s2296_s3 = int_to_ptr.vmem [resolvable:$true] %s147_s3 }
  0x28   : > { %s134_s25 = scalar_lea.sflag [#allocation7], %s133_s23  ;;  %s2016_s5 = scalar_lea.hbm %s2294_s30, 128 }
  0x29   : > { %p2017_p11 = scmp.ne.s32.totalorder %s2294_s30, %s2016_s5  ;;  %p2018_p12 = pneg %p2300_p2 }
  0x2a   : > { %s2021_s16 = scalar_lea.hbm %s3383_s1, 256  ;;  %p2022_p7 = scmp.lt.u32.totalorder %s2294_s30, %s3383_s1 }
  0x2b   : > { %p2019_p13 = pnand %p2018_p12, %p2017_p11  ;;  %p2023_p10 = scmp.lt.u32.totalorder %s2021_s16, %s2016_s5 }
  0x2c   : > { %p2025_p3 = scmp.lt.u32.totalorder %s2016_s5, %s2294_s30 }
  0x2d   : > { %p2020_p0 = pneg %p2019_p13  ;;  %p2024_p6 = por %p2023_p10, %p2022_p7 }
  0x2f   : > { %p2026_p5 = por %p2025_p3, %p2024_p6 }
  0x31   : > { %p2027_p9 = pnand %p2026_p5, %p2020_p0 }
  0x33   : > { %2030 = shalt.err (!%p2027_p9)
}
  0x34   : > { %s2031_s23 = scalar_lea.vmem %s2296_s3, 128  ;;  %s2135_s27 = smov [#allocation10]  }
  0x35   : > { %p2032_p11 = scmp.ne.s32.totalorder %s2296_s3, %s2031_s23  ;;  %s2036_s28 = sshll.u32 %s2135_s27, 4  ;;  %s2037_s28 = int_to_ptr.vmem [resolvable:$false] %s2036_s28 }
  0x36   : > { %s2038_s29 = scalar_lea.vmem %s2037_s28, 256  ;;  %p2039_p1 = scmp.lt.s32.totalorder %s2296_s3, %s2037_s28 }
  0x37   : > { %p2034_p13 = pnand %p2032_p11, %p2018_p12  ;;  %p2040_p7 = scmp.lt.s32.totalorder %s2038_s29, %s2031_s23 }
  0x39   : > { %p2035_p4 = pneg %p2034_p13  ;;  %p2041_p10 = por %p2040_p7, %p2039_p1 }
  0x3b   : > { %p2042_p6 = pnand %p2041_p10, %p2035_p4 }
  0x3d   : > { %2045 = shalt.err (!%p2042_p6)
}
  0x3e   : > { %1917 = dma.hbm_to_vmem [thread:$0]  (!%p2300_p2), %s2294_s30, 128, %s2296_s3, %s134_s25  }
  0x3f   : > { %156 = sbr.rel (%p2225_p8) target bundleno = 636 (0x27c), region = 28 }
  0x46   : > { %p3415_p9 = scmp.ne.s32.totalorder %s3405_s17, 0 }
  0x48   : > { %2099 = dma.done.wait (%p3415_p9), [#allocation9], 16  }
  0x49   : > { %2101 = vsyncadd (%p3415_p9), [#allocation9], 4294967280  ;;  %s2336_s18 = sand.u32 1, %s2116_s10   ;;  %p3416_p1 = scmp.ne.s32.totalorder %s3407_s19, 0 }
  0x4a   : > { %s1762_s5 = sshll.u32 %s2336_s18, 3  ;;  %s163_s4 = scalar_lea.sflag [#allocation7], %s2336_s18 }
  0x4b   : > { %s166_s6 = scalar_lea.vmem [#allocation10], %s1762_s5 }
  0x4c   : > { %2103 = dma.done.wait (%p3416_p1), %s163_s4, 128  }
  0x4d   : > { %2105 = vsyncadd (%p3416_p1), %s163_s4, 4294967168 }
  0x4e   : > { %171 = sfence }
  0x4f   : > { %v188_v0 = vld [vmem:[%s166_s6] sm:$0xff]  ;;  %vm192_vm0 = vcmask 1043456   ;;  %v225_v1 = vlaneseq  ;;  %v2136_v9 = vmov -inf   ;;  %v2137_v15 = vmov 0.0   ;;  %s2139_s17 = smov 115   ;;  %s2140_s19 = smov 3  }
  0x50   : > { %v190_v2 = vcombine.high %v188_v0, %v188_v0  ;;  %v193_v3 = vsel %vm192_vm0, %v188_v0, 0.0  ;;  %v207_v4 = vsel %vm192_vm0, %v188_v0, -inf  ;;  %v2138_v16 = vmov 1966171168   ;;  %s2141_s21 = smov 83   ;;  %s2142_s30 = smov 99  }
  0x51   : > { %v194_v5 = vrot.slane %v193_v3, 4  ;;  %v208_v6 = vrot.slane %v207_v4, 4  ;;  %vm2344_vm1 = vcmp.lt.s32.totalorder %v225_v1, 256  ;;  %v236_v17 = vunpack.c.l.s4 %v2138_v16  ;;  %s2143_s3 = smov 51   ;;  %s2144_s25 = smov 67  }
  0x52   : > { %v214_v8 = vsel %vm192_vm0, %v190_v2, -inf  ;;  %230 = vst.msk [vmem:[#allocation3] sm:$0x3] %vm2344_vm1, %v2136_v9  ;;  %v200_v10 = vsel %vm192_vm0, %v190_v2, 0.0  ;;  %229 = vst.msk [vmem:[#allocation2] sm:$0x3] %vm2344_vm1, %v2137_v15 }
  0x53   : > { %v209_v11 = vmax.f32 %v207_v4, %v208_v6  ;;  %v215_v12 = vrot.slane %v214_v8, 4  ;;  %v201_v13 = vrot.slane %v200_v10, 4  ;;  %v195_v14 = vadd.f32 %v194_v5, %v193_v3  ;;  %s2145_s7 = smov 19   ;;  %s2146_s16 = smov 35  }
  0x54   : > { %vm283_vm2 = vcmask 179200   ;;  %v237_v26 = vunpack.c.0.s8 %v236_v17  ;;  %v239_v27 = vshrl.u32 %v225_v1, 7  ;;  %vm286_vm3 = vcmask 177152   ;;  %s2147_s8 = smov 127   ;;  %s2148_s24 = smov 126  }
  0x55   : > { %v210_v18 = vrot.slane %v209_v11, 2  ;;  %v216_v19 = vmax.f32 %v214_v8, %v215_v12  ;;  %v196_v20 = vrot.slane %v195_v14, 2  ;;  %v202_v21 = vadd.f32 %v201_v13, %v200_v10  ;;  %288 = vst.msk [vmem:[#allocation4 + $0x18] sm:$0xff] %vm283_vm2, %v2137_v15  ;;  %284 = vst.msk [vmem:[#allocation4] sm:$0xff] %vm283_vm2, %v2137_v15  ;;  %s2149_s23 = smov 125   ;;  %s2150_s27 = smov 124  }
  0x56   : > { %285 = vst.msk [vmem:[#allocation4 + $0x8] sm:$0xff] %vm283_vm2, %v2137_v15  ;;  %289 = vst.msk [vmem:[#allocation4 + $0x20] sm:$0xff] %vm283_vm2, %v2137_v15  ;;  %v240_v37 = vsub.s32 %v237_v26, %v239_v27  ;;  %vm300_vm4 = vcmask 147480   ;;  %vm619_vm5 = vcmask 130048   ;;  %vm622_vm6 = vcmask 128000   ;;  %s2151_s28 = smov 123  }
  0x57   : > { %v211_v22 = vmax.f32 %v209_v11, %v210_v18  ;;  %v217_v23 = vrot.slane %v216_v19, 2  ;;  %v197_v24 = vadd.f32 %v196_v20, %v195_v14  ;;  %v203_v25 = vrot.slane %v202_v21, 2  ;;  %287 = vst.msk [vmem:[#allocation4 + $0x10] sm:$0x3f] %vm286_vm3, %v2137_v15  ;;  %290 = vst.msk [vmem:[#allocation4 + $0x28] sm:$0x3f] %vm286_vm3, %v2137_v15 }
  0x58   : > { %s2465_s29 = sld [smem:[#allocation6]]  ;;  %s2467_s5 = sld [smem:[#allocation6 + $0x31]] }
  0x59   : > { %v212_v28 = vrot.slane %v211_v22, 1  ;;  %v218_v29 = vmax.f32 %v216_v19, %v217_v23  ;;  %v198_v30 = vrot.slane %v197_v24, 1  ;;  %v204_v31 = vadd.f32 %v203_v25, %v202_v21  ;;  %v256_v43 = vld [vmem:[#allocation3] sm:$0x3]  ;;  %v231_v44 = vld [vmem:[#allocation2] sm:$0x3] }
  0x5a   : > { %s2469_s4 = sld [smem:[#allocation6 + $0x7]]  ;;  %s2152_s6 = smov 122  }
  0x5b   : > { %v213_v32 = vmax.f32 %v211_v22, %v212_v28  ;;  %v219_v33 = vrot.slane %v218_v29, 1  ;;  %v199_v34 = vadd.f32 %v198_v30, %v197_v24  ;;  %v205_v35 = vrot.slane %v204_v31, 1  ;;  %p3489_p8 = scmp.ne.s32.totalorder %s3413_s15, 0 }
  0x5d   : > { %v220_v36 = vmax.f32 %v218_v29, %v219_v33  ;;  %v206_v38 = vadd.f32 %v205_v35, %v204_v31 }
  0x5f   : > { %v259_v39 = vcombine.low %v213_v32, %v220_v36  ;;  %v234_v40 = vcombine.low %v199_v34, %v206_v38 }
  0x61   : > { %v266_v41 = vrot.slane %v259_v39, %v240_v37  ;;  %v241_v42 = vrot.slane %v234_v40, %v240_v37  ;;  %v634_v40 = vstv %s2465_s29  ;;  %s2522_s29 = sld [smem:[#allocation6 + $0x8]] }
  0x63   : > { %v273_v45 = vrot.slane %v266_v41, %v240_v37  ;;  %v248_v46 = vrot.slane %v241_v42, %v240_v37  ;;  %v639_v42 = vstv %s2467_s5  ;;  %s2526_s5 = sld [smem:[#allocation6 + $0x39]] }
  0x65   : > { %v275_v47 = vmax.f32 %v256_v43, %v273_v45  ;;  %v250_v48 = vadd.f32 %v248_v46, %v231_v44  ;;  %v650_v44 = vstv %s2469_s4  ;;  %s2529_s4 = sld [smem:[#allocation6 + $0xf]] }
  0x67   : > { %276 = vst.msk [vmem:[#allocation3] sm:$0x3] %vm2344_vm1, %v275_v47  ;;  %255 = vst.msk [vmem:[#allocation2] sm:$0x3] %vm2344_vm1, %v250_v48 }
  0x6e   : > { %v1767_v49 = vld [vmem:[#allocation3] ss:$0 sm:$0xff]  ;;  %v280_v50 = vld [vmem:[#allocation2] sm:$0x3]  ;;  %v1781_v52 = vld [vmem:[#allocation3 + $0x1] ss:$0 sm:$0xff] }
  0x6f   : > { %329 = vrot.lane.b32.xlu0 %v1767_v49, %s2139_s17  ;;  %308 = vrot.lane.b32.xlu1 %v1767_v49, %s2140_s19  ;;  %v281_v51 = vmul.f32 0.25, %v280_v50 }
  0x71   : > { %282 = vst.msk [vmem:[#allocation2] sm:$0x3] %vm2344_vm1, %v281_v51 }
  0x73   : > { %369 = vrot.lane.b32.xlu0 %v1767_v49, %s2141_s21  ;;  %349 = vrot.lane.b32.xlu1 %v1767_v49, %s2142_s30 }
  0x77   : > { %409 = vrot.lane.b32.xlu0 %v1767_v49, %s2143_s3  ;;  %389 = vrot.lane.b32.xlu1 %v1767_v49, %s2144_s25 }
  0x78   : > { %v1764_v53 = vld [vmem:[#allocation2] ss:$0 sm:$0xff]  ;;  %v1780_v54 = vld [vmem:[#allocation2 + $0x1] ss:$0 sm:$0xff] }
  0x7b   : > { %449 = vrot.lane.b32.xlu0 %v1767_v49, %s2145_s7  ;;  %429 = vrot.lane.b32.xlu1 %v1767_v49, %s2146_s16 }
  0x7f   : > { %469 = vrot.lane.b32.xlu1 %v1781_v52, %s2140_s19  ;;  %297 = vrot.lane.b32.xlu0 %v1764_v53, %s2140_s19 }
  0x83   : > { %339 = vrot.lane.b32.xlu1 %v1764_v53, %s2142_s30  ;;  %319 = vrot.lane.b32.xlu0 %v1764_v53, %s2139_s17 }
  0x87   : > { %359 = vrot.lane.b32.xlu1 %v1764_v53, %s2141_s21  ;;  %379 = vrot.lane.b32.xlu0 %v1764_v53, %s2144_s25 }
  0x8b   : > { %399 = vrot.lane.b32.xlu1 %v1764_v53, %s2143_s3  ;;  %419 = vrot.lane.b32.xlu0 %v1764_v53, %s2146_s16 }
  0x8f   : > { %439 = vrot.lane.b32.xlu1 %v1764_v53, %s2145_s7  ;;  %459 = vrot.lane.b32.xlu0 %v1780_v54, %s2140_s19  ;;  %s2479_s19 = sld [smem:[#allocation6 + $0xe]] }
  0x93   : > { %479 = vrot.lane.b32.xlu1 %v1780_v54, %s2139_s17  ;;  %499 = vrot.lane.b32.xlu0 %v1780_v54, %s2142_s30 }
  0x97   : > { %519 = vrot.lane.b32.xlu1 %v1780_v54, %s2141_s21  ;;  %539 = vrot.lane.b32.xlu0 %v1780_v54, %s2144_s25 }
  0x9b   : > { %509 = vrot.lane.b32.xlu1 %v1781_v52, %s2142_s30  ;;  %489 = vrot.lane.b32.xlu0 %v1781_v52, %s2139_s17  ;;  %s2472_s17 = sld [smem:[#allocation6 + $0x38]]  ;;  %s2490_s30 = sld [smem:[#allocation6 + $0x15]] }
  0x9f   : > { %549 = vrot.lane.b32.xlu1 %v1781_v52, %s2144_s25  ;;  %529 = vrot.lane.b32.xlu0 %v1781_v52, %s2141_s21  ;;  %s2483_s21 = sld [smem:[#allocation6 + $0x3f]]  ;;  %s2497_s25 = sld [smem:[#allocation6 + $0x1c]] }
  0xa1   : > { %v655_v48 = vstv %s2472_s17  ;;  %s2536_s17 = sld [smem:[#allocation6 + $0x16]] }
  0xa3   : > { %579 = vrot.lane.b32.xlu1 %v1780_v54, %s2146_s16  ;;  %559 = vrot.lane.b32.xlu0 %v1780_v54, %s2143_s3 }
  0xa7   : > { %569 = vrot.lane.b32.xlu1 %v1781_v52, %s2143_s3  ;;  %599 = vrot.lane.b32.xlu0 %v1780_v54, %s2145_s7  ;;  %s2494_s3 = sld [smem:[#allocation6 + $0x46]] }
  0xab   : > { %609 = vrot.lane.b32.xlu1 %v1781_v52, %s2145_s7  ;;  %589 = vrot.lane.b32.xlu0 %v1781_v52, %s2146_s16  ;;  %s2500_s7 = sld [smem:[#allocation6 + $0x4d]]  ;;  %s2503_s16 = sld [smem:[#allocation6 + $0x23]] }
  0xe1   : > { %v330_v55 = vpop.permute.xlu0 %329  ;;  %v309_v56 = vpop.permute.xlu1 %308 }
  0xe2   : > { %332 = vst.msk [vmem:[#allocation4 + $0x1c] sm:$0x1] %vm300_vm4, %v330_v55  ;;  %312 = vst.msk [vmem:[#allocation4 + $0x1b] sm:$0x1] %vm300_vm4, %v309_v56 }
  0xe5   : > { %v370_v57 = vpop.permute.xlu0 %369  ;;  %v350_v58 = vpop.permute.xlu1 %349 }
  0xe6   : > { %372 = vst.msk [vmem:[#allocation4 + $0x1e] sm:$0x1] %vm300_vm4, %v370_v57  ;;  %352 = vst.msk [vmem:[#allocation4 + $0x1d] sm:$0x1] %vm300_vm4, %v350_v58 }
  0xe9   : > { %v410_v59 = vpop.permute.xlu0 %409  ;;  %v390_v60 = vpop.permute.xlu1 %389 }
  0xea   : > { %412 = vst.msk [vmem:[#allocation4 + $0x20] sm:$0x1] %vm300_vm4, %v410_v59  ;;  %392 = vst.msk [vmem:[#allocation4 + $0x1f] sm:$0x1] %vm300_vm4, %v390_v60 }
  0xed   : > { %v450_v61 = vpop.permute.xlu0 %449  ;;  %v430_v62 = vpop.permute.xlu1 %429 }
  0xee   : > { %452 = vst.msk [vmem:[#allocation4 + $0x22] sm:$0x1] %vm300_vm4, %v450_v61  ;;  %432 = vst.msk [vmem:[#allocation4 + $0x21] sm:$0x1] %vm300_vm4, %v430_v62  ;;  %v666_v62 = vstv %s2479_s19  ;;  %s2539_s19 = sld [smem:[#allocation6 + $0x47]] }
  0xf1   : > { %v2397_v63 = vld [vmem:[#allocation4 + $0x18] sm:$0xff]  ;;  %v470_v0 = vpop.permute.xlu1 %469  ;;  %v298_v1 = vpop.permute.xlu0 %297 }
  0xf2   : > { %624 = vst.msk [vmem:[#allocation5 + $0x18] sm:$0xff] %vm619_vm5, %v2397_v63  ;;  %758 = vrot.lane.b32.xlu0 %v2397_v63, %s2147_s8 }
  0xf3   : > { %472 = vst.msk [vmem:[#allocation4 + $0x23] sm:$0x1] %vm300_vm4, %v470_v0  ;;  %301 = vst.msk [vmem:[#allocation4 + $0x3] sm:$0x1] %vm300_vm4, %v298_v1 }
  0xf5   : > { %v340_v2 = vpop.permute.xlu1 %339  ;;  %v320_v3 = vpop.permute.xlu0 %319 }
  0xf6   : > { %342 = vst.msk [vmem:[#allocation4 + $0x5] sm:$0x1] %vm300_vm4, %v340_v2  ;;  %322 = vst.msk [vmem:[#allocation4 + $0x4] sm:$0x1] %vm300_vm4, %v320_v3  ;;  %v671_v2 = vstv %s2483_s21  ;;  %s2542_s21 = sld [smem:[#allocation6 + $0x1d]] }
  0xf9   : > { %v360_v4 = vpop.permute.xlu1 %359  ;;  %v380_v5 = vpop.permute.xlu0 %379  ;;  %v630_v41 = vld [vmem:[#allocation5 + $0x18] sm:$0xff] }
  0xfa   : > { %362 = vst.msk [vmem:[#allocation4 + $0x6] sm:$0x1] %vm300_vm4, %v360_v4  ;;  %382 = vst.msk [vmem:[#allocation4 + $0x7] sm:$0x1] %vm300_vm4, %v380_v5  ;;  %v640_v49 = vmul.f32 %v639_v42, %v630_v41 }
  0xfd   : > { %v400_v6 = vpop.permute.xlu1 %399  ;;  %v420_v7 = vpop.permute.xlu0 %419 }
  0xfe   : > { %402 = vst.msk [vmem:[#allocation4 + $0x8] sm:$0x1] %vm300_vm4, %v400_v6  ;;  %422 = vst.msk [vmem:[#allocation4 + $0x9] sm:$0x1] %vm300_vm4, %v420_v7 }
 0x101   : > { %v2411_v8 = vld [vmem:[#allocation4] sm:$0xff]  ;;  %v440_v9 = vpop.permute.xlu1 %439  ;;  %v460_v10 = vpop.permute.xlu0 %459 }
 0x102   : > { %620 = vst.msk [vmem:[#allocation5] sm:$0xff] %vm619_vm5, %v2411_v8  ;;  %752 = vrot.lane.b32.xlu0 %v2411_v8, %s2147_s8 }
 0x103   : > { %442 = vst.msk [vmem:[#allocation4 + $0xa] sm:$0x1] %vm300_vm4, %v440_v9  ;;  %462 = vst.msk [vmem:[#allocation4 + $0xb] sm:$0x1] %vm300_vm4, %v460_v10  ;;  %v682_v10 = vstv %s2490_s30  ;;  %s2548_s30 = sld [smem:[#allocation6 + $0x4e]] }
 0x105   : > { %v480_v11 = vpop.permute.xlu1 %479  ;;  %v500_v12 = vpop.permute.xlu0 %499 }
 0x106   : > { %482 = vst.msk [vmem:[#allocation4 + $0xc] sm:$0x1] %vm300_vm4, %v480_v11  ;;  %502 = vst.msk [vmem:[#allocation4 + $0xd] sm:$0x1] %vm300_vm4, %v500_v12 }
 0x109   : > { %v520_v13 = vpop.permute.xlu1 %519  ;;  %v540_v14 = vpop.permute.xlu0 %539  ;;  %v627_v39 = vld [vmem:[#allocation5] sm:$0xff] }
 0x10a   : > { %522 = vst.msk [vmem:[#allocation4 + $0xe] sm:$0x1] %vm300_vm4, %v520_v13  ;;  %542 = vst.msk [vmem:[#allocation4 + $0xf] sm:$0x1] %vm300_vm4, %v540_v14  ;;  %v635_v46 = vmul.f32 %v634_v40, %v627_v39  ;;  %v714_v39 = vstv %s2503_s16  ;;  %s2583_s16 = sld [smem:[#allocation6 + $0x5c]] }
 0x10c   : > { %v642_v52 = vadd.f32 %v640_v49, %v635_v46 }
 0x10d   : > { %v510_v15 = vpop.permute.xlu1 %509  ;;  %v490_v16 = vpop.permute.xlu0 %489 }
 0x10e   : > { %512 = vst.msk [vmem:[#allocation4 + $0x25] sm:$0x1] %vm300_vm4, %v510_v15  ;;  %492 = vst.msk [vmem:[#allocation4 + $0x24] sm:$0x1] %vm300_vm4, %v490_v16 }
 0x111   : > { %v2425_v17 = vld [vmem:[#allocation4 + $0x8] sm:$0xff]  ;;  %v550_v18 = vpop.permute.xlu1 %549  ;;  %v530_v19 = vpop.permute.xlu0 %529 }
 0x112   : > { %621 = vst.msk [vmem:[#allocation5 + $0x8] sm:$0xff] %vm619_vm5, %v2425_v17  ;;  %754 = vrot.lane.b32.xlu1 %v2425_v17, %s2147_s8 }
 0x113   : > { %552 = vst.msk [vmem:[#allocation4 + $0x27] sm:$0x1] %vm300_vm4, %v550_v18  ;;  %532 = vst.msk [vmem:[#allocation4 + $0x26] sm:$0x1] %vm300_vm4, %v530_v19 }
 0x115   : > { %v580_v20 = vpop.permute.xlu1 %579  ;;  %v560_v21 = vpop.permute.xlu0 %559 }
 0x116   : > { %582 = vst.msk [vmem:[#allocation4 + $0x11] sm:$0x1] %vm300_vm4, %v580_v20  ;;  %562 = vst.msk [vmem:[#allocation4 + $0x10] sm:$0x1] %vm300_vm4, %v560_v21 }
 0x119   : > { %v570_v23 = vpop.permute.xlu1 %569  ;;  %v600_v24 = vpop.permute.xlu0 %599  ;;  %v644_v43 = vld [vmem:[#allocation5 + $0x1] sm:$0xff] }
 0x11a   : > { %v2435_v22 = vld [vmem:[#allocation4 + $0x20] sm:$0xff]  ;;  %572 = vst.msk [vmem:[#allocation4 + $0x28] sm:$0x1] %vm300_vm4, %v570_v23  ;;  %602 = vst.msk [vmem:[#allocation4 + $0x12] sm:$0x1] %vm300_vm4, %v600_v24  ;;  %v651_v50 = vmul.f32 %v650_v44, %v644_v43  ;;  %v660_v57 = vld [vmem:[#allocation5 + $0x2] sm:$0xff]  ;;  %v698_v24 = vstv %s2497_s25 }
 0x11b   : > { %625 = vst.msk [vmem:[#allocation5 + $0x20] sm:$0xff] %vm619_vm5, %v2435_v22  ;;  %760 = vrot.lane.b32.xlu1 %v2435_v22, %s2147_s8  ;;  %v667_v0 = vmul.f32 %v666_v62, %v660_v57  ;;  %v628_v5 = vld [vmem:[#allocation5 + $0x8] sm:$0xff]  ;;  %s2564_s25 = sld [smem:[#allocation6 + $0x55]] }
 0x11c   : > { %v653_v56 = vadd.f32 %v651_v50, %v642_v52  ;;  %v676_v9 = vld [vmem:[#allocation5 + $0x3] sm:$0xff]  ;;  %v636_v11 = vmul.f32 %v634_v40, %v628_v5 }
 0x11d   : > { %v610_v25 = vpop.permute.xlu1 %609  ;;  %v590_v26 = vpop.permute.xlu0 %589  ;;  %v683_v16 = vmul.f32 %v682_v10, %v676_v9  ;;  %v692_v23 = vld [vmem:[#allocation5 + $0x4] sm:$0xff] }
 0x11e   : > { %612 = vst.msk [vmem:[#allocation4 + $0x2a] sm:$0x1] %vm300_vm4, %v610_v25  ;;  %592 = vst.msk [vmem:[#allocation4 + $0x29] sm:$0x1] %vm300_vm4, %v590_v26  ;;  %v708_v25 = vld [vmem:[#allocation5 + $0x5] sm:$0xff] }
 0x11f   : > { %v724_v26 = vld [vmem:[#allocation5 + $0x6] sm:$0xff]  ;;  %v715_v43 = vmul.f32 %v714_v39, %v708_v25 }
 0x121   : > { %v615_v27 = vld [vmem:[#allocation4 + $0x10] sm:$0x3f] }
 0x122   : > { %v742_v28 = vld [vmem:[#allocation4 + $0x10] sm:$0x3f]  ;;  %623 = vst.msk [vmem:[#allocation5 + $0x10] sm:$0x3f] %vm622_vm6, %v615_v27 }
 0x123   : > { %756 = vrot.lane.b32.xlu0 %v742_v28, %s2147_s8  ;;  %v890_v31 = vld [vmem:[#allocation4 + $0x10] sm:$0x3f] }
 0x124   : > { %v1038_v33 = vld [vmem:[#allocation4 + $0x10] sm:$0x3f] }
 0x125   : > { %v618_v29 = vld [vmem:[#allocation4 + $0x28] sm:$0x3f]  ;;  %v1186_v35 = vld [vmem:[#allocation4 + $0x10] sm:$0x3f] }
 0x126   : > { %v745_v30 = vld [vmem:[#allocation4 + $0x28] sm:$0x3f]  ;;  %626 = vst.msk [vmem:[#allocation5 + $0x28] sm:$0x3f] %vm622_vm6, %v618_v29  ;;  %v1334_v37 = vld [vmem:[#allocation4 + $0x10] sm:$0x3f] }
 0x127   : > { %906 = vrot.lane.b32.xlu0 %v2397_v63, %s2148_s24  ;;  %762 = vrot.lane.b32.xlu1 %v745_v30, %s2147_s8  ;;  %v893_v32 = vld [vmem:[#allocation4 + $0x28] sm:$0x3f]  ;;  %v1482_v45 = vld [vmem:[#allocation4 + $0x10] sm:$0x3f]  ;;  %s2507_s8 = sld [smem:[#allocation6 + $0x54]] }
 0x128   : > { %v1041_v34 = vld [vmem:[#allocation4 + $0x28] sm:$0x3f]  ;;  %v2487_v60 = vld [vmem:[#allocation5 + $0x1e] sm:$0xff] }
 0x129   : > { %v1189_v36 = vld [vmem:[#allocation4 + $0x28] sm:$0x3f]  ;;  %v631_v1 = vld [vmem:[#allocation5 + $0x20] sm:$0xff]  ;;  %v645_v4 = vld [vmem:[#allocation5 + $0x9] sm:$0xff] }
 0x12a   : > { %v1337_v38 = vld [vmem:[#allocation4 + $0x28] sm:$0x3f]  ;;  %v641_v6 = vmul.f32 %v639_v42, %v631_v1  ;;  %v652_v12 = vmul.f32 %v650_v44, %v645_v4  ;;  %v661_v20 = vld [vmem:[#allocation5 + $0xa] sm:$0xff] }
 0x12b   : > { %900 = vrot.lane.b32.xlu0 %v2411_v8, %s2148_s24  ;;  %902 = vrot.lane.b32.xlu1 %v2425_v17, %s2148_s24  ;;  %v646_v47 = vld [vmem:[#allocation5 + $0x19] sm:$0xff]  ;;  %v668_v28 = vmul.f32 %v666_v62, %v661_v20 }
 0x12c   : > { %v1485_v51 = vld [vmem:[#allocation4 + $0x28] sm:$0x3f]  ;;  %v656_v53 = vmul.f32 %v655_v48, %v646_v47  ;;  %v643_v14 = vadd.f32 %v641_v6, %v636_v11 }
 0x12d   : > { %v662_v54 = vld [vmem:[#allocation5 + $0x1a] sm:$0xff]  ;;  %v663_v30 = vld [vmem:[#allocation5 + $0x22] sm:$0xff] }
 0x12e   : > { %v678_v55 = vld [vmem:[#allocation5 + $0x1b] sm:$0xff]  ;;  %v672_v7 = vmul.f32 %v671_v2, %v662_v54  ;;  %v654_v18 = vadd.f32 %v652_v12, %v643_v14  ;;  %v679_v42 = vld [vmem:[#allocation5 + $0x23] sm:$0xff]  ;;  %v725_v54 = vld [vmem:[#allocation5 + $0xe] sm:$0xff] }
 0x12f   : > { %904 = vrot.lane.b32.xlu0 %v890_v31, %s2148_s24  ;;  %908 = vrot.lane.b32.xlu1 %v2435_v22, %s2148_s24  ;;  %v694_v58 = vld [vmem:[#allocation5 + $0x1c] sm:$0xff]  ;;  %v695_v57 = vld [vmem:[#allocation5 + $0x24] sm:$0xff] }
 0x130   : > { %v2485_v59 = vld [vmem:[#allocation5 + $0x1d] sm:$0xff]  ;;  %v711_v6 = vld [vmem:[#allocation5 + $0x25] sm:$0xff] }
 0x133   : > { %1054 = vrot.lane.b32.xlu0 %v2397_v63, %s2149_s23  ;;  %910 = vrot.lane.b32.xlu1 %v893_v32, %s2148_s24  ;;  %v699_v32 = vmul.f32 %v698_v24, %v692_v23  ;;  %s2510_s24 = sld [smem:[#allocation6 + $0x2a]]  ;;  %v814_v23 = vstv %s2529_s4  ;;  %s2703_s4 = sld [smem:[#allocation6 + $0x48]] }
 0x137   : > { %1048 = vrot.lane.b32.xlu0 %v2411_v8, %s2149_s23  ;;  %1050 = vrot.lane.b32.xlu1 %v2425_v17, %s2149_s23 }
 0x13b   : > { %1052 = vrot.lane.b32.xlu0 %v1038_v33, %s2149_s23  ;;  %1056 = vrot.lane.b32.xlu1 %v2435_v22, %s2149_s23  ;;  %v703_v33 = vstv %s2500_s7  ;;  %s2571_s7 = sld [smem:[#allocation6 + $0x2b]] }
 0x13c   : > { %v705_v1 = vmul.f32 %v703_v33, %v695_v57 }
 0x13f   : > { %1202 = vrot.lane.b32.xlu0 %v2397_v63, %s2150_s27  ;;  %1058 = vrot.lane.b32.xlu1 %v1041_v34, %s2149_s23  ;;  %s2513_s23 = sld [smem:[#allocation6 + $0x5b]] }
 0x143   : > { %1196 = vrot.lane.b32.xlu0 %v2411_v8, %s2150_s27  ;;  %1198 = vrot.lane.b32.xlu1 %v2425_v17, %s2150_s27 }
 0x145   : > { %v735_v62 = vstv %s2513_s23  ;;  %s2611_s23 = sld [smem:[#allocation6 + $0x9]] }
 0x147   : > { %1200 = vrot.lane.b32.xlu0 %v1186_v35, %s2150_s27  ;;  %1204 = vrot.lane.b32.xlu1 %v2435_v22, %s2150_s27  ;;  %v673_v35 = vmul.f32 %v671_v2, %v663_v30  ;;  %v736_v2 = vmul.f32 %v735_v62, %v2487_v60 }
 0x14b   : > { %1350 = vrot.lane.b32.xlu0 %v2397_v63, %s2151_s28  ;;  %1206 = vrot.lane.b32.xlu1 %v1189_v36, %s2150_s27  ;;  %v677_v36 = vld [vmem:[#allocation5 + $0xb] sm:$0xff]  ;;  %s2515_s27 = sld [smem:[#allocation6 + $0x1]] }
 0x14c   : > { %v684_v41 = vmul.f32 %v682_v10, %v677_v36 }
 0x14f   : > { %1344 = vrot.lane.b32.xlu0 %v2411_v8, %s2151_s28  ;;  %1346 = vrot.lane.b32.xlu1 %v2425_v17, %s2151_s28 }
 0x153   : > { %1348 = vrot.lane.b32.xlu0 %v1334_v37, %s2151_s28  ;;  %1352 = vrot.lane.b32.xlu1 %v2435_v22, %s2151_s28  ;;  %v704_v37 = vmul.f32 %v703_v33, %v694_v58 }
 0x157   : > { %1498 = vrot.lane.b32.xlu0 %v2397_v63, %s2152_s6  ;;  %1354 = vrot.lane.b32.xlu1 %v1337_v38, %s2151_s28  ;;  %v658_v63 = vadd.f32 %v656_v53, %v653_v56  ;;  %v709_v53 = vld [vmem:[#allocation5 + $0xd] sm:$0xff]  ;;  %s2520_s28 = sld [smem:[#allocation6 + $0x32]] }
 0x158   : > { %v716_v9 = vmul.f32 %v714_v39, %v709_v53  ;;  %v830_v39 = vstv %s2536_s17  ;;  %s2728_s17 = sld [smem:[#allocation6 + $0x4f]] }
 0x159   : > { %v669_v3 = vadd.f32 %v667_v0, %v658_v63  ;;  %v782_v63 = vstv %s2515_s27  ;;  %s2628_s27 = sld [smem:[#allocation6 + $0x3a]] }
 0x15b   : > { %1492 = vrot.lane.b32.xlu0 %v2411_v8, %s2152_s6  ;;  %1494 = vrot.lane.b32.xlu1 %v2425_v17, %s2152_s6  ;;  %v647_v8 = vld [vmem:[#allocation5 + $0x21] sm:$0xff]  ;;  %v674_v13 = vadd.f32 %v672_v7, %v669_v3  ;;  %v687_v17 = vstv %s2494_s3  ;;  %s2557_s3 = sld [smem:[#allocation6 + $0x24]] }
 0x15c   : > { %v657_v15 = vmul.f32 %v655_v48, %v647_v8  ;;  %v689_v47 = vmul.f32 %v687_v17, %v679_v42  ;;  %v693_v48 = vld [vmem:[#allocation5 + $0xc] sm:$0xff] }
 0x15d   : > { %v685_v19 = vadd.f32 %v683_v16, %v674_v13  ;;  %v700_v56 = vmul.f32 %v698_v24, %v693_v48  ;;  %v727_v7 = vld [vmem:[#allocation5 + $0x26] sm:$0xff]  ;;  %v787_v10 = vstv %s2520_s28  ;;  %v798_v13 = vstv %s2522_s29  ;;  %s2642_s28 = sld [smem:[#allocation6 + $0x10]]  ;;  %s2665_s29 = sld [smem:[#allocation6 + $0x41]] }
 0x15e   : > { %v659_v21 = vadd.f32 %v657_v15, %v654_v18  ;;  %v803_v18 = vstv %s2526_s5  ;;  %s2680_s5 = sld [smem:[#allocation6 + $0x17]] }
 0x15f   : > { %1496 = vrot.lane.b32.xlu0 %v1482_v45, %s2152_s6  ;;  %1500 = vrot.lane.b32.xlu1 %v2435_v22, %s2152_s6  ;;  %v688_v22 = vmul.f32 %v687_v17, %v678_v55  ;;  %v719_v45 = vstv %s2507_s8  ;;  %s2589_s8 = sld [smem:[#allocation6 + $0x2]] }
 0x160   : > { %v670_v31 = vadd.f32 %v668_v28, %v659_v21  ;;  %v720_v49 = vmul.f32 %v719_v45, %v2485_v59  ;;  %v721_v17 = vmul.f32 %v719_v45, %v711_v6 }
 0x161   : > { %v690_v29 = vadd.f32 %v688_v22, %v685_v19 }
 0x162   : > { %v675_v38 = vadd.f32 %v673_v35, %v670_v31 }
 0x163   : > { %1502 = vrot.lane.b32.xlu1 %v1485_v51, %s2152_s6  ;;  %v701_v34 = vadd.f32 %v699_v32, %v690_v29  ;;  %v730_v51 = vstv %s2510_s24  ;;  %s2534_s6 = sld [smem:[#allocation6 + $0x40]]  ;;  %s2603_s24 = sld [smem:[#allocation6 + $0x33]] }
 0x164   : > { %v759_v61 = vpop.permute.xlu0 %758  ;;  %v686_v44 = vadd.f32 %v684_v41, %v675_v38  ;;  %v731_v58 = vmul.f32 %v730_v51, %v724_v26  ;;  %v732_v25 = vmul.f32 %v730_v51, %v725_v54 }
 0x165   : > { %773 = vst.msk [vmem:[#allocation5 + $0x18] sm:$0xff] %vm619_vm5, %v759_v61  ;;  %v706_v40 = vadd.f32 %v704_v37, %v701_v34 }
 0x166   : > { %v691_v50 = vadd.f32 %v689_v47, %v686_v44  ;;  %v737_v44 = vmul.f32 %v735_v62, %v727_v7  ;;  %v835_v47 = vstv %s2539_s19  ;;  %s2737_s19 = sld [smem:[#allocation6 + $0x25]] }
 0x167   : > { %v717_v46 = vadd.f32 %v715_v43, %v706_v40 }
 0x168   : > { %v702_v61 = vadd.f32 %v700_v56, %v691_v50 }
 0x169   : > { %v722_v55 = vadd.f32 %v720_v49, %v717_v46  ;;  %v819_v30 = vstv %s2534_s6  ;;  %s2717_s6 = sld [smem:[#allocation6 + $0x1e]] }
 0x16a   : > { %v707_v4 = vadd.f32 %v705_v1, %v702_v61 }
 0x16b   : > { %v733_v0 = vadd.f32 %v731_v58, %v722_v55  ;;  %v846_v55 = vstv %s2542_s21  ;;  %s2745_s21 = sld [smem:[#allocation6 + $0x56]] }
 0x16c   : > { %v778_v11 = vld [vmem:[#allocation5 + $0x18] sm:$0xff]  ;;  %v718_v14 = vadd.f32 %v716_v9, %v707_v4  ;;  %v862_v9 = vstv %s2557_s3  ;;  %s2813_s3 = sld [smem:[#allocation6 + $0x5d]] }
 0x16d   : > { %v738_v8 = vadd.f32 %v736_v2, %v733_v0  ;;  %v788_v15 = vmul.f32 %v787_v10, %v778_v11 }
 0x16e   : > { %v723_v20 = vadd.f32 %v721_v17, %v718_v14 }
 0x170   : > { %v734_v35 = vadd.f32 %v732_v25, %v723_v20 }
 0x174   : > { %v753_v27 = vpop.permute.xlu0 %752 }
 0x175   : > { %770 = vst.msk [vmem:[#allocation5] sm:$0xff] %vm619_vm5, %v753_v27 }
 0x17c   : > { %v776_v59 = vld [vmem:[#allocation5] sm:$0xff] }
 0x17d   : > { %v783_v3 = vmul.f32 %v782_v63, %v776_v59 }
 0x17f   : > { %v785_v60 = vadd.f32 %v783_v3, %v738_v8 }
 0x181   : > { %v790_v19 = vadd.f32 %v788_v15, %v785_v60 }
 0x184   : > { %v755_v52 = vpop.permute.xlu1 %754 }
 0x185   : > { %771 = vst.msk [vmem:[#allocation5 + $0x8] sm:$0xff] %vm619_vm5, %v755_v52  ;;  %v739_v52 = vadd.f32 %v737_v44, %v734_v35 }
 0x18c   : > { %v792_v12 = vld [vmem:[#allocation5 + $0x1] sm:$0xff] }
 0x18d   : > { %v761_v5 = vpop.permute.xlu1 %760  ;;  %v799_v16 = vmul.f32 %v798_v13, %v792_v12  ;;  %v808_v21 = vld [vmem:[#allocation5 + $0x2] sm:$0xff] }
 0x18e   : > { %774 = vst.msk [vmem:[#allocation5 + $0x20] sm:$0xff] %vm619_vm5, %v761_v5  ;;  %v777_v29 = vld [vmem:[#allocation5 + $0x8] sm:$0xff]  ;;  %v815_v34 = vmul.f32 %v814_v23, %v808_v21  ;;  %v851_v5 = vstv %s2548_s30  ;;  %s2786_s30 = sld [smem:[#allocation6 + $0x2c]] }
 0x18f   : > { %v801_v26 = vadd.f32 %v799_v16, %v790_v19  ;;  %v824_v31 = vld [vmem:[#allocation5 + $0x3] sm:$0xff]  ;;  %v784_v43 = vmul.f32 %v782_v63, %v777_v29 }
 0x190   : > { %v840_v48 = vld [vmem:[#allocation5 + $0x4] sm:$0xff]  ;;  %v831_v51 = vmul.f32 %v830_v39, %v824_v31 }
 0x191   : > { %v856_v49 = vld [vmem:[#allocation5 + $0x5] sm:$0xff]  ;;  %v786_v2 = vadd.f32 %v784_v43, %v739_v52  ;;  %v847_v6 = vmul.f32 %v846_v55, %v840_v48 }
 0x192   : > { %v2566_v50 = vld [vmem:[#allocation5 + $0x6] sm:$0xff] }
 0x195   : > { %v794_v22 = vld [vmem:[#allocation5 + $0x19] sm:$0xff]  ;;  %v757_v24 = vpop.permute.xlu0 %756 }
 0x196   : > { %772 = vst.msk [vmem:[#allocation5 + $0x10] sm:$0x3f] %vm622_vm6, %v757_v24  ;;  %v804_v27 = vmul.f32 %v803_v18, %v794_v22  ;;  %v810_v28 = vld [vmem:[#allocation5 + $0x1a] sm:$0xff]  ;;  %v867_v22 = vstv %s2564_s25  ;;  %s2836_s25 = sld [smem:[#allocation6 + $0x3]] }
 0x197   : > { %v826_v32 = vld [vmem:[#allocation5 + $0x1b] sm:$0xff]  ;;  %v820_v46 = vmul.f32 %v819_v30, %v810_v28 }
 0x198   : > { %v842_v33 = vld [vmem:[#allocation5 + $0x1c] sm:$0xff]  ;;  %v806_v36 = vadd.f32 %v804_v27, %v801_v26  ;;  %v836_v4 = vmul.f32 %v835_v47, %v826_v32  ;;  %v878_v27 = vstv %s2571_s7  ;;  %s2846_s7 = sld [smem:[#allocation6 + $0x34]] }
 0x199   : > { %v2552_v37 = vld [vmem:[#allocation5 + $0x1d] sm:$0xff]  ;;  %v763_v40 = vpop.permute.xlu1 %762  ;;  %v907_v42 = vpop.permute.xlu0 %906  ;;  %v852_v19 = vmul.f32 %v851_v5, %v842_v33 }
 0x19a   : > { %v2554_v38 = vld [vmem:[#allocation5 + $0x1e] sm:$0xff]  ;;  %775 = vst.msk [vmem:[#allocation5 + $0x28] sm:$0x3f] %vm622_vm6, %v763_v40  ;;  %v817_v45 = vadd.f32 %v815_v34, %v806_v36  ;;  %v868_v34 = vmul.f32 %v867_v22, %v2552_v37 }
 0x19b   : > { %v779_v41 = vld [vmem:[#allocation5 + $0x20] sm:$0xff]  ;;  %921 = vst.msk [vmem:[#allocation5 + $0x18] sm:$0xff] %vm619_vm5, %v907_v42 }
 0x19c   : > { %v789_v53 = vmul.f32 %v787_v10, %v779_v41  ;;  %v822_v54 = vadd.f32 %v820_v46, %v817_v45 }
 0x19d   : > { %v793_v56 = vld [vmem:[#allocation5 + $0x9] sm:$0xff]  ;;  %v903_v61 = vpop.permute.xlu1 %902  ;;  %v901_v62 = vpop.permute.xlu0 %900 }
 0x19e   : > { %v809_v57 = vld [vmem:[#allocation5 + $0xa] sm:$0xff]  ;;  %v800_v63 = vmul.f32 %v798_v13, %v793_v56  ;;  %v833_v3 = vadd.f32 %v831_v51, %v822_v54  ;;  %918 = vst.msk [vmem:[#allocation5] sm:$0xff] %vm619_vm5, %v901_v62  ;;  %v791_v7 = vadd.f32 %v789_v53, %v786_v2  ;;  %v935_v2 = vstv %s2603_s24  ;;  %s2877_s24 = sld [smem:[#allocation6 + $0x11]] }
 0x19f   : > { %v825_v58 = vld [vmem:[#allocation5 + $0xb] sm:$0xff]  ;;  %v816_v24 = vmul.f32 %v814_v23, %v809_v57  ;;  %v883_v23 = vstv %s2583_s16  ;;  %s2859_s16 = sld [smem:[#allocation6 + $0xa]] }
 0x1a0   : > { %v2573_v59 = vld [vmem:[#allocation5 + $0xc] sm:$0xff]  ;;  %v838_v8 = vadd.f32 %v836_v4, %v833_v3  ;;  %v802_v14 = vadd.f32 %v800_v63, %v791_v7  ;;  %v832_v42 = vmul.f32 %v830_v39, %v825_v58  ;;  %v884_v58 = vmul.f32 %v883_v23, %v2554_v38 }
 0x1a1   : > { %v2575_v0 = vld [vmem:[#allocation5 + $0xd] sm:$0xff]  ;;  %v795_v10 = vld [vmem:[#allocation5 + $0x21] sm:$0xff]  ;;  %v909_v13 = vpop.permute.xlu1 %908  ;;  %v905_v60 = vpop.permute.xlu0 %904 }
 0x1a2   : > { %v2577_v1 = vld [vmem:[#allocation5 + $0xe] sm:$0xff]  ;;  %v811_v11 = vld [vmem:[#allocation5 + $0x22] sm:$0xff]  ;;  %v805_v15 = vmul.f32 %v803_v18, %v795_v10  ;;  %v849_v17 = vadd.f32 %v847_v6, %v838_v8  ;;  %v863_v18 = vmul.f32 %v862_v9, %v856_v49  ;;  %v926_v48 = vld [vmem:[#allocation5 + $0x18] sm:$0xff]  ;;  %v930_v49 = vstv %s2589_s8  ;;  %s2868_s8 = sld [smem:[#allocation6 + $0x3b]] }
 0x1a3   : > { %919 = vst.msk [vmem:[#allocation5 + $0x8] sm:$0xff] %vm619_vm5, %v903_v61  ;;  %v827_v12 = vld [vmem:[#allocation5 + $0x23] sm:$0xff]  ;;  %v821_v32 = vmul.f32 %v819_v30, %v811_v11  ;;  %v879_v30 = vmul.f32 %v878_v27, %v2566_v50  ;;  %v848_v6 = vmul.f32 %v846_v55, %v2573_v59 }
 0x1a4   : > { %v2593_v16 = vld [vmem:[#allocation5 + $0x24] sm:$0xff]  ;;  %920 = vst.msk [vmem:[#allocation5 + $0x10] sm:$0x3f] %vm622_vm6, %v905_v60  ;;  %v807_v25 = vadd.f32 %v805_v15, %v802_v14  ;;  %v854_v26 = vadd.f32 %v852_v19, %v849_v17  ;;  %v837_v56 = vmul.f32 %v835_v47, %v827_v12 }
 0x1a5   : > { %v2597_v20 = vld [vmem:[#allocation5 + $0x25] sm:$0xff]  ;;  %v911_v28 = vpop.permute.xlu1 %910  ;;  %v2613_v29 = vpop.permute.xlu0 %1054  ;;  %v853_v19 = vmul.f32 %v851_v5, %v2593_v16  ;;  %v864_v16 = vmul.f32 %v862_v9, %v2575_v0 }
 0x1a6   : > { %v2599_v21 = vld [vmem:[#allocation5 + $0x26] sm:$0xff]  ;;  %v818_v31 = vadd.f32 %v816_v24, %v807_v25  ;;  %v865_v33 = vadd.f32 %v863_v18, %v854_v26  ;;  %v936_v18 = vmul.f32 %v935_v2, %v926_v48  ;;  %v869_v0 = vmul.f32 %v867_v22, %v2597_v20 }
 0x1a7   : > { %922 = vst.msk [vmem:[#allocation5 + $0x20] sm:$0xff] %vm619_vm5, %v909_v13  ;;  %v924_v35 = vld [vmem:[#allocation5] sm:$0xff]  ;;  %v946_v13 = vstv %s2611_s23  ;;  %v880_v48 = vmul.f32 %v878_v27, %v2577_v1  ;;  %v983_v1 = vstv %s2703_s4  ;;  %s2886_s23 = sld [smem:[#allocation6 + $0x42]]  ;;  %s3000_s4 = sld [smem:[#allocation6 + $0x26]] }
 0x1a8   : > { %923 = vst.msk [vmem:[#allocation5 + $0x28] sm:$0x3f] %vm622_vm6, %v911_v28  ;;  %v823_v37 = vadd.f32 %v821_v32, %v818_v31  ;;  %v870_v43 = vadd.f32 %v868_v34, %v865_v33  ;;  %v931_v8 = vmul.f32 %v930_v49, %v924_v35  ;;  %v3392_v32 = vstv %s2628_s27 }
 0x1a9   : > { %v1051_v39 = vpop.permute.xlu1 %1050  ;;  %v1049_v53 = vpop.permute.xlu0 %1048 }
 0x1aa   : > { %v2622_v36 = vld [vmem:[#allocation5 + $0x1] sm:$0xff]  ;;  %v834_v54 = vadd.f32 %v832_v42, %v823_v37  ;;  %v881_v57 = vadd.f32 %v879_v30, %v870_v43  ;;  %v3391_v30 = vstv %s2642_s28 }
 0x1ab   : > { %v2624_v40 = vld [vmem:[#allocation5 + $0x2] sm:$0xff]  ;;  %v2646_v50 = vld [vmem:[#allocation5 + $0xa] sm:$0xff]  ;;  %v947_v35 = vmul.f32 %v946_v13, %v2622_v36  ;;  %v3390_v36 = vstv %s2665_s29 }
 0x1ac   : > { %v2626_v41 = vld [vmem:[#allocation5 + $0x3] sm:$0xff]  ;;  %v2648_v52 = vld [vmem:[#allocation5 + $0xb] sm:$0xff]  ;;  %v839_v38 = vadd.f32 %v837_v56, %v834_v54  ;;  %v886_v7 = vadd.f32 %v884_v58, %v881_v57  ;;  %v3389_v56 = vstv %s2680_s5  ;;  %v885_v58 = vmul.f32 %v883_v23, %v2599_v21 }
 0x1ad   : > { %v2635_v44 = vld [vmem:[#allocation5 + $0x4] sm:$0xff]  ;;  %v2657_v62 = vld [vmem:[#allocation5 + $0xc] sm:$0xff]  ;;  %v1057_v14 = vpop.permute.xlu1 %1056  ;;  %v1053_v15 = vpop.permute.xlu0 %1052 }
 0x1ae   : > { %v2637_v45 = vld [vmem:[#allocation5 + $0x5] sm:$0xff]  ;;  %v2659_v63 = vld [vmem:[#allocation5 + $0xd] sm:$0xff]  ;;  %v942_v4 = vld [vmem:[#allocation5 + $0x19] sm:$0xff]  ;;  %v850_v17 = vadd.f32 %v848_v6, %v839_v38  ;;  %v933_v24 = vadd.f32 %v931_v8, %v886_v7 }
 0x1af   : > { %v2639_v46 = vld [vmem:[#allocation5 + $0x6] sm:$0xff]  ;;  %v2663_v3 = vld [vmem:[#allocation5 + $0xe] sm:$0xff]  ;;  %v958_v47 = vld [vmem:[#allocation5 + $0x1a] sm:$0xff]  ;;  %v952_v43 = vmul.f32 %v3392_v32, %v942_v4 }
 0x1b0   : > { %v2644_v51 = vld [vmem:[#allocation5 + $0x9] sm:$0xff]  ;;  %1066 = vst.msk [vmem:[#allocation5] sm:$0xff] %vm619_vm5, %v1049_v53  ;;  %v2672_v10 = vld [vmem:[#allocation5 + $0x1b] sm:$0xff]  ;;  %v855_v33 = vadd.f32 %v853_v19, %v850_v17  ;;  %v938_v34 = vadd.f32 %v936_v18, %v933_v24  ;;  %v963_v53 = vmul.f32 %v3391_v30, %v2624_v40  ;;  %v968_v6 = vmul.f32 %v3390_v36, %v958_v47 }
 0x1b1   : > { %v2655_v61 = vld [vmem:[#allocation5 + $0x8] sm:$0xff]  ;;  %v2674_v11 = vld [vmem:[#allocation5 + $0x1c] sm:$0xff]  ;;  %1068 = vst.msk [vmem:[#allocation5 + $0x10] sm:$0x3f] %vm622_vm6, %v1053_v15  ;;  %v1059_v42 = vpop.permute.xlu1 %1058  ;;  %v2719_v37 = vpop.permute.xlu0 %1202  ;;  %v979_v15 = vmul.f32 %v3389_v56, %v2626_v41  ;;  %v3397_v30 = vstv %s2728_s17 }
 0x1b2   : > { %v2676_v12 = vld [vmem:[#allocation5 + $0x1d] sm:$0xff]  ;;  %1067 = vst.msk [vmem:[#allocation5 + $0x8] sm:$0xff] %vm619_vm5, %v1051_v39  ;;  %v2695_v26 = vld [vmem:[#allocation5 + $0x25] sm:$0xff]  ;;  %v949_v9 = vadd.f32 %v947_v35, %v938_v34  ;;  %v932_v47 = vmul.f32 %v930_v49, %v2655_v61  ;;  %v994_v61 = vstv %s2717_s6  ;;  %s3011_s6 = sld [smem:[#allocation6 + $0x57]] }
 0x1b3   : > { %v2682_v60 = vld [vmem:[#allocation5 + $0x21] sm:$0xff] }
 0x1b4   : > { %v2684_v55 = vld [vmem:[#allocation5 + $0x22] sm:$0xff]  ;;  %v954_v54 = vadd.f32 %v952_v43, %v949_v9 }
 0x1b5   : > { %v2686_v59 = vld [vmem:[#allocation5 + $0x23] sm:$0xff]  ;;  %v1199_v20 = vpop.permute.xlu1 %1198  ;;  %v1197_v22 = vpop.permute.xlu0 %1196 }
 0x1b6   : > { %v2693_v25 = vld [vmem:[#allocation5 + $0x24] sm:$0xff]  ;;  %v965_v4 = vadd.f32 %v963_v53, %v954_v54 }
 0x1b7   : > { %v2697_v28 = vld [vmem:[#allocation5 + $0x1e] sm:$0xff]  ;;  %v2705_v5 = vld [vmem:[#allocation5 + $0x26] sm:$0xff] }
 0x1b8   : > { %v2700_v31 = vld [vmem:[#allocation5 + $0x20] sm:$0xff]  ;;  %1069 = vst.msk [vmem:[#allocation5 + $0x18] sm:$0xff] %vm619_vm5, %v2613_v29  ;;  %v866_v29 = vadd.f32 %v864_v16, %v855_v33  ;;  %v970_v17 = vadd.f32 %v968_v6, %v965_v4  ;;  %v984_v4 = vmul.f32 %v983_v1, %v2672_v10 }
 0x1b9   : > { %1070 = vst.msk [vmem:[#allocation5 + $0x20] sm:$0xff] %vm619_vm5, %v1057_v14  ;;  %v2747_v27 = vld [vmem:[#allocation5 + $0x9] sm:$0xff]  ;;  %v2767_v19 = vld [vmem:[#allocation5] sm:$0xff]  ;;  %v1205_v9 = vpop.permute.xlu1 %1204  ;;  %v1201_v43 = vpop.permute.xlu0 %1200 }
 0x1ba   : > { %1071 = vst.msk [vmem:[#allocation5 + $0x28] sm:$0x3f] %vm622_vm6, %v1059_v42  ;;  %v871_v39 = vadd.f32 %v869_v0, %v866_v29  ;;  %v2749_v40 = vld [vmem:[#allocation5 + $0xa] sm:$0xff]  ;;  %v2769_v18 = vld [vmem:[#allocation5 + $0x1] sm:$0xff] }
 0x1bb   : > { %v2751_v38 = vld [vmem:[#allocation5 + $0xb] sm:$0xff]  ;;  %v2771_v24 = vld [vmem:[#allocation5 + $0x2] sm:$0xff] }
 0x1bc   : > { %v882_v57 = vadd.f32 %v880_v48, %v871_v39  ;;  %v2753_v7 = vld [vmem:[#allocation5 + $0xc] sm:$0xff]  ;;  %v2773_v16 = vld [vmem:[#allocation5 + $0x3] sm:$0xff] }
 0x1bd   : > { %v2755_v8 = vld [vmem:[#allocation5 + $0xd] sm:$0xff]  ;;  %v2777_v34 = vld [vmem:[#allocation5 + $0x4] sm:$0xff] }
 0x1be   : > { %v887_v23 = vadd.f32 %v885_v58, %v882_v57  ;;  %v2781_v49 = vld [vmem:[#allocation5 + $0x5] sm:$0xff]  ;;  %v937_v57 = vmul.f32 %v935_v2, %v2700_v31  ;;  %v981_v58 = vadd.f32 %v979_v15, %v970_v17  ;;  %v2815_v32 = vld [vmem:[#allocation5 + $0xe] sm:$0xff]  ;;  %v995_v31 = vmul.f32 %v994_v61, %v2635_v44  ;;  %v1207_v17 = vpop.permute.xlu1 %1206  ;;  %v2834_v44 = vpop.permute.xlu0 %1350 }
 0x1bf   : > { %v2794_v48 = vld [vmem:[#allocation5 + $0x8] sm:$0xff]  ;;  %v2796_v39 = vld [vmem:[#allocation5 + $0x18] sm:$0xff]  ;;  %1216 = vst.msk [vmem:[#allocation5 + $0x10] sm:$0x3f] %vm622_vm6, %v1201_v43  ;;  %v1000_v43 = vmul.f32 %v3397_v30, %v2674_v11 }
 0x1c0   : > { %v2757_v14 = vld [vmem:[#allocation5 + $0x19] sm:$0xff]  ;;  %v934_v54 = vadd.f32 %v932_v47, %v887_v23  ;;  %v2810_v36 = vld [vmem:[#allocation5 + $0x6] sm:$0xff]  ;;  %v948_v47 = vmul.f32 %v946_v13, %v2644_v51  ;;  %v986_v15 = vadd.f32 %v984_v4, %v981_v58  ;;  %v3419_v13 = vstv %s2628_s27  ;;  %s2927_s27 = sld [smem:[#allocation6 + $0x18]] }
 0x1c1   : > { %v2759_v21 = vld [vmem:[#allocation5 + $0x1a] sm:$0xff]  ;;  %v2790_v29 = vld [vmem:[#allocation5 + $0x22] sm:$0xff]  ;;  %1214 = vst.msk [vmem:[#allocation5] sm:$0xff] %vm619_vm5, %v1197_v22  ;;  %1215 = vst.msk [vmem:[#allocation5 + $0x8] sm:$0xff] %vm619_vm5, %v1199_v20  ;;  %v3396_v22 = vstv %s2737_s19  ;;  %v953_v20 = vmul.f32 %v3419_v13, %v2682_v60 }
 0x1c2   : > { %v2775_v33 = vld [vmem:[#allocation5 + $0x1b] sm:$0xff]  ;;  %v2792_v0 = vld [vmem:[#allocation5 + $0x23] sm:$0xff]  ;;  %v939_v10 = vadd.f32 %v937_v57, %v934_v54  ;;  %v997_v54 = vadd.f32 %v995_v31, %v986_v15  ;;  %v3420_v57 = vstv %s2642_s28  ;;  %v2855_v31 = vpop.permute.xlu1 %1346  ;;  %v2857_v11 = vpop.permute.xlu0 %1344  ;;  %v3421_v15 = vstv %s2665_s29  ;;  %s2954_s28 = sld [smem:[#allocation6 + $0x49]]  ;;  %s2982_s29 = sld [smem:[#allocation6 + $0x1f]] }
 0x1c3   : > { %v2779_v35 = vld [vmem:[#allocation5 + $0x1c] sm:$0xff]  ;;  %v2806_v6 = vld [vmem:[#allocation5 + $0x24] sm:$0xff]  ;;  %v964_v58 = vmul.f32 %v3420_v57, %v2646_v50 }
 0x1c4   : > { %v2783_v41 = vld [vmem:[#allocation5 + $0x1d] sm:$0xff]  ;;  %v2808_v56 = vld [vmem:[#allocation5 + $0x25] sm:$0xff]  ;;  %v950_v51 = vadd.f32 %v948_v47, %v939_v10  ;;  %v1002_v4 = vadd.f32 %v1000_v43, %v997_v54  ;;  %v3394_v10 = vstv %s2786_s30 }
 0x1c5   : > { %v2788_v42 = vld [vmem:[#allocation5 + $0x21] sm:$0xff]  ;;  %v1027_v13 = vmul.f32 %v3394_v10, %v2639_v46 }
 0x1c6   : > { %v2798_v53 = vld [vmem:[#allocation5 + $0x20] sm:$0xff]  ;;  %v955_v60 = vadd.f32 %v953_v20, %v950_v51  ;;  %v3393_v51 = vstv %s2813_s3  ;;  %v3422_v20 = vstv %s2680_s5  ;;  %v1349_v46 = vpop.permute.xlu0 %1348  ;;  %s2991_s5 = sld [smem:[#allocation6 + $0x50]] }
 0x1c7   : > { %v2817_v23 = vld [vmem:[#allocation5 + $0x1e] sm:$0xff]  ;;  %v2819_v2 = vld [vmem:[#allocation5 + $0x26] sm:$0xff]  ;;  %v980_v54 = vmul.f32 %v3422_v20, %v2648_v52  ;;  %v996_v20 = vmul.f32 %v994_v61, %v2657_v62 }
 0x1c8   : > { %1217 = vst.msk [vmem:[#allocation5 + $0x18] sm:$0xff] %vm619_vm5, %v2719_v37  ;;  %1218 = vst.msk [vmem:[#allocation5 + $0x20] sm:$0xff] %vm619_vm5, %v1205_v9  ;;  %v3395_v37 = vstv %s2745_s21  ;;  %v1011_v9 = vmul.f32 %v3396_v22, %v2637_v45  ;;  %v966_v47 = vadd.f32 %v964_v58, %v955_v60  ;;  %v1353_v58 = vpop.permute.xlu1 %1352  ;;  %v3398_v60 = vstv %s2836_s25  ;;  %v2888_v52 = vld [vmem:[#allocation5 + $0x9] sm:$0xff]  ;;  %v2914_v10 = vld [vmem:[#allocation5 + $0x1] sm:$0xff] }
 0x1c9   : > { %1219 = vst.msk [vmem:[#allocation5 + $0x28] sm:$0x3f] %vm622_vm6, %v1207_v17  ;;  %v969_v17 = vmul.f32 %v3421_v15, %v2684_v55  ;;  %v1016_v50 = vmul.f32 %v3395_v37, %v2676_v12  ;;  %v985_v12 = vmul.f32 %v983_v1, %v2686_v59  ;;  %3423 = vst [vmem:[#allocation15_spill] sm:$0xff] %v2888_v52  ;;  %v2900_v1 = vld [vmem:[#allocation5 + $0xb] sm:$0xff]  ;;  %v2916_v37 = vld [vmem:[#allocation5 + $0x2] sm:$0xff] }
 0x1ca   : > { %v1013_v45 = vadd.f32 %v1011_v9, %v1002_v4  ;;  %v1032_v4 = vmul.f32 %v3393_v51, %v2697_v28  ;;  %3427 = vst [vmem:[#allocation19_spill] sm:$0xff] %v2900_v1  ;;  %v2912_v51 = vld [vmem:[#allocation5] sm:$0xff]  ;;  %v2922_v30 = vld [vmem:[#allocation5 + $0xc] sm:$0xff]  ;;  %v3434_v1 = vstv %s2728_s17  ;;  %s3020_s17 = sld [smem:[#allocation6 + $0x2d]] }
 0x1cb   : > { %v971_v43 = vadd.f32 %v969_v17, %v966_v47  ;;  %v2918_v22 = vld [vmem:[#allocation5 + $0x3] sm:$0xff]  ;;  %3430 = vst [vmem:[#allocation22_spill] sm:$0xff] %v2922_v30 }
 0x1cc   : > { %v1018_v57 = vadd.f32 %v1016_v50, %v1013_v45  ;;  %v2894_v45 = vld [vmem:[#allocation5 + $0xa] sm:$0xff]  ;;  %v1355_v61 = vpop.permute.xlu1 %1354 }
 0x1cd   : > { %v982_v55 = vadd.f32 %v980_v54, %v971_v43  ;;  %3425 = vst [vmem:[#allocation17_spill] sm:$0xff] %v2894_v45  ;;  %v2920_v15 = vld [vmem:[#allocation5 + $0x4] sm:$0xff]  ;;  %v3435_v45 = vstv %s2846_s7 }
 0x1ce   : > { %v1029_v9 = vadd.f32 %v1027_v13, %v1018_v57  ;;  %v1079_v57 = vmul.f32 %v3398_v60, %v2767_v19  ;;  %3429 = vst [vmem:[#allocation21_spill] sm:$0xff] %v2920_v15  ;;  %v2929_v19 = vld [vmem:[#allocation5 + $0x8] sm:$0xff] }
 0x1cf   : > { %v2890_v47 = vld [vmem:[#allocation5 + $0x19] sm:$0xff]  ;;  %v987_v54 = vadd.f32 %v985_v12, %v982_v55  ;;  %v2937_v60 = vld [vmem:[#allocation5 + $0x5] sm:$0xff]  ;;  %v1001_v55 = vmul.f32 %v3434_v1, %v2693_v25  ;;  %v3436_v25 = vstv %s2737_s19  ;;  %s3029_s19 = sld [smem:[#allocation6 + $0x5e]] }
 0x1d0   : > { %v2892_v17 = vld [vmem:[#allocation5 + $0x21] sm:$0xff]  ;;  %v1034_v43 = vadd.f32 %v1032_v4, %v1029_v9  ;;  %v2931_v12 = vld [vmem:[#allocation5 + $0x18] sm:$0xff] }
 0x1d1   : > { %3424 = vst [vmem:[#allocation16_spill] sm:$0xff] %v2892_v17  ;;  %v2896_v50 = vld [vmem:[#allocation5 + $0x1a] sm:$0xff]  ;;  %v2898_v59 = vld [vmem:[#allocation5 + $0x22] sm:$0xff]  ;;  %v998_v30 = vadd.f32 %v996_v20, %v987_v54 }
 0x1d2   : > { %3426 = vst [vmem:[#allocation18_spill] sm:$0xff] %v2898_v59  ;;  %v2902_v28 = vld [vmem:[#allocation5 + $0x1b] sm:$0xff]  ;;  %v2904_v13 = vld [vmem:[#allocation5 + $0x23] sm:$0xff]  ;;  %v1081_v59 = vadd.f32 %v1079_v57, %v1034_v43  ;;  %v3437_v43 = vstv %s2859_s16 }
 0x1d3   : > { %3428 = vst [vmem:[#allocation20_spill] sm:$0xff] %v2904_v13  ;;  %v2924_v62 = vld [vmem:[#allocation5 + $0x1c] sm:$0xff]  ;;  %v2935_v4 = vld [vmem:[#allocation5 + $0x24] sm:$0xff]  ;;  %v2939_v13 = vld [vmem:[#allocation5 + $0xd] sm:$0xff]  ;;  %v1095_v57 = vmul.f32 %v3437_v43, %v2769_v18  ;;  %v3402_v18 = vstv %s2877_s24 }
 0x1d4   : > { %3431 = vst [vmem:[#allocation23_spill] sm:$0xff] %v2924_v62  ;;  %v2933_v9 = vld [vmem:[#allocation5 + $0x20] sm:$0xff]  ;;  %3432 = vst [vmem:[#allocation24_spill] sm:$0xff] %v2935_v4  ;;  %v1084_v62 = vmul.f32 %v3435_v45, %v2796_v39  ;;  %v3404_v4 = vstv %s2868_s8  ;;  %v1012_v39 = vmul.f32 %v3436_v25, %v2659_v63  ;;  %v1003_v45 = vadd.f32 %v1001_v55, %v998_v30  ;;  %v2977_v63 = vpop.permute.xlu0 %1498  ;;  %v2979_v30 = vpop.permute.xlu1 %1494 }
 0x1d5   : > { %3433 = vst [vmem:[#allocation25_spill] sm:$0xff] %v2939_v13  ;;  %v2947_v17 = vld [vmem:[#allocation5 + $0x1d] sm:$0xff]  ;;  %v2949_v15 = vld [vmem:[#allocation5 + $0x25] sm:$0xff]  ;;  %v2956_v13 = vld [vmem:[#allocation5 + $0xe] sm:$0xff] }
 0x1d6   : > { %v2951_v52 = vld [vmem:[#allocation5 + $0x6] sm:$0xff]  ;;  %v2958_v20 = vld [vmem:[#allocation5 + $0x1e] sm:$0xff]  ;;  %v1086_v1 = vadd.f32 %v1084_v62, %v1081_v59  ;;  %1364 = vst.msk [vmem:[#allocation5 + $0x10] sm:$0x3f] %vm622_vm6, %v1349_v46  ;;  %v3401_v59 = vstv %s2886_s23  ;;  %v3439_v62 = vstv %s2786_s30  ;;  %s3097_s30 = sld [smem:[#allocation6 + $0x35]] }
 0x1d7   : > { %v2960_v54 = vld [vmem:[#allocation5 + $0x26] sm:$0xff]  ;;  %1362 = vst.msk [vmem:[#allocation5] sm:$0xff] %vm619_vm5, %v2857_v11  ;;  %1363 = vst.msk [vmem:[#allocation5 + $0x8] sm:$0xff] %vm619_vm5, %v2855_v31  ;;  %v1014_v31 = vadd.f32 %v1012_v39, %v1003_v45  ;;  %v3438_v11 = vstv %s2745_s21  ;;  %v1111_v39 = vmul.f32 %v3402_v18, %v2771_v24  ;;  %s3070_s21 = sld [smem:[#allocation6 + $0x4]] }
 0x1d8   : > { %1365 = vst.msk [vmem:[#allocation5 + $0x18] sm:$0xff] %vm619_vm5, %v2834_v44  ;;  %1366 = vst.msk [vmem:[#allocation5 + $0x20] sm:$0xff] %vm619_vm5, %v1353_v58  ;;  %v1017_v46 = vmul.f32 %v3438_v11, %v2695_v26  ;;  %v1097_v44 = vadd.f32 %v1095_v57, %v1086_v1  ;;  %v1100_v58 = vmul.f32 %v3404_v4, %v2757_v14  ;;  %v3400_v26 = vstv %s2927_s27  ;;  %v1493_v57 = vpop.permute.xlu0 %1492 }
 0x1d9   : > { %1367 = vst.msk [vmem:[#allocation5 + $0x28] sm:$0x3f] %vm622_vm6, %v1355_v61  ;;  %v1028_v61 = vmul.f32 %v3439_v62, %v2663_v3  ;;  %v3440_v14 = vstv %s2813_s3  ;;  %v1116_v3 = vmul.f32 %v3401_v59, %v2759_v21  ;;  %v3399_v11 = vstv %s2954_s28  ;;  %s3121_s3 = sld [smem:[#allocation6 + $0xb]] }
 0x1da   : > { %v1019_v55 = vadd.f32 %v1017_v46, %v1014_v31  ;;  %v1102_v25 = vadd.f32 %v1100_v58, %v1097_v44  ;;  %v1033_v1 = vmul.f32 %v3440_v14, %v2705_v5  ;;  %v3008_v31 = vpop.permute.xlu1 %1500  ;;  %v3441_v46 = vstv %s2836_s25  ;;  %s3128_s25 = sld [smem:[#allocation6 + $0x3c]] }
 0x1db   : > { %v1080_v44 = vmul.f32 %v3441_v46, %v2794_v48  ;;  %v1127_v5 = vmul.f32 %v3400_v26, %v2773_v16  ;;  %v3403_v62 = vstv %s2982_s29  ;;  %v3442_v21 = vstv %s2846_s7  ;;  %s3135_s7 = sld [smem:[#allocation6 + $0x12]] }
 0x1dc   : > { %v1030_v45 = vadd.f32 %v1028_v61, %v1019_v55  ;;  %v1113_v43 = vadd.f32 %v1111_v39, %v1102_v25  ;;  %v1085_v55 = vmul.f32 %v3442_v21, %v2798_v53  ;;  %v1132_v39 = vmul.f32 %v3399_v11, %v2775_v33 }
 0x1dd   : > { %v1143_v21 = vmul.f32 %v3403_v62, %v2777_v34 }
 0x1de   : > { %v1035_v24 = vadd.f32 %v1033_v1, %v1030_v45  ;;  %v1118_v58 = vadd.f32 %v1116_v3, %v1113_v43  ;;  %v3031_v48 = vld [vmem:[#allocation5 + $0x9] sm:$0xff]  ;;  %v3055_v11 = vld [vmem:[#allocation5] sm:$0xff] }
 0x1df   : > { %3443 = vst [vmem:[#allocation26_spill] sm:$0xff] %v3031_v48  ;;  %v3033_v14 = vld [vmem:[#allocation5 + $0x19] sm:$0xff]  ;;  %v3037_v1 = vld [vmem:[#allocation5 + $0xa] sm:$0xff]  ;;  %v3057_v26 = vld [vmem:[#allocation5 + $0x1] sm:$0xff] }
 0x1e0   : > { %v1082_v61 = vadd.f32 %v1080_v44, %v1035_v24  ;;  %v1129_v25 = vadd.f32 %v1127_v5, %v1118_v58  ;;  %v3035_v16 = vld [vmem:[#allocation5 + $0x21] sm:$0xff]  ;;  %3445 = vst [vmem:[#allocation28_spill] sm:$0xff] %v3037_v1  ;;  %v3043_v53 = vld [vmem:[#allocation5 + $0xb] sm:$0xff]  ;;  %v3450_v44 = vstv %s2859_s16  ;;  %s3142_s16 = sld [smem:[#allocation6 + $0x43]] }
 0x1e1   : > { %3444 = vst [vmem:[#allocation27_spill] sm:$0xff] %v3035_v16  ;;  %v3039_v43 = vld [vmem:[#allocation5 + $0x1a] sm:$0xff]  ;;  %v3041_v3 = vld [vmem:[#allocation5 + $0x22] sm:$0xff]  ;;  %3447 = vst [vmem:[#allocation30_spill] sm:$0xff] %v3043_v53  ;;  %v1096_v58 = vmul.f32 %v3450_v44, %v2747_v27  ;;  %v1497_v27 = vpop.permute.xlu0 %1496 }
 0x1e2   : > { %3446 = vst [vmem:[#allocation29_spill] sm:$0xff] %v3041_v3  ;;  %v3045_v24 = vld [vmem:[#allocation5 + $0x1b] sm:$0xff]  ;;  %v3047_v33 = vld [vmem:[#allocation5 + $0x23] sm:$0xff]  ;;  %v1087_v46 = vadd.f32 %v1085_v55, %v1082_v61  ;;  %v1134_v5 = vadd.f32 %v1132_v39, %v1129_v25  ;;  %v3065_v61 = vld [vmem:[#allocation5 + $0xc] sm:$0xff]  ;;  %v1503_v25 = vpop.permute.xlu1 %1502  ;;  %v3456_v3 = vstv %s2868_s8  ;;  %s3149_s8 = sld [smem:[#allocation6 + $0x19]] }
 0x1e3   : > { %3448 = vst [vmem:[#allocation31_spill] sm:$0xff] %v3045_v24  ;;  %3449 = vst [vmem:[#allocation32_spill] sm:$0xff] %v3047_v33  ;;  %v3059_v59 = vld [vmem:[#allocation5 + $0x2] sm:$0xff]  ;;  %v3074_v44 = vld [vmem:[#allocation5 + $0x18] sm:$0xff]  ;;  %v1101_v34 = vmul.f32 %v3456_v3, %v2788_v42  ;;  %v3458_v3 = vstv %s2877_s24  ;;  %s3156_s24 = sld [smem:[#allocation6 + $0x4a]] }
 0x1e4   : > { %v3061_v18 = vld [vmem:[#allocation5 + $0x3] sm:$0xff]  ;;  %3452 = vst [vmem:[#allocation34_spill] sm:$0xff] %v3065_v61  ;;  %v3082_v61 = vld [vmem:[#allocation5 + $0xd] sm:$0xff]  ;;  %v1098_v53 = vadd.f32 %v1096_v58, %v1087_v46  ;;  %v1145_v1 = vadd.f32 %v1143_v21, %v1134_v5  ;;  %v1112_v58 = vmul.f32 %v3458_v3, %v2749_v40  ;;  %v3459_v21 = vstv %s3000_s4 }
 0x1e5   : > { %v3063_v45 = vld [vmem:[#allocation5 + $0x4] sm:$0xff]  ;;  %v3067_v55 = vld [vmem:[#allocation5 + $0x1c] sm:$0xff]  ;;  %3455 = vst [vmem:[#allocation37_spill] sm:$0xff] %v3082_v61  ;;  %v3099_v61 = vld [vmem:[#allocation5 + $0xe] sm:$0xff]  ;;  %v1174_v40 = vstv %s3020_s17  ;;  %v3462_v3 = vstv %s2954_s28  ;;  %s3173_s28 = sld [smem:[#allocation6 + $0x27]]  ;;  %s3198_s17 = sld [smem:[#allocation6 + $0x36]] }
 0x1e6   : > { %3451 = vst [vmem:[#allocation33_spill] sm:$0xff] %v3063_v45  ;;  %3453 = vst [vmem:[#allocation35_spill] sm:$0xff] %v3067_v55  ;;  %v3072_v39 = vld [vmem:[#allocation5 + $0x8] sm:$0xff]  ;;  %v3076_v62 = vld [vmem:[#allocation5 + $0x20] sm:$0xff]  ;;  %v3457_v55 = vstv %s2991_s5 }
 0x1e7   : > { %v3078_v4 = vld [vmem:[#allocation5 + $0x24] sm:$0xff]  ;;  %v1148_v16 = vmul.f32 %v3457_v55, %v2779_v35  ;;  %v1103_v35 = vadd.f32 %v1101_v34, %v1098_v53  ;;  %v1159_v55 = vmul.f32 %v3459_v21, %v2781_v49  ;;  %1512 = vst.msk [vmem:[#allocation5 + $0x10] sm:$0x3f] %vm622_vm6, %v1497_v27  ;;  %v3460_v49 = vstv %s2886_s23  ;;  %s3163_s23 = sld [smem:[#allocation6 + $0x20]] }
 0x1e8   : > { %3454 = vst [vmem:[#allocation36_spill] sm:$0xff] %v3078_v4  ;;  %v3080_v33 = vld [vmem:[#allocation5 + $0x5] sm:$0xff]  ;;  %v3090_v45 = vld [vmem:[#allocation5 + $0x1d] sm:$0xff]  ;;  %v1163_v4 = vstv %s3011_s6  ;;  %v1179_v53 = vstv %s3029_s19  ;;  %v1175_v34 = vmul.f32 %v1174_v40, %v2810_v36  ;;  %v1231_v21 = vstv %s3097_s30  ;;  %s3193_s6 = sld [smem:[#allocation6 + $0x5]]  ;;  %s3203_s19 = sld [smem:[#allocation6 + $0xc]] }
 0x1e9   : > { %v3092_v48 = vld [vmem:[#allocation5 + $0x25] sm:$0xff]  ;;  %v1150_v5 = vadd.f32 %v1148_v16, %v1145_v1  ;;  %v1164_v1 = vmul.f32 %v1163_v4, %v2783_v41  ;;  %v1133_v41 = vmul.f32 %v3462_v3, %v2792_v0  ;;  %v3464_v0 = vstv %s2991_s5  ;;  %s3183_s5 = sld [smem:[#allocation6 + $0x2e]]  ;;  %s3213_s30 = sld [smem:[#allocation6 + $0x13]] }
 0x1ea   : > { %v3094_v24 = vld [vmem:[#allocation5 + $0x6] sm:$0xff]  ;;  %v3101_v46 = vld [vmem:[#allocation5 + $0x1e] sm:$0xff] }
 0x1eb   : > { %v3103_v42 = vld [vmem:[#allocation5 + $0x26] sm:$0xff]  ;;  %1510 = vst.msk [vmem:[#allocation5] sm:$0xff] %vm619_vm5, %v1493_v57  ;;  %1511 = vst.msk [vmem:[#allocation5 + $0x8] sm:$0xff] %vm619_vm5, %v2979_v30  ;;  %v1114_v57 = vadd.f32 %v1112_v58, %v1103_v35  ;;  %v1117_v30 = vmul.f32 %v3460_v49, %v2790_v29  ;;  %v1161_v16 = vadd.f32 %v1159_v55, %v1150_v5  ;;  %v1226_v35 = vstv %s3070_s21  ;;  %s3208_s21 = sld [smem:[#allocation6 + $0x3d]] }
 0x1ec   : > { %1513 = vst.msk [vmem:[#allocation5 + $0x18] sm:$0xff] %vm619_vm5, %v2977_v63  ;;  %1514 = vst.msk [vmem:[#allocation5 + $0x20] sm:$0xff] %vm619_vm5, %v3008_v31  ;;  %v3461_v31 = vstv %s2927_s27  ;;  %v1180_v5 = vmul.f32 %v1179_v53, %v2817_v23  ;;  %v3463_v55 = vstv %s2982_s29  ;;  %v1227_v49 = vmul.f32 %v1226_v35, %v2912_v51  ;;  %s3168_s27 = sld [smem:[#allocation6 + $0x51]]  ;;  %s3178_s29 = sld [smem:[#allocation6 + $0x58]] }
 0x1ed   : > { %1515 = vst.msk [vmem:[#allocation5 + $0x28] sm:$0x3f] %vm622_vm6, %v1503_v25  ;;  %v1119_v63 = vadd.f32 %v1117_v30, %v1114_v57  ;;  %v1128_v27 = vmul.f32 %v3461_v31, %v2751_v38  ;;  %v1166_v25 = vadd.f32 %v1164_v1, %v1161_v16  ;;  %v1144_v36 = vmul.f32 %v3463_v55, %v2753_v7 }
 0x1ee   : > { %v1242_v30 = vstv %s3121_s3  ;;  %v1149_v23 = vmul.f32 %v3464_v0, %v2806_v6  ;;  %v1247_v31 = vstv %s3128_s25  ;;  %v3465_v7 = vstv %s3000_s4  ;;  %s3188_s4 = sld [smem:[#allocation6 + $0x5f]]  ;;  %s3218_s3 = sld [smem:[#allocation6 + $0x44]] }
 0x1ef   : > { %v1130_v29 = vadd.f32 %v1128_v27, %v1119_v63  ;;  %v1177_v58 = vadd.f32 %v1175_v34, %v1166_v25  ;;  %v1232_v63 = vmul.f32 %v1231_v21, %v2931_v12  ;;  %v1160_v25 = vmul.f32 %v3465_v7, %v2755_v8  ;;  %s3223_s25 = sld [smem:[#allocation6 + $0x1a]] }
 0x1f0   : > { %v1243_v34 = vmul.f32 %v1242_v30, %v2914_v10  ;;  %v1165_v6 = vmul.f32 %v1163_v4, %v2808_v56  ;;  %v1248_v12 = vmul.f32 %v1247_v31, %v2890_v47  ;;  %v1176_v8 = vmul.f32 %v1174_v40, %v2815_v32 }
 0x1f1   : > { %v1135_v38 = vadd.f32 %v1133_v41, %v1130_v29  ;;  %v1182_v57 = vadd.f32 %v1180_v5, %v1177_v58  ;;  %v1258_v29 = vstv %s3135_s7  ;;  %v1263_v58 = vstv %s3142_s16  ;;  %s3228_s7 = sld [smem:[#allocation6 + $0x4b]]  ;;  %s3233_s16 = sld [smem:[#allocation6 + $0x21]] }
 0x1f2   : > { %v1259_v10 = vmul.f32 %v1258_v29, %v2916_v37  ;;  %v1274_v55 = vstv %s3149_s8  ;;  %v1181_v56 = vmul.f32 %v1179_v53, %v2819_v2  ;;  %v1264_v47 = vmul.f32 %v1263_v58, %v2896_v50  ;;  %s3238_s8 = sld [smem:[#allocation6 + $0x52]] }
 0x1f3   : > { %v1146_v16 = vadd.f32 %v1144_v36, %v1135_v38  ;;  %v1229_v1 = vadd.f32 %v1227_v49, %v1182_v57  ;;  %v1279_v57 = vstv %s3156_s24  ;;  %v1228_v32 = vmul.f32 %v1226_v35, %v2929_v19  ;;  %s3243_s24 = sld [smem:[#allocation6 + $0x28]] }
 0x1f4   : > { %v1275_v37 = vmul.f32 %v1274_v55, %v2918_v22  ;;  %v1233_v2 = vmul.f32 %v1231_v21, %v2933_v9  ;;  %v1280_v50 = vmul.f32 %v1279_v57, %v2902_v28  ;;  %v1306_v7 = vstv %s3173_s28  ;;  %s3258_s28 = sld [smem:[#allocation6 + $0x60]] }
 0x1f5   : > { %v1151_v27 = vadd.f32 %v1149_v23, %v1146_v16  ;;  %v1234_v51 = vadd.f32 %v1232_v63, %v1229_v1  ;;  %v1290_v16 = vstv %s3163_s23  ;;  %v1295_v23 = vstv %s3168_s27  ;;  %v3466_v63 = vld [vmem:[#allocation15_spill] sm:$0xff]  ;;  %s3248_s23 = sld [smem:[#allocation6 + $0x59]]  ;;  %s3253_s27 = sld [smem:[#allocation6 + $0x2f]] }
 0x1f6   : > { %v1244_v19 = vmul.f32 %v1242_v30, %v3466_v63 }
 0x1f7   : > { %v1162_v3 = vadd.f32 %v1160_v25, %v1151_v27  ;;  %v1245_v41 = vadd.f32 %v1243_v34, %v1234_v51  ;;  %v3467_v27 = vld [vmem:[#allocation21_spill] sm:$0xff]  ;;  %v3468_v51 = vld [vmem:[#allocation16_spill] sm:$0xff]  ;;  %v3469_v34 = vld [vmem:[#allocation23_spill] sm:$0xff] }
 0x1f8   : > { %v1291_v22 = vmul.f32 %v1290_v16, %v3467_v27  ;;  %v1249_v9 = vmul.f32 %v1247_v31, %v3468_v51  ;;  %v1296_v28 = vmul.f32 %v1295_v23, %v3469_v34  ;;  %v3475_v27 = vld [vmem:[#allocation24_spill] sm:$0xff]  ;;  %v1406_v34 = vstv %s3213_s30  ;;  %s3296_s30 = sld [smem:[#allocation6 + $0x4c]] }
 0x1f9   : > { %v1167_v5 = vadd.f32 %v1165_v6, %v1162_v3  ;;  %v1250_v38 = vadd.f32 %v1248_v12, %v1245_v41  ;;  %v1311_v3 = vstv %s3178_s29  ;;  %v3470_v41 = vld [vmem:[#allocation17_spill] sm:$0xff]  ;;  %s3263_s29 = sld [smem:[#allocation6 + $0x6]] }
 0x1fa   : > { %v1260_v30 = vmul.f32 %v1258_v29, %v3470_v41  ;;  %v1411_v41 = vstv %s3218_s3  ;;  %s3300_s3 = sld [smem:[#allocation6 + $0x22]] }
 0x1fb   : > { %v1178_v36 = vadd.f32 %v1176_v8, %v1167_v5  ;;  %v1261_v4 = vadd.f32 %v1259_v10, %v1250_v38  ;;  %v1307_v5 = vmul.f32 %v1306_v7, %v2937_v60  ;;  %v1322_v8 = vstv %s3183_s5  ;;  %v3471_v10 = vld [vmem:[#allocation18_spill] sm:$0xff]  ;;  %s3268_s5 = sld [smem:[#allocation6 + $0x37]] }
 0x1fc   : > { %v1265_v31 = vmul.f32 %v1263_v58, %v3471_v10  ;;  %v1323_v60 = vmul.f32 %v1322_v8, %v2951_v52  ;;  %v1427_v10 = vstv %s3228_s7  ;;  %s3308_s7 = sld [smem:[#allocation6 + $0x29]] }
 0x1fd   : > { %v1183_v49 = vadd.f32 %v1181_v56, %v1178_v36  ;;  %v1266_v40 = vadd.f32 %v1264_v47, %v1261_v4  ;;  %v1312_v56 = vmul.f32 %v1311_v3, %v2947_v17  ;;  %v1327_v4 = vstv %s3188_s4  ;;  %s3273_s4 = sld [smem:[#allocation6 + $0xd]] }
 0x1fe   : > { %v1328_v17 = vmul.f32 %v1327_v4, %v2958_v20 }
 0x1ff   : > { %v1230_v0 = vadd.f32 %v1228_v32, %v1183_v49  ;;  %v1277_v53 = vadd.f32 %v1275_v37, %v1266_v40  ;;  %v3472_v49 = vld [vmem:[#allocation19_spill] sm:$0xff]  ;;  %v1374_v40 = vstv %s3193_s6  ;;  %s3278_s6 = sld [smem:[#allocation6 + $0x3e]] }
 0x200   : > { %v1276_v29 = vmul.f32 %v1274_v55, %v3472_v49  ;;  %v1375_v52 = vmul.f32 %v1374_v40, %v3055_v11  ;;  %v1443_v49 = vstv %s3238_s8  ;;  %s3315_s8 = sld [smem:[#allocation6 + $0x30]] }
 0x201   : > { %v1235_v1 = vadd.f32 %v1233_v2, %v1230_v0  ;;  %v1282_v35 = vadd.f32 %v1280_v50, %v1277_v53  ;;  %v3473_v0 = vld [vmem:[#allocation20_spill] sm:$0xff]  ;;  %v1379_v53 = vstv %s3198_s17  ;;  %s3283_s17 = sld [smem:[#allocation6 + $0x14]] }
 0x202   : > { %v1281_v58 = vmul.f32 %v1279_v57, %v3473_v0  ;;  %v1297_v57 = vmul.f32 %v1295_v23, %v3475_v27  ;;  %v1380_v20 = vmul.f32 %v1379_v53, %v3074_v44  ;;  %v1313_v23 = vmul.f32 %v1311_v3, %v2949_v15 }
 0x203   : > { %v1246_v25 = vadd.f32 %v1244_v19, %v1235_v1  ;;  %v1293_v21 = vadd.f32 %v1291_v22, %v1282_v35  ;;  %v3474_v1 = vld [vmem:[#allocation22_spill] sm:$0xff]  ;;  %v1390_v19 = vstv %s3203_s19  ;;  %v1329_v15 = vmul.f32 %v1327_v4, %v2960_v54  ;;  %s3288_s19 = sld [smem:[#allocation6 + $0x45]] }
 0x204   : > { %v1292_v55 = vmul.f32 %v1290_v16, %v3474_v1  ;;  %v1391_v11 = vmul.f32 %v1390_v19, %v3057_v26  ;;  %v1407_v26 = vmul.f32 %v1406_v34, %v3059_v59  ;;  %v1381_v54 = vmul.f32 %v1379_v53, %v3076_v62 }
 0x205   : > { %v1251_v6 = vadd.f32 %v1249_v9, %v1246_v25  ;;  %v1298_v12 = vadd.f32 %v1296_v28, %v1293_v21  ;;  %v1395_v25 = vstv %s3208_s21  ;;  %v3476_v9 = vld [vmem:[#allocation25_spill] sm:$0xff]  ;;  %s3292_s21 = sld [smem:[#allocation6 + $0x1b]] }
 0x206   : > { %v1308_v16 = vmul.f32 %v1306_v7, %v3476_v9  ;;  %v1396_v44 = vmul.f32 %v1395_v25, %v3033_v14  ;;  %v1324_v7 = vmul.f32 %v1322_v8, %v2956_v13  ;;  %v1412_v14 = vmul.f32 %v1411_v41, %v3039_v43 }
 0x207   : > { %v1262_v38 = vadd.f32 %v1260_v30, %v1251_v6  ;;  %v1309_v36 = vadd.f32 %v1307_v5, %v1298_v12  ;;  %v1422_v5 = vstv %s3223_s25  ;;  %v1376_v13 = vmul.f32 %v1374_v40, %v3072_v39  ;;  %v3479_v40 = vld [vmem:[#allocation33_spill] sm:$0xff]  ;;  %s3304_s25 = sld [smem:[#allocation6 + $0x53]] }
 0x208   : > { %v1423_v59 = vmul.f32 %v1422_v5, %v3061_v18 }
 0x209   : > { %v1267_v47 = vadd.f32 %v1265_v31, %v1262_v38  ;;  %v1314_v32 = vadd.f32 %v1312_v56, %v1309_v36  ;;  %v1438_v36 = vstv %s3233_s16  ;;  %s3312_s16 = sld [smem:[#allocation6 + $0x5a]] }
 0x20a   : > { %v1439_v18 = vmul.f32 %v1438_v36, %v3479_v40  ;;  %v1550_v40 = vld [vmem:[#allocation5 + $0x1a] sm:$0xff] }
 0x20b   : > { %v1278_v37 = vadd.f32 %v1276_v29, %v1267_v47  ;;  %v1325_v2 = vadd.f32 %v1323_v60, %v1314_v32  ;;  %v3477_v47 = vld [vmem:[#allocation31_spill] sm:$0xff]  ;;  %v3478_v32 = vld [vmem:[#allocation26_spill] sm:$0xff] }
 0x20c   : > { %v1428_v43 = vmul.f32 %v1427_v10, %v3477_v47  ;;  %v1392_v39 = vmul.f32 %v1390_v19, %v3478_v32 }
 0x20d   : > { %v1283_v50 = vadd.f32 %v1281_v58, %v1278_v37  ;;  %v1330_v63 = vadd.f32 %v1328_v17, %v1325_v2  ;;  %v1454_v37 = vstv %s3243_s24  ;;  %v3480_v58 = vld [vmem:[#allocation27_spill] sm:$0xff]  ;;  %s3318_s24 = sld [smem:[#allocation6 + $0x61]] }
 0x20e   : > { %v1397_v62 = vmul.f32 %v1395_v25, %v3480_v58  ;;  %v3481_v17 = vld [vmem:[#allocation35_spill] sm:$0xff]  ;;  %v1455_v19 = vmul.f32 %v1454_v37, %v3080_v33 }
 0x20f   : > { %v1294_v35 = vadd.f32 %v1292_v55, %v1283_v50  ;;  %v1377_v22 = vadd.f32 %v1375_v52, %v1330_v63  ;;  %v1444_v53 = vmul.f32 %v1443_v49, %v3481_v17  ;;  %v1459_v50 = vstv %s3248_s23  ;;  %v3482_v55 = vld [vmem:[#allocation28_spill] sm:$0xff]  ;;  %v1516_v33 = vld [vmem:[#allocation5] sm:$0xff]  ;;  %s1763_s23 = sshll.u32 %s2336_s18, 4 }
 0x210   : > { %v1408_v63 = vmul.f32 %v1406_v34, %v3482_v55  ;;  %v1460_v25 = vmul.f32 %v1459_v50, %v3090_v45  ;;  %v1564_v17 = vld [vmem:[#allocation5 + $0x3] sm:$0xff] }
 0x211   : > { %v1299_v51 = vadd.f32 %v1297_v57, %v1294_v35  ;;  %v1382_v21 = vadd.f32 %v1380_v20, %v1377_v22  ;;  %v1470_v35 = vstv %s3253_s27  ;;  %v3483_v57 = vld [vmem:[#allocation29_spill] sm:$0xff]  ;;  %s187_s27 = scalar_lea.vmem [#allocation11], %s1763_s23 }
 0x212   : > { %v1413_v22 = vmul.f32 %v1411_v41, %v3483_v57  ;;  %v1471_v34 = vmul.f32 %v1470_v35, %v3094_v24 }
 0x213   : > { %v1310_v28 = vadd.f32 %v1308_v16, %v1299_v51  ;;  %v1393_v6 = vadd.f32 %v1391_v11, %v1382_v21  ;;  %v1475_v51 = vstv %s3258_s28  ;;  %v3484_v16 = vld [vmem:[#allocation30_spill] sm:$0xff]  ;;  %s1901_s28 = sshll.u32 %s2124_s12, 8  ;;  %s2153_s12 = smov [#allocation11]  }
 0x214   : > { %v1424_v21 = vmul.f32 %v1422_v5, %v3484_v16  ;;  %v1476_v45 = vmul.f32 %v1475_v51, %v3101_v46 }
 0x215   : > { %v1315_v30 = vadd.f32 %v1313_v23, %v1310_v28  ;;  %v1398_v12 = vadd.f32 %v1396_v44, %v1393_v6  ;;  %v1522_v28 = vstv %s3263_s29  ;;  %v3485_v6 = vld [vmem:[#allocation32_spill] sm:$0xff]  ;;  %s1656_s29 = sshll.u32 %s187_s27, 4  ;;  %s3332_s29 = int_to_ptr.vmem [resolvable:$true] %s1656_s29 }
 0x216   : > { %v1429_v44 = vmul.f32 %v1427_v10, %v3485_v6  ;;  %v3487_v10 = vld [vmem:[#allocation36_spill] sm:$0xff] }
 0x217   : > { %v1326_v38 = vadd.f32 %v1324_v7, %v1315_v30  ;;  %v1409_v3 = vadd.f32 %v1407_v26, %v1398_v12  ;;  %v1518_v30 = vld [vmem:[#allocation5 + $0x18] sm:$0xff]  ;;  %v1527_v7 = vstv %s3268_s5 }
 0x218   : > { %v3486_v26 = vld [vmem:[#allocation34_spill] sm:$0xff]  ;;  %v1528_v46 = vmul.f32 %v1527_v7, %v1518_v30 }
 0x219   : > { %v1331_v31 = vadd.f32 %v1329_v15, %v1326_v38  ;;  %v1414_v8 = vadd.f32 %v1412_v14, %v1409_v3  ;;  %v1440_v5 = vmul.f32 %v1438_v36, %v3486_v26  ;;  %v1523_v38 = vmul.f32 %v1522_v28, %v1516_v33  ;;  %v1532_v15 = vld [vmem:[#allocation5 + $0x1] sm:$0xff] }
 0x21a   : > { %v1538_v3 = vstv %s3273_s4 }
 0x21b   : > { %v1378_v56 = vadd.f32 %v1376_v13, %v1331_v31  ;;  %v1425_v4 = vadd.f32 %v1423_v59, %v1414_v8  ;;  %v1445_v31 = vmul.f32 %v1443_v49, %v3487_v10  ;;  %v1534_v8 = vld [vmem:[#allocation5 + $0x19] sm:$0xff]  ;;  %v1543_v59 = vstv %s3278_s6  ;;  %s3330_s6 = scalar_lea.hbm %s3384_s2, %s1901_s28 }
 0x21c   : > { %v1539_v47 = vmul.f32 %v1538_v3, %v1532_v15  ;;  %v1461_v49 = vmul.f32 %v1459_v50, %v3092_v48  ;;  %v1477_v48 = vmul.f32 %v1475_v51, %v3103_v42 }
 0x21d   : > { %v1383_v29 = vadd.f32 %v1381_v54, %v1378_v56  ;;  %v1430_v60 = vadd.f32 %v1428_v43, %v1425_v4  ;;  %v3488_v54 = vld [vmem:[#allocation37_spill] sm:$0xff]  ;;  %v1548_v43 = vld [vmem:[#allocation5 + $0x2] sm:$0xff] }
 0x21e   : > { %v1456_v36 = vmul.f32 %v1454_v37, %v3488_v54  ;;  %v1472_v37 = vmul.f32 %v1470_v35, %v3099_v61 }
 0x21f   : > { %v1394_v0 = vadd.f32 %v1392_v39, %v1383_v29  ;;  %v1441_v2 = vadd.f32 %v1439_v18, %v1430_v60  ;;  %v1554_v29 = vstv %s3283_s17  ;;  %v1544_v60 = vmul.f32 %v1543_v59, %v1534_v8  ;;  %s1643_s17 = scalar_lea.sflag [#allocation8], %s2336_s18 }
 0x220   : > { %v1559_v18 = vstv %s3288_s19  ;;  %s2046_s19 = scalar_lea.vmem %s3332_s29, 256 }
 0x221   : > { %v1399_v1 = vadd.f32 %v1397_v62, %v1394_v0  ;;  %v1446_v52 = vadd.f32 %v1444_v53, %v1441_v2  ;;  %v1555_v62 = vmul.f32 %v1554_v29, %v1548_v43  ;;  %v1517_v2 = vld [vmem:[#allocation5 + $0x8] sm:$0xff]  ;;  %v1570_v53 = vstv %s3292_s21  ;;  %p2047_p4 = scmp.ne.s32.totalorder %s3332_s29, %s2046_s19  ;;  %s2050_s21 = sshll.u32 %s2153_s12, 4  ;;  %s2051_s21 = int_to_ptr.vmem [resolvable:$false] %s2050_s21 }
 0x222   : > { %v1560_v55 = vmul.f32 %v1559_v18, %v1550_v40  ;;  %v1524_v35 = vmul.f32 %v1522_v28, %v1517_v2  ;;  %v1571_v57 = vmul.f32 %v1570_v53, %v1564_v17  ;;  %p2053_p0 = scmp.lt.s32.totalorder %s3332_s29, %s2051_s21 }
 0x223   : > { %v1410_v27 = vadd.f32 %v1408_v63, %v1399_v1  ;;  %v1457_v20 = vadd.f32 %v1455_v19, %v1446_v52  ;;  %v1519_v63 = vld [vmem:[#allocation5 + $0x20] sm:$0xff]  ;;  %v1575_v19 = vstv %s3296_s30  ;;  %p2048_p2 = pnand %p2047_p4, %p3489_p8  ;;  %s2052_s30 = scalar_lea.vmem %s2051_s21, 512 }
 0x224   : > { %v1566_v52 = vld [vmem:[#allocation5 + $0x1b] sm:$0xff]  ;;  %v1529_v42 = vmul.f32 %v1527_v7, %v1519_v63  ;;  %p2054_p3 = scmp.lt.s32.totalorder %s2052_s30, %s2046_s19 }
 0x225   : > { %v1415_v9 = vadd.f32 %v1413_v22, %v1410_v27  ;;  %v1462_v11 = vadd.f32 %v1460_v25, %v1457_v20  ;;  %v1533_v22 = vld [vmem:[#allocation5 + $0x9] sm:$0xff]  ;;  %v1586_v25 = vstv %s3300_s3  ;;  %v1576_v16 = vmul.f32 %v1575_v19, %v1566_v52  ;;  %p2049_p12 = pneg %p2048_p2 }
 0x226   : > { %v1580_v20 = vld [vmem:[#allocation5 + $0x4] sm:$0xff]  ;;  %v1540_v28 = vmul.f32 %v1538_v3, %v1533_v22  ;;  %p2055_p5 = por %p2054_p3, %p2053_p0 }
 0x227   : > { %v1426_v23 = vadd.f32 %v1424_v21, %v1415_v9  ;;  %v1473_v41 = vadd.f32 %v1471_v34, %v1462_v11  ;;  %v1535_v21 = vld [vmem:[#allocation5 + $0x21] sm:$0xff]  ;;  %v1591_v34 = vstv %s3304_s25  ;;  %v1587_v6 = vmul.f32 %v1586_v25, %v1580_v20 }
 0x228   : > { %v1582_v11 = vld [vmem:[#allocation5 + $0x1c] sm:$0xff]  ;;  %v1612_v3 = vld [vmem:[#allocation5 + $0x6] sm:$0xff]  ;;  %p2056_p11 = pnand %p2055_p5, %p2049_p12 }
 0x229   : > { %v1431_v12 = vadd.f32 %v1429_v44, %v1426_v23  ;;  %v1478_v24 = vadd.f32 %v1476_v45, %v1473_v41  ;;  %v1549_v44 = vld [vmem:[#allocation5 + $0xa] sm:$0xff]  ;;  %v1602_v45 = vstv %s3308_s7  ;;  %v1592_v7 = vmul.f32 %v1591_v34, %v1582_v11 }
 0x22a   : > { %v1596_v41 = vld [vmem:[#allocation5 + $0x5] sm:$0xff] }
 0x22b   : > { %v1442_v14 = vadd.f32 %v1440_v5, %v1431_v12  ;;  %v1525_v13 = vadd.f32 %v1523_v38, %v1478_v24  ;;  %v1545_v12 = vmul.f32 %v1543_v59, %v1535_v21  ;;  %v1551_v5 = vld [vmem:[#allocation5 + $0x22] sm:$0xff]  ;;  %v1607_v38 = vstv %s3312_s16 }
 0x22c   : > { %v1598_v24 = vld [vmem:[#allocation5 + $0x1d] sm:$0xff]  ;;  %v1623_v59 = vstv %s3318_s24 }
 0x22d   : > { %v1447_v56 = vadd.f32 %v1445_v31, %v1442_v14  ;;  %v1530_v4 = vadd.f32 %v1528_v46, %v1525_v13  ;;  %v1556_v14 = vmul.f32 %v1554_v29, %v1549_v44  ;;  %v1603_v31 = vmul.f32 %v1602_v45, %v1596_v41  ;;  %v1565_v13 = vld [vmem:[#allocation5 + $0xb] sm:$0xff] }
 0x22e   : > { %v1618_v46 = vstv %s3315_s8 }
 0x22f   : > { %v1458_v32 = vadd.f32 %v1456_v36, %v1447_v56  ;;  %v1541_v39 = vadd.f32 %v1539_v47, %v1530_v4  ;;  %v1561_v56 = vmul.f32 %v1559_v18, %v1551_v5  ;;  %v1608_v36 = vmul.f32 %v1607_v38, %v1598_v24  ;;  %v1567_v4 = vld [vmem:[#allocation5 + $0x23] sm:$0xff] }
 0x230   : > { %v1614_v47 = vld [vmem:[#allocation5 + $0x1e] sm:$0xff] }
 0x231   : > { %v1463_v0 = vadd.f32 %v1461_v49, %v1458_v32  ;;  %v1546_v58 = vadd.f32 %v1544_v60, %v1541_v39  ;;  %v1572_v32 = vmul.f32 %v1570_v53, %v1565_v13  ;;  %v1619_v39 = vmul.f32 %v1618_v46, %v1612_v3  ;;  %v1581_v60 = vld [vmem:[#allocation5 + $0xc] sm:$0xff] }
 0x232   : > { %v1588_v2 = vmul.f32 %v1586_v25, %v1581_v60  ;;  %v1613_v53 = vld [vmem:[#allocation5 + $0xe] sm:$0xff] }
 0x233   : > { %v1474_v1 = vadd.f32 %v1472_v37, %v1463_v0  ;;  %v1557_v50 = vadd.f32 %v1555_v62, %v1546_v58  ;;  %v1577_v0 = vmul.f32 %v1575_v19, %v1567_v4  ;;  %v1624_v37 = vmul.f32 %v1623_v59, %v1614_v47  ;;  %v1583_v58 = vld [vmem:[#allocation5 + $0x24] sm:$0xff] }
 0x235   : > { %v1479_v61 = vadd.f32 %v1477_v48, %v1474_v1  ;;  %v1562_v27 = vadd.f32 %v1560_v55, %v1557_v50  ;;  %v1597_v1 = vld [vmem:[#allocation5 + $0xd] sm:$0xff]  ;;  %v1593_v48 = vmul.f32 %v1591_v34, %v1583_v58  ;;  %v1599_v55 = vld [vmem:[#allocation5 + $0x25] sm:$0xff] }
 0x236   : > { %v1604_v52 = vmul.f32 %v1602_v45, %v1597_v1 }
 0x237   : > { %v1526_v9 = vadd.f32 %v1524_v35, %v1479_v61  ;;  %v1573_v51 = vadd.f32 %v1571_v57, %v1562_v27  ;;  %v1609_v35 = vmul.f32 %v1607_v38, %v1599_v55  ;;  %v1615_v27 = vld [vmem:[#allocation5 + $0x26] sm:$0xff]  ;;  %v1620_v57 = vmul.f32 %v1618_v46, %v1613_v53 }
 0x238   : > { %v1625_v20 = vmul.f32 %v1623_v59, %v1615_v27 }
 0x239   : > { %v1531_v33 = vadd.f32 %v1529_v42, %v1526_v9  ;;  %v1578_v23 = vadd.f32 %v1576_v16, %v1573_v51 }
 0x23b   : > { %v1542_v30 = vadd.f32 %v1540_v28, %v1531_v33  ;;  %v1589_v26 = vadd.f32 %v1587_v6, %v1578_v23 }
 0x23d   : > { %v1547_v15 = vadd.f32 %v1545_v12, %v1542_v30  ;;  %v1594_v10 = vadd.f32 %v1592_v7, %v1589_v26 }
 0x23f   : > { %v1558_v8 = vadd.f32 %v1556_v14, %v1547_v15  ;;  %v1605_v54 = vadd.f32 %v1603_v31, %v1594_v10 }
 0x241   : > { %v1563_v43 = vadd.f32 %v1561_v56, %v1558_v8  ;;  %v1610_v49 = vadd.f32 %v1608_v36, %v1605_v54 }
 0x243   : > { %v1574_v40 = vadd.f32 %v1572_v32, %v1563_v43  ;;  %v1621_v29 = vadd.f32 %v1619_v39, %v1610_v49 }
 0x245   : > { %v1579_v62 = vadd.f32 %v1577_v0, %v1574_v40  ;;  %v1626_v17 = vadd.f32 %v1624_v37, %v1621_v29 }
 0x247   : > { %v1590_v18 = vadd.f32 %v1588_v2, %v1579_v62  ;;  %v1893_v50 = vmul.f32 -1.442695, %v1626_v17 }
 0x249   : > { %v1595_v63 = vadd.f32 %v1593_v48, %v1590_v18  ;;  %1995 = vpow2.f32 %v1893_v50 }
 0x24b   : > { %v1606_v61 = vadd.f32 %v1604_v52, %v1595_v63 }
 0x24d   : > { %v1611_v19 = vadd.f32 %v1609_v35, %v1606_v61 }
 0x24f   : > { %v1622_v22 = vadd.f32 %v1620_v57, %v1611_v19 }
 0x251   : > { %v1627_v25 = vadd.f32 %v1625_v20, %v1622_v22 }
 0x253   : > { %v1996_v9 = vpop.eup %1995  ;;  %v1894_v42 = vmul.f32 -1.442695, %v1627_v25 }
 0x254   : > { %v1634_v51 = vadd.f32 1.0, %v1996_v9 }
 0x255   : > { %1997 = vpow2.f32 %v1894_v42 }
 0x256   : > { %1999 = vrcp.f32 %v1634_v51 }
 0x25f   : > { %v1998_v16 = vpop.eup %1997 }
 0x260   : > { %v2000_v21 = vpop.eup %1999  ;;  %v1635_v11 = vadd.f32 1.0, %v1998_v16 }
 0x261   : > { %1640 = vst.msk [vmem:[%s187_s27] sm:$0xff] %vm619_vm5, %v2000_v21 }
 0x262   : > { %2001 = vrcp.f32 %v1635_v11 }
 0x26c   : > { %v2002_v34 = vpop.eup %2001 }
 0x26d   : > { %1641 = vst.msk [vmem:[%s187_s27 + $0x8] sm:$0xff] %vm619_vm5, %v2002_v34 }
 0x26e   : > { %2059 = shalt.err (!%p2056_p11)
}
 0x26f   : > { %s2060_s3 = scalar_lea.hbm %s3330_s6, 256  ;;  %s2064_s16 = scalar_lea.hbm %s3384_s2, 512 }
 0x270   : > { %p2061_p13 = scmp.ne.s32.totalorder %s3330_s6, %s2060_s3  ;;  %p2065_p6 = scmp.lt.u32.totalorder %s3330_s6, %s3384_s2 }
 0x271   : > { %p2066_p9 = scmp.lt.u32.totalorder %s2064_s16, %s2060_s3  ;;  %p2068_p4 = scmp.lt.u32.totalorder %s2060_s3, %s3330_s6 }
 0x272   : > { %p2062_p7 = pnand %p2061_p13, %p3489_p8 }
 0x273   : > { %p2067_p1 = por %p2066_p9, %p2065_p6 }
 0x274   : > { %p2063_p10 = pneg %p2062_p7 }
 0x275   : > { %p2069_p2 = por %p2068_p4, %p2067_p1 }
 0x277   : > { %p2070_p12 = pnand %p2069_p2, %p2063_p10 }
 0x279   : > { %2073 = shalt.err (!%p2070_p12)
}
 0x27a   : > { %s2154_s23 = smov 128   ;;  %s2155_s27 = smov 8  }
 0x27b   : > { %1908 = dma.vmem_to_hbm [thread:$0]  (%p3489_p8), %s3332_s29, 256, %s3330_s6, %s1643_s17, %s2154_s23, %s2154_s23, %s2155_s27  }
 0x27c PF: > { %s1671_s28 = sand.u32 1, %s2112_s9   ;;  %p3490_p0 = scmp.ne.s32.totalorder %s3408_s20, 0 }
 0x27d   : > { %p3491_p3 = scmp.ge.s32.totalorder %s2132_s14, 2  ;;  %s1672_s5 = scalar_lea.sflag [#allocation8], %s1671_s28 }
 0x27f   : > { %p1919_p5 = pnand %p3491_p3, %p3490_p0 }
 0x281   : > { %2107 = dma.done.wait (!%p1919_p5), %s1672_s5, 256  }
 0x282   : > { %2109 = vsyncadd (!%p1919_p5), %s1672_s5, 4294967040  ;;  %s19_s14 = sadd.s32 1, %s2132_s14   ;;  %s3492_s9 = smov %s2116_s10 }
 0x283   : > { %p16_p11 = scmp.ge.s32.totalorder %s19_s14, 4   ;;  %s3493_s10 = smov %s2120_s11 }
 0x284   : > { %s3494_s11 = smov %s2288_s26  ;;  %s3495_s12 = smov %s2128_s13 }
 0x285   : > { %s3496_s13 = smov %s3498_s22  ;;  %18 = sbr.rel (!%p16_p11) target bundleno = 7 (0x7), region = 88 }
 0x28c   :  { %1677 = vsyncpa [#allocation7], 1 }
 0x28d   :  { %1679 = vsyncpa [#allocation7 + $0x1], 1 }
 0x28e   :  { %1680 = vsyncpa [#allocation8], 1 }
 0x28f   :  { %1682 = vsyncpa [#allocation8 + $0x1], 1 }
 0x290   :  { %1683 = vsyncpa [#allocation9], 1 }
 0x291   :  { %1685 = vsyncpa [#allocation9 + $0x1], 1 }

</bundles_post_ra>
